<compile_context>
chip_gen: v7x
topology: tpu7x:2x2x1
jax: 0.10.0
libtpu: 0.0.40
codegen_flags: <defaults>
</compile_context>

<pallas_src>
import jax
import jax.numpy as jnp
from jax.experimental import pallas as pl
from jax.experimental.pallas import tpu as pltpu


def _gcn_labeller_kernel(
    patches_ref, xdoc_ref, adj_ref,
    w_enc_ref, b_enc_ref,
    w1xd_ref, w1e_ref, b1_ref,
    w2_ref, b2_ref,
    w3_ref, b3_ref,
    wp_ref, bp_ref,
    out_ref,
):
    f32 = jnp.float32
    bf16 = jnp.bfloat16

    # Frozen-encoder stand-in: flattened patch (N, P*P*3) -> (N, 1024).
    enc = (jnp.dot(patches_ref[...], w_enc_ref[...], preferred_element_type=f32)
           + b_enc_ref[...])

    adj = adj_ref[...]  # bf16 normalized adjacency (N, N)

    # GCNConv1 on concat([x, enc, doc_types]); the tiny [x|doc] block is fused
    # into one K=36 matmul, the encoder block stays a K=1024 matmul.
    xw1 = (jnp.dot(xdoc_ref[...], w1xd_ref[...], preferred_element_type=f32)
           + jnp.dot(enc.astype(bf16), w1e_ref[...], preferred_element_type=f32))
    out1 = jnp.dot(adj, xw1.astype(bf16), preferred_element_type=f32) + b1_ref[...]

    # GCNConv2: 512 -> 256
    out2 = (jnp.dot(adj,
                    jnp.dot(out1.astype(bf16), w2_ref[...],
                            preferred_element_type=f32).astype(bf16),
                    preferred_element_type=f32) + b2_ref[...])
    # GCNConv3: 256 -> 128
    out3 = (jnp.dot(adj,
                    jnp.dot(out2.astype(bf16), w3_ref[...],
                            preferred_element_type=f32).astype(bf16),
                    preferred_element_type=f32) + b3_ref[...])

    # predictor(concat([out1, out2, out3])): single fused (896, 18) matmul
    # (512/256/128 are all lane-aligned so the concat is layout-clean).
    feats = jnp.concatenate([out1, out2, out3], axis=-1).astype(bf16)
    logits = jnp.dot(feats, wp_ref[...], preferred_element_type=f32) + bp_ref[...]

    # Numerically stable softmax; reciprocal goes to the EUP slot.
    m = jnp.max(logits, axis=-1, keepdims=True)
    e = jnp.exp(logits - m)
    out_ref[...] = e * pl.reciprocal(jnp.sum(e, axis=-1, keepdims=True), approx=True)


def build_normalized_adjacency(edge_index, num_nodes):
    """Dense symmetric-normalized adjacency with self loops (PyG gcn_norm)."""
    src = edge_index[0]
    dst = edge_index[1]
    a = jnp.zeros((num_nodes, num_nodes), jnp.float32).at[dst, src].set(1.0)
    a = jnp.maximum(a, jnp.eye(num_nodes, dtype=jnp.float32))
    deg = jnp.sum(a, axis=1)
    dinv = jnp.where(deg > 0.0, jax.lax.rsqrt(deg), 0.0)
    return dinv[:, None] * a * dinv[None, :]


def prepare_params(params):
    """Fuse the concat-block weights and cast weights to bf16 (done once)."""
    bf16 = jnp.bfloat16
    f32 = jnp.float32
    return {
        "w_enc": params["w_enc"].astype(bf16),
        "b_enc": params["b_enc"].astype(f32),
        # GCNConv1 weight split by concat blocks [x | enc | doc]:
        # fuse the tiny x (K=3) and doc (K=33) blocks -> (36, 512).
        "w1xd": jnp.concatenate([params["w1x"], params["w1d"]], axis=0).astype(bf16),
        "w1e": params["w1e"].astype(bf16),
        "b1": params["b1"].astype(f32),
        "w2": params["w2"].astype(bf16),
        "b2": params["b2"].astype(f32),
        "w3": params["w3"].astype(bf16),
        "b3": params["b3"].astype(f32),
        # predictor weight: fuse the three concat blocks -> (896, 18).
        "wp": jnp.concatenate(
            [params["wp1"], params["wp2"], params["wp3"]], axis=0).astype(bf16),
        "bp": params["bp"].astype(f32),
    }


def graph_contour_labeller(x, a_norm, patches, document_types, fused_params):
    """Batched forward pass.

    x: (B, N, 3) f32, a_norm: (B, N, N) f32 (precomputed gcn_norm adjacency),
    patches: (B, N, P, P, 3) f32 NHWC, document_types: (B, N, 33) f32
      -> (B, N, 18) softmax probabilities.
    """
    bf16 = jnp.bfloat16
    B, N = x.shape[0], x.shape[1]
    feat = patches.shape[2] * patches.shape[3] * patches.shape[4]

    patches_flat = patches.reshape(B, N, feat).astype(bf16)
    xdoc = jnp.concatenate([x, document_types], axis=-1).astype(bf16)   # (B, N, 36)
    adj = a_norm.astype(bf16)

    p = fused_params
    args = (patches_flat, xdoc, adj,
            p["w_enc"], p["b_enc"],
            p["w1xd"], p["w1e"], p["b1"],
            p["w2"], p["b2"],
            p["w3"], p["b3"],
            p["wp"], p["bp"])

    def per_graph(shape):
        # One graph per grid step; leading batch dim squeezed out of the kernel.
        zeros = (0,) * (len(shape) - 1)
        return pl.BlockSpec((None,) + tuple(shape[1:]), lambda b: (b,) + zeros)

    def resident(shape):
        # Same block index for every grid step -> weight stays VMEM-resident.
        zeros = (0,) * len(shape)
        return pl.BlockSpec(tuple(shape), lambda b: zeros)

    in_specs = ([per_graph(patches_flat.shape),
                 per_graph(xdoc.shape),
                 per_graph(adj.shape)]
                + [resident(a.shape) for a in args[3:]])

    return pl.pallas_call(
        _gcn_labeller_kernel,
        out_shape=jax.ShapeDtypeStruct((B, N, 18), jnp.float32),
        grid=(B,),
        in_specs=in_specs,
        out_specs=per_graph((B, N, 18)),
        compiler_params=pltpu.CompilerParams(
            dimension_semantics=("parallel",)),
    )(*args)


if __name__ == "__main__":
    B, N, P = 4, 8, 16  # 4 graphs, 8 nodes each, 16x16x3 patches

    key = jax.random.PRNGKey(0)
    keys = jax.random.split(key, 18)
    kx, kp, kd = keys[0], keys[1], keys[2]
    pk = keys[3:]

    x = jax.random.normal(kx, (B, N, 3), jnp.float32)
    patches = jax.random.normal(kp, (B, N, P, P, 3), jnp.float32)
    document_types = jax.random.normal(kd, (B, N, 33), jnp.float32)

    # Deterministic bidirectional ring graph per batch element.
    idx = jnp.arange(N, dtype=jnp.int32)
    edge_index = jnp.stack(
        [jnp.concatenate([idx, (idx + 1) % N]),
         jnp.concatenate([(idx + 1) % N, idx])], axis=0)          # (2, 16)
    edge_index_b = jnp.broadcast_to(edge_index, (B,) + edge_index.shape)

    # Graph structure is static -> precompute the normalized adjacency once,
    # outside the per-call hot path.
    a_norm = jax.vmap(lambda e: build_normalized_adjacency(e, N))(edge_index_b)

    def init(k, shape, scale=0.02):
        return scale * jax.random.normal(k, shape, jnp.float32)

    params = {
        # encoder stand-in (MobileNetV3-small 'classifier.0' output dim = 1024)
        "w_enc": init(pk[0], (P * P * 3, 1024)), "b_enc": init(pk[1], (1, 1024)),
        # GCNConv1: in = 3 + 1024 + 33 = 1060, out = 512 (split by concat blocks)
        "w1x": init(pk[2], (3, 512)),
        "w1e": init(pk[3], (1024, 512)),
        "w1d": init(pk[4], (33, 512)),
        "b1":  init(pk[5], (1, 512)),
        # GCNConv2: 512 -> 256
        "w2": init(pk[6], (512, 256)), "b2": init(pk[7], (1, 256)),
        # GCNConv3: 256 -> 128
        "w3": init(pk[8], (256, 128)), "b3": init(pk[9], (1, 128)),
        # predictor: Linear(512+256+128, 18), split by concat blocks
        "wp1": init(pk[10], (512, 18)),
        "wp2": init(pk[11], (256, 18)),
        "wp3": init(pk[12], (128, 18)),
        "bp":  init(pk[13], (1, 18)),
    }

    # Weight fusion + bf16 cast done once, outside the per-call path.
    fused = prepare_params(params)

    out = graph_contour_labeller(x, a_norm, patches, document_types, fused)
    jax.block_until_ready(out)
    assert out.shape == (B, N, 18)
    assert bool(jnp.all(jnp.isfinite(out)))
    print("KERNEL_OK")
</pallas_src>

<mosaic_0001>
module attributes {stable_mosaic.version = 11 : i64} {
  func.func @_gcn_labeller_kernel(%arg0: i32, %arg1: memref<1x8x768xbf16, #tpu.memory_space<vmem>>, %arg2: memref<1x8x36xbf16, #tpu.memory_space<vmem>>, %arg3: memref<1x8x8xbf16, #tpu.memory_space<vmem>>, %arg4: memref<768x1024xbf16, #tpu.memory_space<vmem>>, %arg5: memref<1x1024xf32, #tpu.memory_space<vmem>>, %arg6: memref<36x512xbf16, #tpu.memory_space<vmem>>, %arg7: memref<1024x512xbf16, #tpu.memory_space<vmem>>, %arg8: memref<1x512xf32, #tpu.memory_space<vmem>>, %arg9: memref<512x256xbf16, #tpu.memory_space<vmem>>, %arg10: memref<1x256xf32, #tpu.memory_space<vmem>>, %arg11: memref<256x128xbf16, #tpu.memory_space<vmem>>, %arg12: memref<1x128xf32, #tpu.memory_space<vmem>>, %arg13: memref<896x18xbf16, #tpu.memory_space<vmem>>, %arg14: memref<1x18xf32, #tpu.memory_space<vmem>>, %arg15: memref<1x8x18xf32, #tpu.memory_space<vmem>>) attributes {dimension_semantics = [#tpu.dimension_semantics<parallel>], iteration_bounds = array<i64: 4>, scalar_prefetch = 0 : i64, scratch_operands = 0 : i64, tpu.core_type = #tpu.core_type<tc>, window_params = [{transform_indices = @transform_0, window_bounds = array<i64: 1, 8, 768>}, {transform_indices = @transform_1, window_bounds = array<i64: 1, 8, 36>}, {transform_indices = @transform_2, window_bounds = array<i64: 1, 8, 8>}, {pipeline_mode = #tpu.pipeline_mode<synchronous>, transform_indices = @transform_3, window_bounds = array<i64: 768, 1024>}, {pipeline_mode = #tpu.pipeline_mode<synchronous>, transform_indices = @transform_4, window_bounds = array<i64: 1, 1024>}, {pipeline_mode = #tpu.pipeline_mode<synchronous>, transform_indices = @transform_5, window_bounds = array<i64: 36, 512>}, {pipeline_mode = #tpu.pipeline_mode<synchronous>, transform_indices = @transform_6, window_bounds = array<i64: 1024, 512>}, {pipeline_mode = #tpu.pipeline_mode<synchronous>, transform_indices = @transform_7, window_bounds = array<i64: 1, 512>}, {pipeline_mode = #tpu.pipeline_mode<synchronous>, transform_indices = @transform_8, window_bounds = array<i64: 512, 256>}, {pipeline_mode = #tpu.pipeline_mode<synchronous>, transform_indices = @transform_9, window_bounds = array<i64: 1, 256>}, {pipeline_mode = #tpu.pipeline_mode<synchronous>, transform_indices = @transform_10, window_bounds = array<i64: 256, 128>}, {pipeline_mode = #tpu.pipeline_mode<synchronous>, transform_indices = @transform_11, window_bounds = array<i64: 1, 128>}, {pipeline_mode = #tpu.pipeline_mode<synchronous>, transform_indices = @transform_12, window_bounds = array<i64: 896, 18>}, {pipeline_mode = #tpu.pipeline_mode<synchronous>, transform_indices = @transform_13, window_bounds = array<i64: 1, 18>}, {transform_indices = @transform_14, window_bounds = array<i64: 1, 8, 18>}]} {
    %c0 = arith.constant 0 : index
    %c0_0 = arith.constant 0 : index
    %c0_1 = arith.constant 0 : index
    %0 = vector.load %arg1[%c0, %c0_0, %c0_1] : memref<1x8x768xbf16, #tpu.memory_space<vmem>>, vector<1x8x768xbf16>
    %1 = vector.shape_cast %0 : vector<1x8x768xbf16> to vector<8x768xbf16>
    %c0_2 = arith.constant 0 : index
    %c0_3 = arith.constant 0 : index
    %2 = vector.load %arg4[%c0_2, %c0_3] : memref<768x1024xbf16, #tpu.memory_space<vmem>>, vector<768x1024xbf16>
    %cst = arith.constant dense<0.000000e+00> : vector<8x1024xf32>
    %3 = tpu.matmul %1, %2, %cst {dimension_numbers = #tpu.dot_dimension_numbers<[1], [0], [0], [1], [0, 0, 1, 1], [], []>} : vector<8x768xbf16>, vector<768x1024xbf16>, vector<8x1024xf32> -> vector<8x1024xf32>
    %c0_4 = arith.constant 0 : index
    %c0_5 = arith.constant 0 : index
    %4 = vector.load %arg5[%c0_4, %c0_5] : memref<1x1024xf32, #tpu.memory_space<vmem>>, vector<1x1024xf32>
    %5 = vector.broadcast %4 : vector<1x1024xf32> to vector<8x1024xf32>
    %6 = arith.addf %3, %5 : vector<8x1024xf32>
    %c0_6 = arith.constant 0 : index
    %c0_7 = arith.constant 0 : index
    %c0_8 = arith.constant 0 : index
    %7 = vector.load %arg3[%c0_6, %c0_7, %c0_8] : memref<1x8x8xbf16, #tpu.memory_space<vmem>>, vector<1x8x8xbf16>
    %8 = vector.shape_cast %7 : vector<1x8x8xbf16> to vector<8x8xbf16>
    %c0_9 = arith.constant 0 : index
    %c0_10 = arith.constant 0 : index
    %c0_11 = arith.constant 0 : index
    %9 = vector.load %arg2[%c0_9, %c0_10, %c0_11] : memref<1x8x36xbf16, #tpu.memory_space<vmem>>, vector<1x8x36xbf16>
    %10 = vector.shape_cast %9 : vector<1x8x36xbf16> to vector<8x36xbf16>
    %c0_12 = arith.constant 0 : index
    %c0_13 = arith.constant 0 : index
    %11 = vector.load %arg6[%c0_12, %c0_13] : memref<36x512xbf16, #tpu.memory_space<vmem>>, vector<36x512xbf16>
    %cst_14 = arith.constant dense<0.000000e+00> : vector<8x512xf32>
    %12 = tpu.matmul %10, %11, %cst_14 {dimension_numbers = #tpu.dot_dimension_numbers<[1], [0], [0], [1], [0, 0, 1, 1], [], []>} : vector<8x36xbf16>, vector<36x512xbf16>, vector<8x512xf32> -> vector<8x512xf32>
    %13 = arith.truncf %6 : vector<8x1024xf32> to vector<8x1024xbf16>
    %c0_15 = arith.constant 0 : index
    %c0_16 = arith.constant 0 : index
    %14 = vector.load %arg7[%c0_15, %c0_16] : memref<1024x512xbf16, #tpu.memory_space<vmem>>, vector<1024x512xbf16>
    %cst_17 = arith.constant dense<0.000000e+00> : vector<8x512xf32>
    %15 = tpu.matmul %13, %14, %cst_17 {dimension_numbers = #tpu.dot_dimension_numbers<[1], [0], [0], [1], [0, 0, 1, 1], [], []>} : vector<8x1024xbf16>, vector<1024x512xbf16>, vector<8x512xf32> -> vector<8x512xf32>
    %16 = arith.addf %12, %15 : vector<8x512xf32>
    %17 = arith.truncf %16 : vector<8x512xf32> to vector<8x512xbf16>
    %cst_18 = arith.constant dense<0.000000e+00> : vector<8x512xf32>
    %18 = tpu.matmul %8, %17, %cst_18 {dimension_numbers = #tpu.dot_dimension_numbers<[1], [0], [0], [1], [0, 0, 1, 1], [], []>} : vector<8x8xbf16>, vector<8x512xbf16>, vector<8x512xf32> -> vector<8x512xf32>
    %c0_19 = arith.constant 0 : index
    %c0_20 = arith.constant 0 : index
    %19 = vector.load %arg8[%c0_19, %c0_20] : memref<1x512xf32, #tpu.memory_space<vmem>>, vector<1x512xf32>
    %20 = vector.broadcast %19 : vector<1x512xf32> to vector<8x512xf32>
    %21 = arith.addf %18, %20 : vector<8x512xf32>
    %22 = arith.truncf %21 : vector<8x512xf32> to vector<8x512xbf16>
    %c0_21 = arith.constant 0 : index
    %c0_22 = arith.constant 0 : index
    %23 = vector.load %arg9[%c0_21, %c0_22] : memref<512x256xbf16, #tpu.memory_space<vmem>>, vector<512x256xbf16>
    %cst_23 = arith.constant dense<0.000000e+00> : vector<8x256xf32>
    %24 = tpu.matmul %22, %23, %cst_23 {dimension_numbers = #tpu.dot_dimension_numbers<[1], [0], [0], [1], [0, 0, 1, 1], [], []>} : vector<8x512xbf16>, vector<512x256xbf16>, vector<8x256xf32> -> vector<8x256xf32>
    %25 = arith.truncf %24 : vector<8x256xf32> to vector<8x256xbf16>
    %cst_24 = arith.constant dense<0.000000e+00> : vector<8x256xf32>
    %26 = tpu.matmul %8, %25, %cst_24 {dimension_numbers = #tpu.dot_dimension_numbers<[1], [0], [0], [1], [0, 0, 1, 1], [], []>} : vector<8x8xbf16>, vector<8x256xbf16>, vector<8x256xf32> -> vector<8x256xf32>
    %c0_25 = arith.constant 0 : index
    %c0_26 = arith.constant 0 : index
    %27 = vector.load %arg10[%c0_25, %c0_26] : memref<1x256xf32, #tpu.memory_space<vmem>>, vector<1x256xf32>
    %28 = vector.broadcast %27 : vector<1x256xf32> to vector<8x256xf32>
    %29 = arith.addf %26, %28 : vector<8x256xf32>
    %30 = arith.truncf %29 : vector<8x256xf32> to vector<8x256xbf16>
    %c0_27 = arith.constant 0 : index
    %c0_28 = arith.constant 0 : index
    %31 = vector.load %arg11[%c0_27, %c0_28] : memref<256x128xbf16, #tpu.memory_space<vmem>>, vector<256x128xbf16>
    %cst_29 = arith.constant dense<0.000000e+00> : vector<8x128xf32>
    %32 = tpu.matmul %30, %31, %cst_29 {dimension_numbers = #tpu.dot_dimension_numbers<[1], [0], [0], [1], [0, 0, 1, 1], [], []>} : vector<8x256xbf16>, vector<256x128xbf16>, vector<8x128xf32> -> vector<8x128xf32>
    %33 = arith.truncf %32 : vector<8x128xf32> to vector<8x128xbf16>
    %cst_30 = arith.constant dense<0.000000e+00> : vector<8x128xf32>
    %34 = tpu.matmul %8, %33, %cst_30 {dimension_numbers = #tpu.dot_dimension_numbers<[1], [0], [0], [1], [0, 0, 1, 1], [], []>} : vector<8x8xbf16>, vector<8x128xbf16>, vector<8x128xf32> -> vector<8x128xf32>
    %c0_31 = arith.constant 0 : index
    %c0_32 = arith.constant 0 : index
    %35 = vector.load %arg12[%c0_31, %c0_32] : memref<1x128xf32, #tpu.memory_space<vmem>>, vector<1x128xf32>
    %36 = vector.broadcast %35 : vector<1x128xf32> to vector<8x128xf32>
    %37 = arith.addf %34, %36 : vector<8x128xf32>
    %38 = tpu.concatenate %21, %29, %37 in 1 : vector<8x512xf32>, vector<8x256xf32>, vector<8x128xf32> -> vector<8x896xf32>
    %39 = arith.truncf %38 : vector<8x896xf32> to vector<8x896xbf16>
    %c0_33 = arith.constant 0 : index
    %c0_34 = arith.constant 0 : index
    %40 = vector.load %arg13[%c0_33, %c0_34] : memref<896x18xbf16, #tpu.memory_space<vmem>>, vector<896x18xbf16>
    %cst_35 = arith.constant dense<0.000000e+00> : vector<8x18xf32>
    %41 = tpu.matmul %39, %40, %cst_35 {dimension_numbers = #tpu.dot_dimension_numbers<[1], [0], [0], [1], [0, 0, 1, 1], [], []>} : vector<8x896xbf16>, vector<896x18xbf16>, vector<8x18xf32> -> vector<8x18xf32>
    %c0_36 = arith.constant 0 : index
    %c0_37 = arith.constant 0 : index
    %42 = vector.load %arg14[%c0_36, %c0_37] : memref<1x18xf32, #tpu.memory_space<vmem>>, vector<1x18xf32>
    %43 = vector.broadcast %42 : vector<1x18xf32> to vector<8x18xf32>
    %44 = arith.addf %41, %43 : vector<8x18xf32>
    %cst_38 = arith.constant dense<0xFF800000> : vector<8xf32>
    %45 = vector.multi_reduction <maximumf>, %44, %cst_38 [1] : vector<8x18xf32> to vector<8xf32>
    %46 = vector.shape_cast %45 : vector<8xf32> to vector<8x1xf32>
    %47 = vector.broadcast %46 : vector<8x1xf32> to vector<8x18xf32>
    %48 = arith.subf %44, %47 : vector<8x18xf32>
    %49 = math.exp %48 : vector<8x18xf32>
    %cst_39 = arith.constant dense<0.000000e+00> : vector<8xf32>
    %50 = vector.multi_reduction <add>, %49, %cst_39 [1] : vector<8x18xf32> to vector<8xf32>
    %51 = vector.shape_cast %50 : vector<8xf32> to vector<8x1xf32>
    %52 = tpu.reciprocal %51 {approx = true} : vector<8x1xf32> -> vector<8x1xf32>
    %53 = vector.broadcast %52 : vector<8x1xf32> to vector<8x18xf32>
    %54 = arith.mulf %49, %53 : vector<8x18xf32>
    %c0_40 = arith.constant 0 : index
    %c0_41 = arith.constant 0 : index
    %c0_42 = arith.constant 0 : index
    %55 = vector.load %arg15[%c0_40, %c0_41, %c0_42] : memref<1x8x18xf32, #tpu.memory_space<vmem>>, vector<1x8x18xf32>
    %56 = vector.shape_cast %55 : vector<1x8x18xf32> to vector<8x18xf32>
    %57 = vector.shape_cast %54 : vector<8x18xf32> to vector<1x8x18xf32>
    tpu.vector_store %arg15[%c0_40, %c0_41, %c0_42], %57 {strides = array<i32>} : memref<1x8x18xf32, #tpu.memory_space<vmem>>, vector<1x8x18xf32>,
    return
  }
  func.func @transform_0(%arg0: i32) -> (i32, i32, i32) {
    %c0_i32 = arith.constant 0 : i32
    %c0_i32_0 = arith.constant 0 : i32
    %c0_i32_1 = arith.constant 0 : i32
    return %arg0, %c0_i32, %c0_i32_0 : i32, i32, i32
  }
  func.func @transform_1(%arg0: i32) -> (i32, i32, i32) {
    %c0_i32 = arith.constant 0 : i32
    %c0_i32_0 = arith.constant 0 : i32
    %c0_i32_1 = arith.constant 0 : i32
    return %arg0, %c0_i32, %c0_i32_0 : i32, i32, i32
  }
  func.func @transform_2(%arg0: i32) -> (i32, i32, i32) {
    %c0_i32 = arith.constant 0 : i32
    %c0_i32_0 = arith.constant 0 : i32
    %c0_i32_1 = arith.constant 0 : i32
    return %arg0, %c0_i32, %c0_i32_0 : i32, i32, i32
  }
  func.func @transform_3(%arg0: i32) -> (i32, i32) {
    %c0_i32 = arith.constant 0 : i32
    %c0_i32_0 = arith.constant 0 : i32
    %c0_i32_1 = arith.constant 0 : i32
    return %c0_i32, %c0_i32_0 : i32, i32
  }
  func.func @transform_4(%arg0: i32) -> (i32, i32) {
    %c0_i32 = arith.constant 0 : i32
    %c0_i32_0 = arith.constant 0 : i32
    %c0_i32_1 = arith.constant 0 : i32
    return %c0_i32, %c0_i32_0 : i32, i32
  }
  func.func @transform_5(%arg0: i32) -> (i32, i32) {
    %c0_i32 = arith.constant 0 : i32
    %c0_i32_0 = arith.constant 0 : i32
    %c0_i32_1 = arith.constant 0 : i32
    return %c0_i32, %c0_i32_0 : i32, i32
  }
  func.func @transform_6(%arg0: i32) -> (i32, i32) {
    %c0_i32 = arith.constant 0 : i32
    %c0_i32_0 = arith.constant 0 : i32
    %c0_i32_1 = arith.constant 0 : i32
    return %c0_i32, %c0_i32_0 : i32, i32
  }
  func.func @transform_7(%arg0: i32) -> (i32, i32) {
    %c0_i32 = arith.constant 0 : i32
    %c0_i32_0 = arith.constant 0 : i32
    %c0_i32_1 = arith.constant 0 : i32
    return %c0_i32, %c0_i32_0 : i32, i32
  }
  func.func @transform_8(%arg0: i32) -> (i32, i32) {
    %c0_i32 = arith.constant 0 : i32
    %c0_i32_0 = arith.constant 0 : i32
    %c0_i32_1 = arith.constant 0 : i32
    return %c0_i32, %c0_i32_0 : i32, i32
  }
  func.func @transform_9(%arg0: i32) -> (i32, i32) {
    %c0_i32 = arith.constant 0 : i32
    %c0_i32_0 = arith.constant 0 : i32
    %c0_i32_1 = arith.constant 0 : i32
    return %c0_i32, %c0_i32_0 : i32, i32
  }
  func.func @transform_10(%arg0: i32) -> (i32, i32) {
    %c0_i32 = arith.constant 0 : i32
    %c0_i32_0 = arith.constant 0 : i32
    %c0_i32_1 = arith.constant 0 : i32
    return %c0_i32, %c0_i32_0 : i32, i32
  }
  func.func @transform_11(%arg0: i32) -> (i32, i32) {
    %c0_i32 = arith.constant 0 : i32
    %c0_i32_0 = arith.constant 0 : i32
    %c0_i32_1 = arith.constant 0 : i32
    return %c0_i32, %c0_i32_0 : i32, i32
  }
  func.func @transform_12(%arg0: i32) -> (i32, i32) {
    %c0_i32 = arith.constant 0 : i32
    %c0_i32_0 = arith.constant 0 : i32
    %c0_i32_1 = arith.constant 0 : i32
    return %c0_i32, %c0_i32_0 : i32, i32
  }
  func.func @transform_13(%arg0: i32) -> (i32, i32) {
    %c0_i32 = arith.constant 0 : i32
    %c0_i32_0 = arith.constant 0 : i32
    %c0_i32_1 = arith.constant 0 : i32
    return %c0_i32, %c0_i32_0 : i32, i32
  }
  func.func @transform_14(%arg0: i32) -> (i32, i32, i32) {
    %c0_i32 = arith.constant 0 : i32
    %c0_i32_0 = arith.constant 0 : i32
    %c0_i32_1 = arith.constant 0 : i32
    return %arg0, %c0_i32, %c0_i32_0 : i32, i32, i32
  }
}

</mosaic_0001>

<bundles_post_ra>
// kernel: tpu_custom_call.1
= control target key start
LH: loop header
LB: loop body
LE: loop exit
PB: predicated region body
PF: predicated region fallthrough
CT: control target
= control target key end

     0   :  { %s10481_s0 = inlined_call_operand.hbm [shape: bf16[4,8,768], index: 0, kind: input, shape index: {}]   ;;  %s10482_s1 = inlined_call_operand.hbm [shape: bf16[4,8,36], index: 1, kind: input, shape index: {}]   ;;  %s10483_s2 = inlined_call_operand.hbm [shape: bf16[4,8,8], index: 2, kind: input, shape index: {}]   ;;  %s10484_s3 = inlined_call_operand.hbm [shape: bf16[768,1024], index: 3, kind: input, shape index: {}]   ;;  %s10485_s4 = inlined_call_operand.hbm [shape: f32[1,1024], index: 4, kind: input, shape index: {}]   ;;  %s10486_s5 = inlined_call_operand.hbm [shape: bf16[36,512], index: 5, kind: input, shape index: {}]   ;;  %s10487_s6 = inlined_call_operand.hbm [shape: bf16[1024,512], index: 6, kind: input, shape index: {}]   ;;  %s10488_s7 = inlined_call_operand.hbm [shape: f32[1,512], index: 7, kind: input, shape index: {}]   ;;  %s10489_s8 = inlined_call_operand.hbm [shape: bf16[512,256], index: 8, kind: input, shape index: {}]   ;;  %s10490_s9 = inlined_call_operand.hbm [shape: f32[1,256], index: 9, kind: input, shape index: {}]   ;;  %s10491_s10 = inlined_call_operand.hbm [shape: bf16[256,128], index: 10, kind: input, shape index: {}]   ;;  %s10492_s11 = inlined_call_operand.hbm [shape: f32[1,128], index: 11, kind: input, shape index: {}]   ;;  %s10493_s12 = inlined_call_operand.vmem [shape: bf16[896,18], index: 12, kind: input, shape index: {}]   ;;  %s10494_s13 = inlined_call_operand.hbm [shape: f32[1,18], index: 13, kind: input, shape index: {}]   ;;  %s10495_s14 = inlined_call_operand.hbm [shape: f32[4,8,18], index: 14, kind: output, shape index: {}]  }
   0x1   :  { %10522 = sst [smem:[#allocation37_spill]] %s10481_s0 }
   0x2   :  { %10523 = sst [smem:[#allocation38_spill]] %s10482_s1 }
   0x3   :  { %10524 = sst [smem:[#allocation39_spill]] %s10484_s3 }
   0x4   :  { %10525 = sst [smem:[#allocation40_spill]] %s10485_s4 }
   0x5   :  { %10526 = sst [smem:[#allocation41_spill]] %s10486_s5 }
   0x6   :  { %10527 = sst [smem:[#allocation42_spill]] %s10487_s6 }
   0x7   :  { %10528 = sst [smem:[#allocation43_spill]] %s10488_s7 }
   0x8   :  { %10529 = sst [smem:[#allocation44_spill]] %s10489_s8 }
   0x9   :  { %10530 = sst [smem:[#allocation45_spill]] %s10490_s9 }
   0xa   :  { %10531 = sst [smem:[#allocation46_spill]] %s10491_s10 }
   0xb   :  { %10532 = sst [smem:[#allocation47_spill]] %s10492_s11 }
   0xc   :  { %10533 = sst [smem:[#allocation48_spill]] %s10493_s12 }
   0xd   :  { %10534 = sst [smem:[#allocation49_spill]] %s10494_s13 }
   0xe   :  { %10535 = sst [smem:[#allocation50_spill]] %s10495_s14 }
   0xf   :  { %19 = vsyncpa [#allocation3], 0 }
  0x10   :  { %21 = vsyncpa [#allocation3 + $0x1], 0 }
  0x11   :  { %22 = vsyncpa [#allocation6], 0 }
  0x12   :  { %24 = vsyncpa [#allocation6 + $0x1], 0 }
  0x13   :  { %25 = vsyncpa [#allocation9], 0 }
  0x14   :  { %26 = vsyncpa [#allocation12], 0 }
  0x15   :  { %27 = vsyncpa [#allocation15], 0 }
  0x16   :  { %28 = vsyncpa [#allocation18], 0 }
  0x17   :  { %29 = vsyncpa [#allocation21], 0 }
  0x18   :  { %30 = vsyncpa [#allocation4], 0 }
  0x19   :  { %32 = vsyncpa [#allocation4 + $0x1], 0  ;;  %s9670_s29 = smov 0   ;;  %s9672_s30 = smov 0  }
  0x1a   :  { %s9674_s15 = smov 0   ;;  %s9676_s16 = smov 0  }
  0x1b LB: > { %10536 = sst [smem:[#allocation32_spill]] %s9564_s15  ;;  %s9570_s17 = smov [#allocation8]   ;;  %s9568_s16 = sphi %s9676_s16, %s10589_s16   ;;  %s9564_s15 = sphi %s9674_s15, %s10591_s15   ;;  %s9560_s30 = sphi %s9672_s30, %s10593_s30   ;;  %s9556_s29 = sphi %s9670_s29, %s10592_s29  }
  0x1c   : > { %s390_s18 = sshll.u32 %s9570_s17, 4  ;;  %s9691_s19 = sadd.s32 4294967295, %s9568_s16   ;;  %s9696_s18 = int_to_ptr.vmem [resolvable:$true] %s390_s18 }
  0x1d   : > { %p7315_p0 = scmp.ge.s32.totalorder %s9568_s16, 1  ;;  %p10502_p1 = scmp.eq.s32.totalorder %s9691_s19, 0 }
  0x1e   : > { %p378_p2 = scmp.lt.s32.totalorder %s9568_s16, 5  ;;  %s9571_s21 = smov [#allocation11]  }
  0x1f   : > { %s414_s22 = sshll.u32 %s9571_s21, 4  ;;  %s9572_s24 = smov [#allocation14]   ;;  %s9710_s22 = int_to_ptr.vmem [resolvable:$true] %s414_s22 }
  0x20   : > { %p9698_p3 = pnand %p7315_p0, %p378_p2  ;;  %s9712_s25 = sshll.u32 %s9572_s24, 4  ;;  %s442_s25 = int_to_ptr.vmem [resolvable:$true] %s9712_s25 }
  0x21   : > { %s10540_s3 = sld [smem:[#allocation39_spill]] }
  0x22   : > { %s10537_s20 = scalar_select %p9698_p3, 1, 0 }
  0x23   : > { %p8409_p4 = pneg %p9698_p3 }
  0x24   : > { %10538 = sst [smem:[#allocation33_spill]] %s10537_s20 }
  0x25   : > { %p9706_p5 = pnand %p8409_p4, %p10502_p1 }
  0x27   : > { %s10539_s23 = scalar_select %p9706_p5, 1, 0 }
  0x28   : > { %s9108_s28 = scalar_lea.hbm %s10540_s3, 49152  ;;  %p9722_p7 = pneg %p9706_p5 }
  0x29   : > { %p9109_p6 = scmp.ne.s32.totalorder %s10540_s3, %s9108_s28  ;;  %p9115_p10 = scmp.lt.u32.totalorder %s9108_s28, %s10540_s3 }
  0x2a   : > { %s10541_s21 = scalar_select %p9722_p7, 1, 0 }
  0x2b   : > { %p9111_p8 = pnand %p9722_p7, %p9109_p6 }
  0x2d   : > { %p9112_p9 = pneg %p9111_p8 }
  0x2f   : > { %p9117_p11 = pnand %p9115_p10, %p9112_p9 }
  0x31   : > { %9120 = shalt.err (!%p9117_p11)
}
  0x32   : > { %s9121_s14 = scalar_lea.vmem %s9696_s18, 49152  ;;  %p9129_p2 = scmp.lt.s32.totalorder %s9696_s18, %s9696_s18 }
  0x33   : > { %p9122_p12 = scmp.ne.s32.totalorder %s9696_s18, %s9121_s14  ;;  %p9130_p4 = scmp.lt.s32.totalorder %s9121_s14, %s9121_s14 }
  0x35   : > { %p9124_p13 = pnand %p9122_p12, %p9722_p7  ;;  %p9131_p6 = por %p9130_p4, %p9129_p2 }
  0x37   : > { %p9125_p0 = pneg %p9124_p13 }
  0x39   : > { %p9132_p8 = pnand %p9131_p6, %p9125_p0 }
  0x3b   : > { %9135 = shalt.err (!%p9132_p8)
}
  0x3c   : > { %s9573_s26 = smov 512   ;;  %s9574_s12 = smov 32  }
  0x3d   : > { %8412 = dma.hbm_to_vmem [thread:$0]  (!%p9706_p5), %s10540_s3, 49152, %s9696_s18, [#allocation9], %s9573_s26, %s9573_s26, %s9574_s12  }
  0x3e   : > { %s10542_s5 = sld [smem:[#allocation41_spill]] }
  0x44   : > { %s9136_s20 = scalar_lea.hbm %s10542_s5, 1280 }
  0x45   : > { %p9137_p9 = scmp.ne.s32.totalorder %s10542_s5, %s9136_s20  ;;  %p9143_p12 = scmp.lt.u32.totalorder %s9136_s20, %s10542_s5 }
  0x47   : > { %p9139_p10 = pnand %p9137_p9, %p9722_p7 }
  0x49   : > { %p9140_p11 = pneg %p9139_p10 }
  0x4b   : > { %p9145_p13 = pnand %p9143_p12, %p9140_p11 }
  0x4d   : > { %9148 = shalt.err (!%p9145_p13)
}
  0x4e   : > { %s9149_s18 = scalar_lea.vmem %s9710_s22, 1280  ;;  %p9157_p6 = scmp.lt.s32.totalorder %s9710_s22, %s9710_s22 }
  0x4f   : > { %p9150_p0 = scmp.ne.s32.totalorder %s9710_s22, %s9149_s18  ;;  %p9158_p8 = scmp.lt.s32.totalorder %s9149_s18, %s9149_s18 }
  0x51   : > { %p9152_p2 = pnand %p9150_p0, %p9722_p7  ;;  %p9159_p9 = por %p9158_p8, %p9157_p6 }
  0x53   : > { %p9153_p4 = pneg %p9152_p2 }
  0x55   : > { %p9160_p10 = pnand %p9159_p9, %p9153_p4 }
  0x57   : > { %9163 = shalt.err (!%p9160_p10)
}
  0x58   : > { %s10504_s0 = smov 256   ;;  %s10505_s10 = smov 16  }
  0x59   : > { %8418 = dma.hbm_to_vmem [thread:$0]  (!%p9706_p5), %s10542_s5, 1280, %s9710_s22, [#allocation12], %s10504_s0, %s10504_s0, %s10505_s10  }
  0x5a   : > { %s10543_s7 = sld [smem:[#allocation43_spill]] }
  0x60   : > { %s9164_s27 = scalar_lea.hbm %s10543_s7, 64 }
  0x61   : > { %p9165_p11 = scmp.ne.s32.totalorder %s10543_s7, %s9164_s27  ;;  %p9171_p0 = scmp.lt.u32.totalorder %s9164_s27, %s10543_s7 }
  0x63   : > { %p9167_p12 = pnand %p9165_p11, %p9722_p7 }
  0x65   : > { %p9168_p13 = pneg %p9167_p12 }
  0x67   : > { %p9173_p2 = pnand %p9171_p0, %p9168_p13 }
  0x69   : > { %9176 = shalt.err (!%p9173_p2)
}
  0x6a   : > { %s9177_s18 = scalar_lea.vmem %s442_s25, 64  ;;  %p9185_p9 = scmp.lt.s32.totalorder %s442_s25, %s442_s25 }
  0x6b   : > { %p9178_p4 = scmp.ne.s32.totalorder %s442_s25, %s9177_s18  ;;  %p9186_p10 = scmp.lt.s32.totalorder %s9177_s18, %s9177_s18 }
  0x6d   : > { %p9180_p6 = pnand %p9178_p4, %p9722_p7  ;;  %p9187_p1 = por %p9186_p10, %p9185_p9 }
  0x6f   : > { %p9181_p8 = pneg %p9180_p6 }
  0x71   : > { %p9188_p3 = pnand %p9187_p1, %p9181_p8 }
  0x73   : > { %9191 = shalt.err (!%p9188_p3)
}
  0x74   : > { %8424 = dma.hbm_to_vmem [thread:$0]  (!%p9706_p5), %s10543_s7, 64, %s442_s25, [#allocation15]  }
  0x75   : > { %s9577_s20 = smov [#allocation17]   ;;  %s9578_s12 = smov [#allocation20]  }
  0x76   : > { %s465_s26 = sshll.u32 %s9577_s20, 4  ;;  %s489_s27 = sshll.u32 %s9578_s12, 4  ;;  %s466_s26 = int_to_ptr.vmem [resolvable:$true] %s465_s26  ;;  %s490_s27 = int_to_ptr.vmem [resolvable:$true] %s489_s27 }
  0x77   : > { %s10544_s9 = sld [smem:[#allocation45_spill]] }
  0x7d   : > { %s9192_s24 = scalar_lea.hbm %s10544_s9, 32 }
  0x7e   : > { %p9193_p1 = scmp.ne.s32.totalorder %s10544_s9, %s9192_s24  ;;  %p9199_p12 = scmp.lt.u32.totalorder %s9192_s24, %s10544_s9 }
  0x80   : > { %p9195_p3 = pnand %p9193_p1, %p9722_p7 }
  0x82   : > { %p9196_p11 = pneg %p9195_p3 }
  0x84   : > { %p9201_p13 = pnand %p9199_p12, %p9196_p11 }
  0x86   : > { %9204 = shalt.err (!%p9201_p13)
}
  0x87   : > { %s9205_s25 = scalar_lea.vmem %s466_s26, 32  ;;  %p9213_p6 = scmp.lt.s32.totalorder %s466_s26, %s466_s26 }
  0x88   : > { %p9206_p0 = scmp.ne.s32.totalorder %s466_s26, %s9205_s25  ;;  %p9214_p8 = scmp.lt.s32.totalorder %s9205_s25, %s9205_s25 }
  0x8a   : > { %p9208_p2 = pnand %p9206_p0, %p9722_p7  ;;  %p9215_p9 = por %p9214_p8, %p9213_p6 }
  0x8c   : > { %p9209_p4 = pneg %p9208_p2 }
  0x8e   : > { %p9216_p10 = pnand %p9215_p9, %p9209_p4 }
  0x90   : > { %9219 = shalt.err (!%p9216_p10)
}
  0x91   : > { %8430 = dma.hbm_to_vmem [thread:$0]  (!%p9706_p5), %s10544_s9, 32, %s466_s26, [#allocation18]  }
  0x92   : > { %s10545_s11 = sld [smem:[#allocation47_spill]] }
  0x98   : > { %s9220_s28 = scalar_lea.hbm %s10545_s11, 16 }
  0x99   : > { %p9221_p1 = scmp.ne.s32.totalorder %s10545_s11, %s9220_s28  ;;  %p9227_p12 = scmp.lt.u32.totalorder %s9220_s28, %s10545_s11 }
  0x9b   : > { %p9223_p3 = pnand %p9221_p1, %p9722_p7 }
  0x9d   : > { %p9224_p11 = pneg %p9223_p3 }
  0x9f   : > { %p9229_p13 = pnand %p9227_p12, %p9224_p11 }
  0xa1   : > { %9232 = shalt.err (!%p9229_p13)
}
  0xa2   : > { %s9233_s22 = scalar_lea.vmem %s490_s27, 16  ;;  %s9240_s26 = scalar_lea.vmem %s490_s27, 32 }
  0xa3   : > { %p9234_p0 = scmp.ne.s32.totalorder %s490_s27, %s9233_s22  ;;  %p9241_p6 = scmp.lt.s32.totalorder %s490_s27, %s490_s27 }
  0xa4   : > { %p9242_p8 = scmp.lt.s32.totalorder %s9240_s26, %s9233_s22 }
  0xa5   : > { %p9236_p2 = pnand %p9234_p0, %p9722_p7 }
  0xa6   : > { %p9243_p9 = por %p9242_p8, %p9241_p6 }
  0xa7   : > { %p9237_p4 = pneg %p9236_p2 }
  0xa9   : > { %p9244_p10 = pnand %p9243_p9, %p9237_p4 }
  0xab   : > { %9247 = shalt.err (!%p9244_p10)
}
  0xac   : > { %8436 = dma.hbm_to_vmem [thread:$0]  (!%p9706_p5), %s10545_s11, 16, %s490_s27, [#allocation21]  }
  0xad   : > { %s7314_s20 = sadd.s32 4294967294, %s9568_s16   ;;  %s9826_s0 = sadd.s32 1, %s9568_s16  }
  0xae   : > { %10546 = sst [smem:[#allocation34_spill]] %s9826_s0  ;;  %s45_s12 = sadd.s32 1, %s9564_s15 }
  0xaf   : > { %s42_s28 = ssub.s32 %s9568_s16, %s9826_s0  ;;  %p52_p1 = scmp.ne.s32.totalorder %s9564_s15, %s9560_s30 }
  0xb0   : > { %p43_p3 = scmp.eq.s32.totalorder %s42_s28, 0  ;;  %p53_p11 = scmp.eq.s32.totalorder %s9568_s16, 0 }
  0xb1   : > { %p58_p12 = scmp.ne.s32.totalorder %s9560_s30, %s9556_s29  ;;  %p365_p13 = scmp.eq.s32.totalorder %s9691_s19, 3 }
  0xb2   : > { %s9838_s17 = scalar_select %p43_p3, %s9564_s15, %s45_s12  }
  0xb3   : > { %p54_p0 = por %p53_p11, %p52_p1  ;;  %p10548_p2 = scmp.eq.s32.totalorder %s9691_s19, 0 }
  0xb4   : > { %10547 = sst [smem:[#allocation35_spill]] %s9838_s17  ;;  %p9846_p6 = por %p365_p13, %p52_p1 }
  0xb5   : > { %p9842_p4 = por %p10548_p2, %p58_p12  ;;  %p371_p8 = scmp.eq.s32.totalorder %s7314_s20, 3 }
  0xb6   : > { %s10550_s24 = scalar_select %p9846_p6, 1, 0 }
  0xb7   : > { %s10549_s27 = scalar_select %p9842_p4, 1, 0 }
  0xb8   : > { %p8464_p9 = scmp.lt.s32.totalorder %s9568_s16, 4  ;;  %s9852_s14 = sand.u32 1, %s9564_s15  }
  0xb9   : > { %p9854_p10 = por %p371_p8, %p58_p12  ;;  %s533_s22 = sand.u32 1, %s9568_s16  }
  0xba   : > { %p9859_p3 = pnand %p8464_p9, %p54_p0  ;;  %s10506_s25 = sshll.u32 %s9852_s14, 2 }
  0xbb   : > { %s10551_s18 = scalar_select %p9854_p10, 1, 0 }
  0xbc   : > { %s10553_s26 = scalar_select %p9859_p3, 1, 0 }
  0xbd   : > { %10552 = sst [smem:[#allocation36_spill]] %s10551_s18  ;;  %s10507_s13 = sshll.u32 %s9568_s16, 6 }
  0xbe   : > { %s10554_s1 = sld [smem:[#allocation38_spill]]  ;;  %s537_s10 = scalar_lea.vmem [#allocation5], %s10506_s25 }
  0xbf   : > { %s544_s3 = sshll.u32 %s537_s10, 4  ;;  %s9876_s5 = scalar_lea.sflag [#allocation6], %s533_s22  ;;  %s9874_s3 = int_to_ptr.vmem [resolvable:$true] %s544_s3 }
  0xc0   : > { %p9882_p11 = pneg %p9859_p3 }
  0xc2   : > { %s10555_s9 = scalar_select %p9882_p11, 1, 0 }
  0xc4   : > { %s9870_s28 = scalar_lea.hbm %s10554_s1, %s10507_s13  ;;  %s9253_s25 = scalar_lea.hbm %s10554_s1, 256 }
  0xc5   : > { %s9248_s7 = scalar_lea.hbm %s9870_s28, 64  ;;  %p9254_p0 = scmp.lt.u32.totalorder %s9870_s28, %s10554_s1 }
  0xc6   : > { %p9249_p1 = scmp.ne.s32.totalorder %s9870_s28, %s9248_s7  ;;  %p9255_p2 = scmp.lt.u32.totalorder %s9253_s25, %s9248_s7 }
  0xc7   : > { %p9257_p9 = scmp.lt.u32.totalorder %s9248_s7, %s9870_s28 }
  0xc8   : > { %p9251_p12 = pnand %p9882_p11, %p9249_p1  ;;  %p9256_p8 = por %p9255_p2, %p9254_p0 }
  0xca   : > { %p9252_p13 = pneg %p9251_p12  ;;  %p9258_p10 = por %p9257_p9, %p9256_p8 }
  0xcc   : > { %p9259_p6 = pnand %p9258_p10, %p9252_p13 }
  0xce   : > { %9262 = shalt.err (!%p9259_p6)
}
  0xcf   : > { %s9263_s22 = scalar_lea.vmem %s9874_s3, 64  ;;  %s9579_s12 = smov [#allocation5]  }
  0xd0   : > { %p9264_p1 = scmp.ne.s32.totalorder %s9874_s3, %s9263_s22  ;;  %s9268_s20 = sshll.u32 %s9579_s12, 4  ;;  %s9269_s20 = int_to_ptr.vmem [resolvable:$false] %s9268_s20 }
  0xd1   : > { %s9270_s13 = scalar_lea.vmem %s9269_s20, 128  ;;  %p9271_p5 = scmp.lt.s32.totalorder %s9874_s3, %s9269_s20 }
  0xd2   : > { %p9266_p12 = pnand %p9264_p1, %p9882_p11  ;;  %p9272_p7 = scmp.lt.s32.totalorder %s9270_s13, %s9263_s22 }
  0xd4   : > { %p9267_p4 = pneg %p9266_p12  ;;  %p9273_p0 = por %p9272_p7, %p9271_p5 }
  0xd6   : > { %p9274_p2 = pnand %p9273_p0, %p9267_p4 }
  0xd8   : > { %9277 = shalt.err (!%p9274_p2)
}
  0xd9   : > { %8446 = dma.hbm_to_vmem [thread:$0]  (!%p9859_p3), %s9870_s28, 64, %s9874_s3, %s9876_s5  }
  0xda   : > { %s10556_s7 = sshll.u32 %s9568_s16, 6  ;;  %s9580_s1 = smov [#allocation10]  }
  0xdb   : > { %s9911_s12 = scalar_lea.hbm %s10483_s2, %s10556_s7  ;;  %s404_s20 = sshll.u32 %s9580_s1, 4  ;;  %s405_s20 = int_to_ptr.vmem [resolvable:$true] %s404_s20 }
  0xdc   : > { %s9581_s22 = smov [#allocation13]   ;;  %s10557_s4 = sld [smem:[#allocation40_spill]] }
  0xdd   : > { %s427_s13 = sshll.u32 %s9581_s22, 4  ;;  %p10558_p7 = scmp.ne.s32.totalorder %s10541_s21, 0  ;;  %s428_s13 = int_to_ptr.vmem [resolvable:$true] %s427_s13 }
  0xe2   : > { %s9278_s15 = scalar_lea.hbm %s10557_s4, 128 }
  0xe3   : > { %p9279_p5 = scmp.ne.s32.totalorder %s10557_s4, %s9278_s15  ;;  %p9285_p10 = scmp.lt.u32.totalorder %s9278_s15, %s10557_s4 }
  0xe5   : > { %p9281_p4 = pnand %p9279_p5, %p10558_p7 }
  0xe7   : > { %p9282_p6 = pneg %p9281_p4 }
  0xe9   : > { %p9287_p13 = pnand %p9285_p10, %p9282_p6 }
  0xeb   : > { %9290 = shalt.err (!%p9287_p13)
}
  0xec   : > { %s9291_s1 = scalar_lea.vmem %s405_s20, 128  ;;  %p9299_p12 = scmp.lt.s32.totalorder %s405_s20, %s405_s20 }
  0xed   : > { %p9292_p8 = scmp.ne.s32.totalorder %s405_s20, %s9291_s1  ;;  %p9300_p0 = scmp.lt.s32.totalorder %s9291_s1, %s9291_s1 }
  0xef   : > { %p9294_p9 = pnand %p9292_p8, %p10558_p7  ;;  %p9301_p2 = por %p9300_p0, %p9299_p12 }
  0xf1   : > { %p9295_p1 = pneg %p9294_p9 }
  0xf3   : > { %p9302_p3 = pnand %p9301_p2, %p9295_p1 }
  0xf5   : > { %9305 = shalt.err (!%p9302_p3)
}
  0xf6   : > { %p10559_p5 = scmp.ne.s32.totalorder %s10539_s23, 0  ;;  %s10560_s6 = sld [smem:[#allocation42_spill]] }
  0xf8   : > { %8415 = dma.hbm_to_vmem [thread:$0]  (!%p10559_p5), %s10557_s4, 128, %s405_s20, [#allocation9]  }
  0xfc   : > { %s9306_s18 = scalar_lea.hbm %s10560_s6, 32768 }
  0xfd   : > { %p9307_p4 = scmp.ne.s32.totalorder %s10560_s6, %s9306_s18  ;;  %p9313_p3 = scmp.lt.u32.totalorder %s9306_s18, %s10560_s6 }
  0xff   : > { %p9309_p6 = pnand %p9307_p4, %p10558_p7 }
 0x101   : > { %p9310_p10 = pneg %p9309_p6 }
 0x103   : > { %p9315_p13 = pnand %p9313_p3, %p9310_p10 }
 0x105   : > { %9318 = shalt.err (!%p9315_p13)
}
 0x106   : > { %s9319_s3 = scalar_lea.vmem %s428_s13, 32768  ;;  %p9327_p12 = scmp.lt.s32.totalorder %s428_s13, %s428_s13 }
 0x107   : > { %p9320_p8 = scmp.ne.s32.totalorder %s428_s13, %s9319_s3  ;;  %p9328_p0 = scmp.lt.s32.totalorder %s9319_s3, %s9319_s3 }
 0x109   : > { %p9322_p9 = pnand %p9320_p8, %p10558_p7  ;;  %p9329_p2 = por %p9328_p0, %p9327_p12 }
 0x10b   : > { %p9323_p1 = pneg %p9322_p9 }
 0x10d   : > { %p9330_p11 = pnand %p9329_p2, %p9323_p1 }
 0x10f   : > { %9333 = shalt.err (!%p9330_p11)
}
 0x110   : > { %s10561_s20 = smov 16   ;;  %s10562_s28 = smov 256  }
 0x111   : > { %8421 = dma.hbm_to_vmem [thread:$0]  (!%p10559_p5), %s10560_s6, 32768, %s428_s13, [#allocation12], %s10562_s28, %s10562_s28, %s10561_s20  }
 0x112   : > { %s9582_s0 = smov [#allocation16]   ;;  %s10563_s8 = sld [smem:[#allocation44_spill]] }
 0x113   : > { %s451_s15 = sshll.u32 %s9582_s0, 4  ;;  %s452_s15 = int_to_ptr.vmem [resolvable:$true] %s451_s15 }
 0x118   : > { %s9334_s7 = scalar_lea.hbm %s10563_s8, 8192 }
 0x119   : > { %p9335_p11 = scmp.ne.s32.totalorder %s10563_s8, %s9334_s7  ;;  %p9341_p10 = scmp.lt.u32.totalorder %s9334_s7, %s10563_s8 }
 0x11b   : > { %p9337_p4 = pnand %p9335_p11, %p10558_p7 }
 0x11d   : > { %p9338_p6 = pneg %p9337_p4 }
 0x11f   : > { %p9343_p3 = pnand %p9341_p10, %p9338_p6 }
 0x121   : > { %9346 = shalt.err (!%p9343_p3)
}
 0x122   : > { %s9347_s13 = scalar_lea.vmem %s452_s15, 8192  ;;  %p9355_p1 = scmp.lt.s32.totalorder %s452_s15, %s452_s15 }
 0x123   : > { %p9348_p13 = scmp.ne.s32.totalorder %s452_s15, %s9347_s13  ;;  %p9356_p12 = scmp.lt.s32.totalorder %s9347_s13, %s9347_s13 }
 0x125   : > { %p9350_p8 = pnand %p9348_p13, %p10558_p7  ;;  %p9357_p0 = por %p9356_p12, %p9355_p1 }
 0x127   : > { %p9351_p9 = pneg %p9350_p8 }
 0x129   : > { %p9358_p2 = pnand %p9357_p0, %p9351_p9 }
 0x12b   : > { %9361 = shalt.err (!%p9358_p2)
}
 0x12c   : > { %s9583_s20 = smov 128   ;;  %s9584_s28 = smov 8  }
 0x12d   : > { %8427 = dma.hbm_to_vmem [thread:$0]  (!%p10559_p5), %s10563_s8, 8192, %s452_s15, [#allocation15], %s9583_s20, %s9583_s20, %s9584_s28  }
 0x12e   : > { %s9585_s0 = smov [#allocation19]   ;;  %s10564_s25 = sld [smem:[#allocation46_spill]] }
 0x12f   : > { %s475_s17 = sshll.u32 %s9585_s0, 4  ;;  %s476_s17 = int_to_ptr.vmem [resolvable:$true] %s475_s17 }
 0x134   : > { %s9362_s10 = scalar_lea.hbm %s10564_s25, 2048 }
 0x135   : > { %p9363_p11 = scmp.ne.s32.totalorder %s10564_s25, %s9362_s10  ;;  %p9369_p10 = scmp.lt.u32.totalorder %s9362_s10, %s10564_s25 }
 0x137   : > { %p9365_p4 = pnand %p9363_p11, %p10558_p7 }
 0x139   : > { %p9366_p6 = pneg %p9365_p4 }
 0x13b   : > { %p9371_p3 = pnand %p9369_p10, %p9366_p6 }
 0x13d   : > { %9374 = shalt.err (!%p9371_p3)
}
 0x13e   : > { %s9375_s15 = scalar_lea.vmem %s476_s17, 2048  ;;  %p9383_p1 = scmp.lt.s32.totalorder %s476_s17, %s476_s17 }
 0x13f   : > { %p9376_p13 = scmp.ne.s32.totalorder %s476_s17, %s9375_s15  ;;  %p9384_p12 = scmp.lt.s32.totalorder %s9375_s15, %s9375_s15 }
 0x141   : > { %p9378_p8 = pnand %p9376_p13, %p10558_p7  ;;  %p9385_p0 = por %p9384_p12, %p9383_p1 }
 0x143   : > { %p9379_p9 = pneg %p9378_p8 }
 0x145   : > { %p9386_p2 = pnand %p9385_p0, %p9379_p9 }
 0x147   : > { %9389 = shalt.err (!%p9386_p2)
}
 0x148   : > { %s9586_s20 = smov 64   ;;  %s9587_s28 = smov 4  }
 0x149   : > { %8433 = dma.hbm_to_vmem [thread:$0]  (!%p10559_p5), %s10564_s25, 2048, %s476_s17, [#allocation18], %s9586_s20, %s9586_s20, %s9587_s28  }
 0x14a   : > { %s9588_s11 = smov [#allocation22]   ;;  %s8358_s18 = smul.u32 24, %s9852_s14 }
 0x14b   : > { %s503_s0 = sshll.u32 %s9588_s11, 4  ;;  %s10565_s22 = sld [smem:[#allocation49_spill]]  ;;  %s504_s0 = int_to_ptr.vmem [resolvable:$true] %s503_s0 }
 0x151   : > { %s9390_s3 = scalar_lea.hbm %s10565_s22, 16 }
 0x152   : > { %p9391_p11 = scmp.ne.s32.totalorder %s10565_s22, %s9390_s3  ;;  %p9397_p10 = scmp.lt.u32.totalorder %s9390_s3, %s10565_s22 }
 0x154   : > { %p9393_p4 = pnand %p9391_p11, %p10558_p7 }
 0x156   : > { %p9394_p6 = pneg %p9393_p4 }
 0x158   : > { %p9399_p3 = pnand %p9397_p10, %p9394_p6 }
 0x15a   : > { %9402 = shalt.err (!%p9399_p3)
}
 0x15b   : > { %s9403_s17 = scalar_lea.vmem %s504_s0, 16  ;;  %s9410_s20 = scalar_lea.vmem %s504_s0, 32 }
 0x15c   : > { %p9404_p13 = scmp.ne.s32.totalorder %s504_s0, %s9403_s17  ;;  %p9411_p1 = scmp.lt.s32.totalorder %s504_s0, %s504_s0 }
 0x15d   : > { %p9412_p12 = scmp.lt.s32.totalorder %s9410_s20, %s9403_s17 }
 0x15e   : > { %p9406_p8 = pnand %p9404_p13, %p10558_p7 }
 0x15f   : > { %p9413_p0 = por %p9412_p12, %p9411_p1 }
 0x160   : > { %p9407_p9 = pneg %p9406_p8 }
 0x162   : > { %p9414_p2 = pnand %p9413_p0, %p9407_p9 }
 0x164   : > { %9417 = shalt.err (!%p9414_p2)
}
 0x165   : > { %8439 = dma.hbm_to_vmem [thread:$0]  (!%p10559_p5), %s10565_s22, 16, %s504_s0, [#allocation21]  }
 0x166   : > { %s8359_s6 = smul.u32 384, %s9568_s16  ;;  %s518_s8 = scalar_lea.vmem [#allocation2], %s8358_s18 }
 0x167   : > { %s526_s21 = sshll.u32 %s518_s8, 4  ;;  %s10566_s1 = sshll.u32 %s9852_s14, 2  ;;  %s527_s21 = int_to_ptr.vmem [resolvable:$true] %s526_s21 }
 0x168   : > { %s10010_s11 = scalar_lea.vmem [#allocation7], %s10566_s1  ;;  %s10567_s13 = sld [smem:[#allocation37_spill]] }
 0x169   : > { %s562_s7 = sshll.u32 %s10010_s11, 4  ;;  %s515_s15 = scalar_lea.sflag [#allocation3], %s9852_s14  ;;  %s563_s7 = int_to_ptr.vmem [resolvable:$true] %s562_s7 }
 0x16a   : > { %p10568_p5 = scmp.ne.s32.totalorder %s10555_s9, 0 }
 0x16e   : > { %s10016_s23 = scalar_lea.hbm %s10567_s13, %s8359_s6  ;;  %s9423_s20 = scalar_lea.hbm %s10567_s13, 1536 }
 0x16f   : > { %s9418_s0 = scalar_lea.hbm %s10016_s23, 384  ;;  %p9424_p6 = scmp.lt.u32.totalorder %s10016_s23, %s10567_s13 }
 0x170   : > { %p9419_p7 = scmp.ne.s32.totalorder %s10016_s23, %s9418_s0  ;;  %p9425_p10 = scmp.lt.u32.totalorder %s9423_s20, %s9418_s0 }
 0x171   : > { %p9427_p13 = scmp.lt.u32.totalorder %s9418_s0, %s10016_s23 }
 0x172   : > { %p9421_p11 = pnand %p9419_p7, %p10568_p5  ;;  %p9426_p3 = por %p9425_p10, %p9424_p6 }
 0x174   : > { %p9422_p4 = pneg %p9421_p11  ;;  %p9428_p8 = por %p9427_p13, %p9426_p3 }
 0x176   : > { %p9429_p9 = pnand %p9428_p8, %p9422_p4 }
 0x178   : > { %9432 = shalt.err (!%p9429_p9)
}
 0x179   : > { %s9433_s14 = scalar_lea.vmem %s527_s21, 384  ;;  %s9589_s6 = smov [#allocation2]  }
 0x17a   : > { %p9434_p1 = scmp.ne.s32.totalorder %s527_s21, %s9433_s14  ;;  %s9438_s8 = sshll.u32 %s9589_s6, 4  ;;  %s9439_s8 = int_to_ptr.vmem [resolvable:$false] %s9438_s8 }
 0x17b   : > { %s9440_s1 = scalar_lea.vmem %s9439_s8, 768  ;;  %p9441_p2 = scmp.lt.s32.totalorder %s527_s21, %s9439_s8 }
 0x17c   : > { %p9436_p12 = pnand %p9434_p1, %p10568_p5  ;;  %p9442_p7 = scmp.lt.s32.totalorder %s9440_s1, %s9433_s14 }
 0x17e   : > { %p9437_p0 = pneg %p9436_p12  ;;  %p9443_p11 = por %p9442_p7, %p9441_p2 }
 0x180   : > { %p9444_p6 = pnand %p9443_p11, %p9437_p0 }
 0x182   : > { %9447 = shalt.err (!%p9444_p6)
}
 0x183   : > { %p10569_p10 = scmp.ne.s32.totalorder %s10553_s26, 0  ;;  %s9448_s10 = scalar_lea.hbm %s9911_s12, 64 }
 0x184   : > { %p9449_p4 = scmp.ne.s32.totalorder %s9911_s12, %s9448_s10  ;;  %s9453_s18 = scalar_lea.hbm %s10483_s2, 256 }
 0x185   : > { %8443 = dma.hbm_to_vmem [thread:$0]  (!%p10569_p10), %s10016_s23, 384, %s527_s21, %s515_s15  }
 0x186   : > { %p9451_p3 = pnand %p9449_p4, %p10568_p5  ;;  %p9454_p8 = scmp.lt.u32.totalorder %s9911_s12, %s10483_s2 }
 0x187   : > { %p9455_p9 = scmp.lt.u32.totalorder %s9453_s18, %s9448_s10  ;;  %p9457_p12 = scmp.lt.u32.totalorder %s9448_s10, %s9911_s12 }
 0x188   : > { %p9452_p13 = pneg %p9451_p3 }
 0x189   : > { %p9456_p1 = por %p9455_p9, %p9454_p8 }
 0x18b   : > { %p9458_p0 = por %p9457_p12, %p9456_p1 }
 0x18d   : > { %p9459_p2 = pnand %p9458_p0, %p9452_p13 }
 0x18f   : > { %9462 = shalt.err (!%p9459_p2)
}
 0x190   : > { %s9463_s21 = scalar_lea.vmem %s563_s7, 64  ;;  %s9590_s11 = smov [#allocation7]  }
 0x191   : > { %p9464_p7 = scmp.ne.s32.totalorder %s563_s7, %s9463_s21  ;;  %s9468_s23 = sshll.u32 %s9590_s11, 4  ;;  %s9469_s23 = int_to_ptr.vmem [resolvable:$false] %s9468_s23 }
 0x192   : > { %s9470_s15 = scalar_lea.vmem %s9469_s23, 128  ;;  %p9471_p4 = scmp.lt.s32.totalorder %s563_s7, %s9469_s23 }
 0x193   : > { %p9466_p11 = pnand %p9464_p7, %p10568_p5  ;;  %p9472_p3 = scmp.lt.s32.totalorder %s9470_s15, %s9463_s21 }
 0x195   : > { %p9467_p6 = pneg %p9466_p11  ;;  %p9473_p10 = por %p9472_p3, %p9471_p4 }
 0x197   : > { %p9474_p8 = pnand %p9473_p10, %p9467_p6 }
 0x199   : > { %9477 = shalt.err (!%p9474_p8)
}
 0x19a   : > { %p10570_p9 = scmp.ne.s32.totalorder %s10553_s26, 0  ;;  %s10571_s28 = sld [smem:[#allocation33_spill]] }
 0x19c   : > { %8449 = dma.hbm_to_vmem [thread:$0]  (!%p10570_p9), %s9911_s12, 64, %s563_s7, %s9876_s5  }
 0x1a0   : > { %p10572_p13 = scmp.ne.s32.totalorder %s10571_s28, 0 }
 0x1a1   : > { %s10059_s9 = sand.u32 (!%p10572_p13), 1, %s9560_s30   ;;  %p10573_p5 = scmp.ne.s32.totalorder (!%p10572_p13), %s10549_s27, 0 }
 0x1a2   : > { %571 = sbr.rel (%p10572_p13) target bundleno = 3044 (0xbe4), region = 76  ;;  %s574_s14 = scalar_lea.sflag (!%p10572_p13), [#allocation3], %s10059_s9 }
 0x1a3   : > { %s8360_s4 = smul.u32 (!%p10572_p13), 24, %s10059_s9 }
 0x1a5   : > { %s10063_s6 = scalar_lea.vmem (!%p10572_p13), [#allocation2], %s8360_s4 }
 0x1a9   : > { %9523 = dma.done.wait (%p10573_p5), %s574_s14, 384  }
 0x1aa   : > { %9525 = vsyncadd (%p10573_p5), %s574_s14, 4294966912  ;;  %s582_s5 = sand.u32 1, %s9691_s19   ;;  %s7333_s26 = sshll.u32 %s10059_s9, 2 }
 0x1ab   : > { %s583_s12 = scalar_lea.sflag [#allocation6], %s582_s5  ;;  %s10071_s7 = scalar_lea.vmem [#allocation5], %s7333_s26 }
 0x1ac   : > { %9527 = dma.done.wait (%p10573_p5), %s583_s12, 128  }
 0x1ad   : > { %9529 = vsyncadd (%p10573_p5), %s583_s12, 4294967168  ;;  %s10077_s8 = scalar_lea.vmem [#allocation7], %s7333_s26  ;;  %p10574_p10 = scmp.eq.s32.totalorder %s9691_s19, 0 }
 0x1af   : > { %9531 = dma.done.wait (%p10574_p10), [#allocation9], 49280   ;;  %p10575_p1 = pmov %p10574_p10 }
 0x1b1   : > { %9533 = vsyncadd (%p10575_p1), [#allocation9], 4294918016  ;;  %p10576_p12 = pmov %p10575_p1 }
 0x1b2   : > { %p10577_p0 = pmov %p10575_p1 }
 0x1b3   : > { %9535 = dma.done.wait (%p10576_p12), [#allocation12], 34048  }
 0x1b4   : > { %9537 = vsyncadd (%p10577_p0), [#allocation12], 4294933248  ;;  %p10578_p2 = pmov %p10577_p0 }
 0x1b5   : > { %p10579_p7 = pmov %p10577_p0 }
 0x1b6   : > { %9539 = dma.done.wait (%p10578_p2), [#allocation15], 8256  }
 0x1b7   : > { %9541 = vsyncadd (%p10579_p7), [#allocation15], 4294959040  ;;  %p10580_p11 = pmov %p10577_p0 }
 0x1b8   : > { %p10581_p6 = pmov %p10577_p0 }
 0x1b9   : > { %9543 = dma.done.wait (%p10580_p11), [#allocation18], 2080  }
 0x1ba   : > { %9545 = vsyncadd (%p10581_p6), [#allocation18], 4294965216  ;;  %p10582_p4 = pmov %p10577_p0 }
 0x1bb   : > { %p10583_p3 = pmov %p10577_p0 }
 0x1bc   : > { %9547 = dma.done.wait (%p10582_p4), [#allocation21], 32  }
 0x1bd   : > { %9549 = vsyncadd (%p10583_p3), [#allocation21], 4294967264  ;;  %v694_v0 = vld [vmem:[#allocation8] sm:$0xff]  ;;  %v695_v2 = vld [vmem:[#allocation8 + $0x8] sm:$0xff]  ;;  %vm5491_vm0 = vcmask 1041408   ;;  %vm5487_vm1 = vcmask 293888  }
 0x1be   : > { %v698_v1 = vld [vmem:[#allocation8 + $0x20] sm:$0xff]  ;;  %v699_v4 = vld [vmem:[#allocation8 + $0x28] sm:$0xff]  ;;  %vm5616_vm2 = vcmask 1043456   ;;  %vm5612_vm3 = vcmask 64512   ;;  %vm9593_vm4 = vmmov 0   ;;  %s10584_s10 = sld [smem:[#allocation48_spill]] }
 0x1bf   : > { %v7353_v3 = vcombine.high %v694_v0, %v698_v1  ;;  %v7352_v5 = vcombine.low %v694_v0, %v698_v1  ;;  %v702_v6 = vld [vmem:[#allocation8 + $0x40] sm:$0xff]  ;;  %v7355_v8 = vcombine.high %v695_v2, %v699_v4  ;;  %v7354_v9 = vcombine.low %v695_v2, %v699_v4  ;;  %v703_v11 = vld [vmem:[#allocation8 + $0x48] sm:$0xff]  ;;  %s7345_s4 = sshll.u32 %s10059_s9, 3  ;;  %s8154_s14 = sshll.u32 %s9691_s19, 7 }
 0x1c0   : > { %v706_v7 = vld [vmem:[#allocation8 + $0x60] sm:$0xff]  ;;  %v707_v12 = vld [vmem:[#allocation8 + $0x68] sm:$0xff]  ;;  %vm7079_vm5 = vcmask 146432   ;;  %s7093_s27 = scalar_lea.sflag [#allocation4], %s10059_s9  ;;  %p10586_p9 = scmp.ne.s32.totalorder %s10550_s24, 0 }
 0x1c1   : > { %v7361_v10 = vcombine.high %v702_v6, %v706_v7  ;;  %v710_v13 = vld [vmem:[#allocation8 + $0x80] sm:$0xff]  ;;  %3061 = vmatprep.subr.bf16.mxu0 %v7353_v3  ;;  %v7363_v14 = vcombine.high %v703_v11, %v707_v12  ;;  %v711_v16 = vld [vmem:[#allocation8 + $0x88] sm:$0xff]  ;;  %3184 = vmatprep.subr.bf16.mxu1 %v7355_v8  ;;  %v7360_v18 = vcombine.low %v702_v6, %v706_v7  ;;  %s9594_s19 = smov [#allocation23]  }
 0x1c2   : > { %v714_v15 = vld [vmem:[#allocation8 + $0xa0] sm:$0xff]  ;;  %v715_v17 = vld [vmem:[#allocation8 + $0xa8] sm:$0xff]  ;;  %3062 = vmatpush1.bf16.msra.mxu0 %v7352_v5  ;;  %3185 = vmatpush1.bf16.msra.mxu1 %v7354_v9  ;;  %v7362_v19 = vcombine.low %v703_v11, %v707_v12  ;;  %s9482_s3 = sshll.u32 %s9594_s19, 4  ;;  %s9483_s3 = int_to_ptr.vmem [resolvable:$false] %s9482_s3 }
 0x1c3   : > { %3063 = vmatprep.subr.bf16.mxu0 %v7361_v10  ;;  %v7369_v20 = vcombine.high %v710_v13, %v714_v15  ;;  %3186 = vmatprep.subr.bf16.mxu1 %v7363_v14  ;;  %v7371_v21 = vcombine.high %v711_v16, %v715_v17  ;;  %v718_v22 = vld [vmem:[#allocation8 + $0xc0] sm:$0xff]  ;;  %v719_v24 = vld [vmem:[#allocation8 + $0xc8] sm:$0xff]  ;;  %v7368_v26 = vcombine.low %v710_v13, %v714_v15  ;;  %s9484_s0 = scalar_lea.vmem %s9483_s3, 256 }
 0x1c4   : > { %v722_v23 = vld [vmem:[#allocation8 + $0xe0] sm:$0xff]  ;;  %v723_v25 = vld [vmem:[#allocation8 + $0xe8] sm:$0xff]  ;;  %v7370_v27 = vcombine.low %v711_v16, %v715_v17 }
 0x1c5   : > { %v7377_v28 = vcombine.high %v718_v22, %v722_v23  ;;  %v7379_v29 = vcombine.high %v719_v24, %v723_v25  ;;  %v726_v30 = vld [vmem:[#allocation8 + $0x100] sm:$0xff]  ;;  %v727_v32 = vld [vmem:[#allocation8 + $0x108] sm:$0xff]  ;;  %v7376_v34 = vcombine.low %v718_v22, %v722_v23  ;;  %v7378_v35 = vcombine.low %v719_v24, %v723_v25 }
 0x1c6   : > { %3064 = vmatpush1.bf16.msra.mxu0 %v7360_v18  ;;  %3187 = vmatpush1.bf16.msra.mxu1 %v7362_v19  ;;  %v730_v31 = vld [vmem:[#allocation8 + $0x120] sm:$0xff]  ;;  %v731_v33 = vld [vmem:[#allocation8 + $0x128] sm:$0xff] }
 0x1c7   : > { %3065 = vmatprep.subr.bf16.mxu0 %v7369_v20  ;;  %3188 = vmatprep.subr.bf16.mxu1 %v7371_v21  ;;  %v7385_v36 = vcombine.high %v726_v30, %v730_v31  ;;  %v7387_v37 = vcombine.high %v727_v32, %v731_v33  ;;  %v734_v38 = vld [vmem:[#allocation8 + $0x140] sm:$0xff]  ;;  %v735_v40 = vld [vmem:[#allocation8 + $0x148] sm:$0xff]  ;;  %v7384_v42 = vcombine.low %v726_v30, %v730_v31 }
 0x1c8   : > { %v738_v39 = vld [vmem:[#allocation8 + $0x160] sm:$0xff]  ;;  %v739_v41 = vld [vmem:[#allocation8 + $0x168] sm:$0xff]  ;;  %v7386_v43 = vcombine.low %v727_v32, %v731_v33 }
 0x1c9   : > { %v7393_v44 = vcombine.high %v734_v38, %v738_v39  ;;  %v7395_v45 = vcombine.high %v735_v40, %v739_v41  ;;  %v742_v46 = vld [vmem:[#allocation8 + $0x180] sm:$0xff]  ;;  %v743_v48 = vld [vmem:[#allocation8 + $0x188] sm:$0xff]  ;;  %v7392_v50 = vcombine.low %v734_v38, %v738_v39  ;;  %v7394_v51 = vcombine.low %v735_v40, %v739_v41 }
 0x1ca   : > { %3066 = vmatpush1.bf16.msra.mxu0 %v7368_v26  ;;  %3189 = vmatpush1.bf16.msra.mxu1 %v7370_v27  ;;  %v746_v47 = vld [vmem:[#allocation8 + $0x1a0] sm:$0xff]  ;;  %v747_v49 = vld [vmem:[#allocation8 + $0x1a8] sm:$0xff] }
 0x1cb   : > { %3067 = vmatprep.subr.bf16.mxu0 %v7377_v28  ;;  %3190 = vmatprep.subr.bf16.mxu1 %v7379_v29  ;;  %v7401_v52 = vcombine.high %v742_v46, %v746_v47  ;;  %v10100_v53 = vld [vmem:[%s10063_s6] sm:$0xff]  ;;  %v7403_v54 = vcombine.high %v743_v48, %v747_v49  ;;  %v751_v58 = vld [vmem:[#allocation8 + $0x1c8] sm:$0xff]  ;;  %v7400_v60 = vcombine.low %v742_v46, %v746_v47 }
 0x1cc   : > { %v750_v55 = vld [vmem:[#allocation8 + $0x1c0] sm:$0xff]  ;;  %v10104_v57 = vcombine.high %v10100_v53, %v10100_v53  ;;  %v755_v59 = vld [vmem:[#allocation8 + $0x1e8] sm:$0xff]  ;;  %v7402_v61 = vcombine.low %v743_v48, %v747_v49 }
 0x1cd   : > { %v754_v56 = vld [vmem:[#allocation8 + $0x1e0] sm:$0xff]  ;;  %v7411_v63 = vcombine.high %v751_v58, %v755_v59  ;;  %v759_v2 = vld [vmem:[#allocation8 + $0x208] sm:$0xff]  ;;  %v7410_v5 = vcombine.low %v751_v58, %v755_v59 }
 0x1ce   : > { %3068 = vmatpush1.bf16.msra.mxu0 %v7376_v34  ;;  %3191 = vmatpush1.bf16.msra.mxu1 %v7378_v35  ;;  %v7409_v62 = vcombine.high %v750_v55, %v754_v56  ;;  %v758_v0 = vld [vmem:[#allocation8 + $0x200] sm:$0xff]  ;;  %v763_v3 = vld [vmem:[#allocation8 + $0x228] sm:$0xff]  ;;  %v7408_v4 = vcombine.low %v750_v55, %v754_v56 }
 0x1cf   : > { %3069 = vmatprep.subr.bf16.mxu0 %v7385_v36  ;;  %3192 = vmatprep.subr.bf16.mxu1 %v7387_v37  ;;  %v762_v1 = vld [vmem:[#allocation8 + $0x220] sm:$0xff]  ;;  %v7419_v7 = vcombine.high %v759_v2, %v763_v3  ;;  %v767_v10 = vld [vmem:[#allocation8 + $0x248] sm:$0xff]  ;;  %v7418_v13 = vcombine.low %v759_v2, %v763_v3 }
 0x1d0   : > { %3093 = vmatprep.mubr.bf16.mxu0 %v10104_v57  ;;  %3216 = vmatprep.mubr.bf16.mxu1 %v10104_v57  ;;  %v7417_v6 = vcombine.high %v758_v0, %v762_v1  ;;  %v766_v8 = vld [vmem:[#allocation8 + $0x240] sm:$0xff]  ;;  %v771_v11 = vld [vmem:[#allocation8 + $0x268] sm:$0xff]  ;;  %v7416_v12 = vcombine.low %v758_v0, %v762_v1 }
 0x1d1   : > { %v770_v9 = vld [vmem:[#allocation8 + $0x260] sm:$0xff]  ;;  %v7427_v15 = vcombine.high %v767_v10, %v771_v11  ;;  %v775_v18 = vld [vmem:[#allocation8 + $0x288] sm:$0xff]  ;;  %v7426_v21 = vcombine.low %v767_v10, %v771_v11 }
 0x1d2   : > { %3070 = vmatpush1.bf16.msra.mxu0 %v7384_v42  ;;  %3193 = vmatpush1.bf16.msra.mxu1 %v7386_v43  ;;  %v7425_v14 = vcombine.high %v766_v8, %v770_v9  ;;  %v774_v16 = vld [vmem:[#allocation8 + $0x280] sm:$0xff]  ;;  %v779_v19 = vld [vmem:[#allocation8 + $0x2a8] sm:$0xff]  ;;  %v7424_v20 = vcombine.low %v766_v8, %v770_v9 }
 0x1d3   : > { %3071 = vmatprep.subr.bf16.mxu0 %v7393_v44  ;;  %3194 = vmatprep.subr.bf16.mxu1 %v7395_v45  ;;  %v778_v17 = vld [vmem:[#allocation8 + $0x2a0] sm:$0xff]  ;;  %v7435_v23 = vcombine.high %v775_v18, %v779_v19  ;;  %v783_v26 = vld [vmem:[#allocation8 + $0x2c8] sm:$0xff]  ;;  %v7434_v29 = vcombine.low %v775_v18, %v779_v19 }
 0x1d4   : > { %v7433_v22 = vcombine.high %v774_v16, %v778_v17  ;;  %v782_v24 = vld [vmem:[#allocation8 + $0x2c0] sm:$0xff]  ;;  %v787_v27 = vld [vmem:[#allocation8 + $0x2e8] sm:$0xff]  ;;  %v7432_v28 = vcombine.low %v774_v16, %v778_v17 }
 0x1d5   : > { %v786_v25 = vld [vmem:[#allocation8 + $0x2e0] sm:$0xff]  ;;  %v7443_v31 = vcombine.high %v783_v26, %v787_v27  ;;  %v791_v34 = vld [vmem:[#allocation8 + $0x308] sm:$0xff]  ;;  %v7442_v37 = vcombine.low %v783_v26, %v787_v27 }
 0x1d6   : > { %3072 = vmatpush1.bf16.msra.mxu0 %v7392_v50  ;;  %3195 = vmatpush1.bf16.msra.mxu1 %v7394_v51  ;;  %v7441_v30 = vcombine.high %v782_v24, %v786_v25  ;;  %v790_v32 = vld [vmem:[#allocation8 + $0x300] sm:$0xff]  ;;  %v795_v35 = vld [vmem:[#allocation8 + $0x328] sm:$0xff]  ;;  %v7440_v36 = vcombine.low %v782_v24, %v786_v25 }
 0x1d7   : > { %3073 = vmatprep.subr.bf16.mxu0 %v7401_v52  ;;  %3196 = vmatprep.subr.bf16.mxu1 %v7403_v54  ;;  %v794_v33 = vld [vmem:[#allocation8 + $0x320] sm:$0xff]  ;;  %v7451_v39 = vcombine.high %v791_v34, %v795_v35  ;;  %v799_v42 = vld [vmem:[#allocation8 + $0x348] sm:$0xff]  ;;  %v7450_v45 = vcombine.low %v791_v34, %v795_v35 }
 0x1d8   : > { %v7449_v38 = vcombine.high %v790_v32, %v794_v33  ;;  %v798_v40 = vld [vmem:[#allocation8 + $0x340] sm:$0xff]  ;;  %v803_v43 = vld [vmem:[#allocation8 + $0x368] sm:$0xff]  ;;  %v7448_v44 = vcombine.low %v790_v32, %v794_v33 }
 0x1d9   : > { %v802_v41 = vld [vmem:[#allocation8 + $0x360] sm:$0xff]  ;;  %v7459_v47 = vcombine.high %v799_v42, %v803_v43  ;;  %v807_v50 = vld [vmem:[#allocation8 + $0x388] sm:$0xff]  ;;  %v7458_v54 = vcombine.low %v799_v42, %v803_v43 }
 0x1da   : > { %3074 = vmatpush1.bf16.msra.mxu0 %v7400_v60  ;;  %3197 = vmatpush1.bf16.msra.mxu1 %v7402_v61  ;;  %v7457_v46 = vcombine.high %v798_v40, %v802_v41  ;;  %v806_v48 = vld [vmem:[#allocation8 + $0x380] sm:$0xff]  ;;  %v811_v51 = vld [vmem:[#allocation8 + $0x3a8] sm:$0xff]  ;;  %v7456_v52 = vcombine.low %v798_v40, %v802_v41 }
 0x1db   : > { %3075 = vmatprep.subr.bf16.mxu0 %v7409_v62  ;;  %3198 = vmatprep.subr.bf16.mxu1 %v7411_v63  ;;  %v810_v49 = vld [vmem:[#allocation8 + $0x3a0] sm:$0xff]  ;;  %v7467_v56 = vcombine.high %v807_v50, %v811_v51  ;;  %v815_v60 = vld [vmem:[#allocation8 + $0x3c8] sm:$0xff]  ;;  %v7466_v63 = vcombine.low %v807_v50, %v811_v51 }
 0x1dc   : > { %v7465_v55 = vcombine.high %v806_v48, %v810_v49  ;;  %v814_v58 = vld [vmem:[#allocation8 + $0x3c0] sm:$0xff]  ;;  %v819_v61 = vld [vmem:[#allocation8 + $0x3e8] sm:$0xff]  ;;  %v7464_v62 = vcombine.low %v806_v48, %v810_v49 }
 0x1dd   : > { %v818_v59 = vld [vmem:[#allocation8 + $0x3e0] sm:$0xff]  ;;  %v7475_v1 = vcombine.high %v815_v60, %v819_v61 }
 0x1de   : > { %3076 = vmatpush1.bf16.msra.mxu0 %v7408_v4  ;;  %3199 = vmatpush1.bf16.msra.mxu1 %v7410_v5  ;;  %v7473_v0 = vcombine.high %v814_v58, %v818_v59  ;;  %v822_v2 = vld [vmem:[#allocation8 + $0x400] sm:$0xff]  ;;  %v823_v4 = vld [vmem:[#allocation8 + $0x408] sm:$0xff] }
 0x1df   : > { %3077 = vmatprep.subr.bf16.mxu0 %v7417_v6  ;;  %3200 = vmatprep.subr.bf16.mxu1 %v7419_v7  ;;  %v826_v3 = vld [vmem:[#allocation8 + $0x420] sm:$0xff]  ;;  %v827_v5 = vld [vmem:[#allocation8 + $0x428] sm:$0xff]  ;;  %v7472_v6 = vcombine.low %v814_v58, %v818_v59  ;;  %v7474_v7 = vcombine.low %v815_v60, %v819_v61 }
 0x1e0   : > { %v7481_v8 = vcombine.high %v822_v2, %v826_v3  ;;  %v7483_v9 = vcombine.high %v823_v4, %v827_v5  ;;  %v830_v10 = vld [vmem:[#allocation8 + $0x440] sm:$0xff]  ;;  %v7480_v16 = vcombine.low %v822_v2, %v826_v3  ;;  %v7482_v17 = vcombine.low %v823_v4, %v827_v5 }
 0x1e1   : > { %v834_v11 = vld [vmem:[#allocation8 + $0x460] sm:$0xff] }
 0x1e2   : > { %3078 = vmatpush1.bf16.msra.mxu0 %v7416_v12  ;;  %3201 = vmatpush1.bf16.msra.mxu1 %v7418_v13  ;;  %v10110_v12 = vcombine.low %v10100_v53, %v10100_v53  ;;  %v831_v13 = vld [vmem:[#allocation8 + $0x448] sm:$0xff]  ;;  %v7489_v18 = vcombine.high %v830_v10, %v834_v11  ;;  %v838_v19 = vld [vmem:[#allocation8 + $0x480] sm:$0xff]  ;;  %v7488_v24 = vcombine.low %v830_v10, %v834_v11 }
 0x1e3   : > { %3079 = vmatprep.subr.bf16.mxu0 %v7425_v14  ;;  %3202 = vmatprep.subr.bf16.mxu1 %v7427_v15  ;;  %v835_v14 = vld [vmem:[#allocation8 + $0x468] sm:$0xff]  ;;  %v846_v27 = vld [vmem:[#allocation8 + $0x4c0] sm:$0xff] }
 0x1e4   : > { %v10113_v15 = vld [vmem:[%s10063_s6 + $0x8] sm:$0xff]  ;;  %v7490_v25 = vcombine.low %v831_v13, %v835_v14 }
 0x1e5   : > { %v10117_v53 = vcombine.high %v10113_v15, %v10113_v15  ;;  %v854_v35 = vld [vmem:[#allocation8 + $0x500] sm:$0xff] }
 0x1e6   : > { %3080 = vmatpush1.bf16.msra.mxu0 %v7424_v20  ;;  %3203 = vmatpush1.bf16.msra.mxu1 %v7426_v21  ;;  %v842_v20 = vld [vmem:[#allocation8 + $0x4a0] sm:$0xff]  ;;  %v839_v21 = vld [vmem:[#allocation8 + $0x488] sm:$0xff] }
 0x1e7   : > { %3081 = vmatprep.subr.bf16.mxu0 %v7433_v22  ;;  %3204 = vmatprep.subr.bf16.mxu1 %v7435_v23  ;;  %v7491_v22 = vcombine.high %v831_v13, %v835_v14  ;;  %v843_v23 = vld [vmem:[#allocation8 + $0x4a8] sm:$0xff]  ;;  %v7497_v26 = vcombine.high %v838_v19, %v842_v20  ;;  %v7496_v32 = vcombine.low %v838_v19, %v842_v20  ;;  %v862_v43 = vld [vmem:[#allocation8 + $0x540] sm:$0xff] }
 0x1e8   : > { %v7498_v33 = vcombine.low %v839_v21, %v843_v23  ;;  %v870_v51 = vld [vmem:[#allocation8 + $0x580] sm:$0xff]  ;;  %v899_v19 = vld [vmem:[#allocation8 + $0x668] sm:$0xff] }
 0x1e9   : > { %v878_v61 = vld [vmem:[#allocation8 + $0x5c0] sm:$0xff] }
 0x1ea   : > { %3082 = vmatpush1.bf16.msra.mxu0 %v7432_v28  ;;  %3205 = vmatpush1.bf16.msra.mxu1 %v7434_v29  ;;  %v850_v28 = vld [vmem:[#allocation8 + $0x4e0] sm:$0xff]  ;;  %v847_v29 = vld [vmem:[#allocation8 + $0x4c8] sm:$0xff] }
 0x1eb   : > { %3083 = vmatprep.subr.bf16.mxu0 %v7441_v30  ;;  %3206 = vmatprep.subr.bf16.mxu1 %v7443_v31  ;;  %v7499_v30 = vcombine.high %v839_v21, %v843_v23  ;;  %v851_v31 = vld [vmem:[#allocation8 + $0x4e8] sm:$0xff]  ;;  %v7505_v34 = vcombine.high %v846_v27, %v850_v28  ;;  %v7504_v40 = vcombine.low %v846_v27, %v850_v28  ;;  %v886_v5 = vld [vmem:[#allocation8 + $0x600] sm:$0xff] }
 0x1ec   : > { %v7506_v41 = vcombine.low %v847_v29, %v851_v31  ;;  %v894_v14 = vld [vmem:[#allocation8 + $0x640] sm:$0xff]  ;;  %v907_v27 = vld [vmem:[#allocation8 + $0x6a8] sm:$0xff] }
 0x1ed   : > { %v902_v23 = vld [vmem:[#allocation8 + $0x680] sm:$0xff] }
 0x1ee   : > { %3084 = vmatpush1.bf16.msra.mxu0 %v7440_v36  ;;  %3207 = vmatpush1.bf16.msra.mxu1 %v7442_v37  ;;  %v858_v36 = vld [vmem:[#allocation8 + $0x520] sm:$0xff]  ;;  %v855_v37 = vld [vmem:[#allocation8 + $0x508] sm:$0xff] }
 0x1ef   : > { %3085 = vmatprep.subr.bf16.mxu0 %v7449_v38  ;;  %3208 = vmatprep.subr.bf16.mxu1 %v7451_v39  ;;  %v7507_v38 = vcombine.high %v847_v29, %v851_v31  ;;  %v859_v39 = vld [vmem:[#allocation8 + $0x528] sm:$0xff]  ;;  %v7513_v42 = vcombine.high %v854_v35, %v858_v36  ;;  %v7512_v48 = vcombine.low %v854_v35, %v858_v36  ;;  %v910_v31 = vld [vmem:[#allocation8 + $0x6c0] sm:$0xff] }
 0x1f0   : > { %v7514_v49 = vcombine.low %v855_v37, %v859_v39  ;;  %v915_v35 = vld [vmem:[#allocation8 + $0x6e8] sm:$0xff] }
 0x1f2   : > { %3086 = vmatpush1.bf16.msra.mxu0 %v7448_v44  ;;  %3209 = vmatpush1.bf16.msra.mxu1 %v7450_v45  ;;  %v866_v44 = vld [vmem:[#allocation8 + $0x560] sm:$0xff]  ;;  %v863_v45 = vld [vmem:[#allocation8 + $0x548] sm:$0xff] }
 0x1f3   : > { %3087 = vmatprep.subr.bf16.mxu0 %v7457_v46  ;;  %3210 = vmatprep.subr.bf16.mxu1 %v7459_v47  ;;  %v7515_v46 = vcombine.high %v855_v37, %v859_v39  ;;  %v867_v47 = vld [vmem:[#allocation8 + $0x568] sm:$0xff]  ;;  %v7521_v50 = vcombine.high %v862_v43, %v866_v44  ;;  %v7520_v58 = vcombine.low %v862_v43, %v866_v44  ;;  %v918_v39 = vld [vmem:[#allocation8 + $0x700] sm:$0xff] }
 0x1f4   : > { %v7522_v59 = vcombine.low %v863_v45, %v867_v47  ;;  %v923_v43 = vld [vmem:[#allocation8 + $0x728] sm:$0xff] }
 0x1f6   : > { %3088 = vmatpush1.bf16.msra.mxu0 %v7456_v52  ;;  %3211 = vmatpush1.bf16.msra.mxu1 %v7458_v54  ;;  %v874_v52 = vld [vmem:[#allocation8 + $0x5a0] sm:$0xff]  ;;  %v871_v54 = vld [vmem:[#allocation8 + $0x588] sm:$0xff] }
 0x1f7   : > { %3089 = vmatprep.subr.bf16.mxu0 %v7465_v55  ;;  %3212 = vmatprep.subr.bf16.mxu1 %v7467_v56  ;;  %v7523_v55 = vcombine.high %v863_v45, %v867_v47  ;;  %v875_v56 = vld [vmem:[#allocation8 + $0x5a8] sm:$0xff]  ;;  %v7529_v60 = vcombine.high %v870_v51, %v874_v52  ;;  %v7528_v2 = vcombine.low %v870_v51, %v874_v52  ;;  %v926_v47 = vld [vmem:[#allocation8 + $0x740] sm:$0xff] }
 0x1f8   : > { %v7530_v3 = vcombine.low %v871_v54, %v875_v56  ;;  %v931_v51 = vld [vmem:[#allocation8 + $0x768] sm:$0xff] }
 0x1fa   : > { %3090 = vmatpush1.bf16.msra.mxu0 %v7464_v62  ;;  %3213 = vmatpush1.bf16.msra.mxu1 %v7466_v63  ;;  %v882_v62 = vld [vmem:[#allocation8 + $0x5e0] sm:$0xff]  ;;  %v879_v63 = vld [vmem:[#allocation8 + $0x5c8] sm:$0xff] }
 0x1fb   : > { %3091 = vmatprep.subr.bf16.mxu0 %v7473_v0  ;;  %3214 = vmatprep.subr.bf16.mxu1 %v7475_v1  ;;  %v7531_v0 = vcombine.high %v871_v54, %v875_v56  ;;  %v883_v1 = vld [vmem:[#allocation8 + $0x5e8] sm:$0xff]  ;;  %v7537_v4 = vcombine.high %v878_v61, %v882_v62  ;;  %v7536_v10 = vcombine.low %v878_v61, %v882_v62  ;;  %v934_v56 = vld [vmem:[#allocation8 + $0x780] sm:$0xff] }
 0x1fc   : > { %v7538_v11 = vcombine.low %v879_v63, %v883_v1  ;;  %v939_v61 = vld [vmem:[#allocation8 + $0x7a8] sm:$0xff] }
 0x1fe   : > { %3092 = vmatpush1.bf16.msra.mxu0 %v7472_v6  ;;  %3215 = vmatpush1.bf16.msra.mxu1 %v7474_v7  ;;  %v890_v6 = vld [vmem:[#allocation8 + $0x620] sm:$0xff]  ;;  %v887_v7 = vld [vmem:[#allocation8 + $0x608] sm:$0xff] }
 0x1ff   : > { %3102 = vmatprep.subr.bf16.mxu0 %v7481_v8  ;;  %3225 = vmatprep.subr.bf16.mxu1 %v7483_v9  ;;  %v7539_v8 = vcombine.high %v879_v63, %v883_v1  ;;  %v891_v9 = vld [vmem:[#allocation8 + $0x628] sm:$0xff]  ;;  %v7545_v13 = vcombine.high %v886_v5, %v890_v6  ;;  %v7544_v20 = vcombine.low %v886_v5, %v890_v6  ;;  %v942_v1 = vld [vmem:[#allocation8 + $0x7c0] sm:$0xff] }
 0x200   : > { %v7546_v21 = vcombine.low %v887_v7, %v891_v9  ;;  %v947_v5 = vld [vmem:[#allocation8 + $0x7e8] sm:$0xff] }
 0x201   : > { %3094 = vmatmul.mubr.bf16.vlgmr.msra.gmra.mrb[0].mxu0 %v10110_v12  ;;  %3217 = vmatmul.mubr.bf16.vlgmr.msra.gmra.mrb[0].mxu1 %v10110_v12 }
 0x202   : > { %3103 = vmatpush1.bf16.msra.mxu0 %v7480_v16  ;;  %3226 = vmatpush1.bf16.msra.mxu1 %v7482_v17  ;;  %v898_v16 = vld [vmem:[#allocation8 + $0x660] sm:$0xff]  ;;  %v895_v17 = vld [vmem:[#allocation8 + $0x648] sm:$0xff] }
 0x203   : > { %3104 = vmatprep.subr.bf16.mxu0 %v7489_v18  ;;  %3227 = vmatprep.subr.bf16.mxu1 %v7491_v22  ;;  %v7547_v18 = vcombine.high %v887_v7, %v891_v9  ;;  %v7553_v22 = vcombine.high %v894_v14, %v898_v16  ;;  %v7552_v28 = vcombine.low %v894_v14, %v898_v16  ;;  %v950_v9 = vld [vmem:[#allocation8 + $0x800] sm:$0xff]  ;;  %v955_v14 = vld [vmem:[#allocation8 + $0x828] sm:$0xff] }
 0x204   : > { %3134 = vmatprep.mubr.bf16.mxu0 %v10117_v53  ;;  %3257 = vmatprep.mubr.bf16.mxu1 %v10117_v53  ;;  %v7554_v29 = vcombine.low %v895_v17, %v899_v19 }
 0x206   : > { %3105 = vmatpush1.bf16.msra.mxu0 %v7488_v24  ;;  %3228 = vmatpush1.bf16.msra.mxu1 %v7490_v25  ;;  %v906_v24 = vld [vmem:[#allocation8 + $0x6a0] sm:$0xff]  ;;  %v903_v25 = vld [vmem:[#allocation8 + $0x688] sm:$0xff] }
 0x207   : > { %3106 = vmatprep.subr.bf16.mxu0 %v7497_v26  ;;  %3229 = vmatprep.subr.bf16.mxu1 %v7499_v30  ;;  %v7555_v26 = vcombine.high %v895_v17, %v899_v19  ;;  %v7561_v30 = vcombine.high %v902_v23, %v906_v24  ;;  %v7560_v36 = vcombine.low %v902_v23, %v906_v24  ;;  %v958_v17 = vld [vmem:[#allocation8 + $0x840] sm:$0xff]  ;;  %v10124_v24 = vld [vmem:[%s10063_s6 + $0x10] sm:$0xff]  ;;  %s689_s6 = scalar_lea.vmem [#allocation23], %s7345_s4 }
 0x208   : > { %v7562_v37 = vcombine.low %v903_v25, %v907_v27  ;;  %s7106_s5 = sshll.u32 %s689_s6, 4  ;;  %s10439_s5 = int_to_ptr.vmem [resolvable:$true] %s7106_s5 }
 0x209   : > { %s9478_s1 = scalar_lea.vmem %s10439_s5, 128  ;;  %p9485_p10 = scmp.lt.s32.totalorder %s10439_s5, %s9483_s3 }
 0x20a   : > { %3107 = vmatpush1.bf16.msra.mxu0 %v7496_v32  ;;  %3230 = vmatpush1.bf16.msra.mxu1 %v7498_v33  ;;  %v914_v32 = vld [vmem:[#allocation8 + $0x6e0] sm:$0xff]  ;;  %v911_v33 = vld [vmem:[#allocation8 + $0x6c8] sm:$0xff]  ;;  %p9479_p8 = scmp.ne.s32.totalorder %s10439_s5, %s9478_s1  ;;  %p9486_p1 = scmp.lt.s32.totalorder %s9484_s0, %s9478_s1 }
 0x20b   : > { %3108 = vmatprep.subr.bf16.mxu0 %v7505_v34  ;;  %3231 = vmatprep.subr.bf16.mxu1 %v7507_v38  ;;  %v7563_v34 = vcombine.high %v903_v25, %v907_v27  ;;  %v7569_v38 = vcombine.high %v910_v31, %v914_v32  ;;  %v7568_v44 = vcombine.low %v910_v31, %v914_v32  ;;  %v967_v31 = vld [vmem:[#allocation8 + $0x888] sm:$0xff] }
 0x20c   : > { %v7570_v45 = vcombine.low %v911_v33, %v915_v35  ;;  %v10128_v25 = vcombine.low %v10113_v15, %v10113_v15  ;;  %p9480_p13 = pnand %p9479_p8, %p10586_p9  ;;  %p9487_p12 = por %p9486_p1, %p9485_p10 }
 0x20e   : > { %3109 = vmatpush1.bf16.msra.mxu0 %v7504_v40  ;;  %3232 = vmatpush1.bf16.msra.mxu1 %v7506_v41  ;;  %v922_v40 = vld [vmem:[#allocation8 + $0x720] sm:$0xff]  ;;  %v919_v41 = vld [vmem:[#allocation8 + $0x708] sm:$0xff]  ;;  %p9481_p5 = pneg %p9480_p13 }
 0x20f   : > { %3110 = vmatprep.subr.bf16.mxu0 %v7513_v42  ;;  %3233 = vmatprep.subr.bf16.mxu1 %v7515_v46  ;;  %v7571_v42 = vcombine.high %v911_v33, %v915_v35  ;;  %v7577_v46 = vcombine.high %v918_v39, %v922_v40  ;;  %v7576_v52 = vcombine.low %v918_v39, %v922_v40  ;;  %v971_v33 = vld [vmem:[#allocation8 + $0x8a8] sm:$0xff] }
 0x210   : > { %v7578_v54 = vcombine.low %v919_v41, %v923_v43  ;;  %v975_v39 = vld [vmem:[#allocation8 + $0x8c8] sm:$0xff]  ;;  %v7627_v40 = vcombine.high %v967_v31, %v971_v33  ;;  %p9488_p0 = pnand %p9487_p12, %p9481_p5 }
 0x212   : > { %3111 = vmatpush1.bf16.msra.mxu0 %v7512_v48  ;;  %3234 = vmatpush1.bf16.msra.mxu1 %v7514_v49  ;;  %v930_v48 = vld [vmem:[#allocation8 + $0x760] sm:$0xff]  ;;  %v927_v49 = vld [vmem:[#allocation8 + $0x748] sm:$0xff] }
 0x213   : > { %3112 = vmatprep.subr.bf16.mxu0 %v7521_v50  ;;  %3235 = vmatprep.subr.bf16.mxu1 %v7523_v55  ;;  %v7579_v50 = vcombine.high %v919_v41, %v923_v43  ;;  %v7585_v55 = vcombine.high %v926_v47, %v930_v48  ;;  %v7584_v62 = vcombine.low %v926_v47, %v930_v48  ;;  %v979_v41 = vld [vmem:[#allocation8 + $0x8e8] sm:$0xff] }
 0x214   : > { %v7586_v63 = vcombine.low %v927_v49, %v931_v51  ;;  %v7626_v43 = vcombine.low %v967_v31, %v971_v33  ;;  %v983_v47 = vld [vmem:[#allocation8 + $0x908] sm:$0xff]  ;;  %v7635_v48 = vcombine.high %v975_v39, %v979_v41 }
 0x215   : > { %v1027_v31 = vld [vmem:[#allocation8 + $0xa68] sm:$0xff] }
 0x216   : > { %3113 = vmatpush1.bf16.msra.mxu0 %v7520_v58  ;;  %3236 = vmatpush1.bf16.msra.mxu1 %v7522_v59  ;;  %v938_v58 = vld [vmem:[#allocation8 + $0x7a0] sm:$0xff]  ;;  %v935_v59 = vld [vmem:[#allocation8 + $0x788] sm:$0xff] }
 0x217   : > { %3114 = vmatprep.subr.bf16.mxu0 %v7529_v60  ;;  %3237 = vmatprep.subr.bf16.mxu1 %v7531_v0  ;;  %v7587_v60 = vcombine.high %v927_v49, %v931_v51  ;;  %v7593_v0 = vcombine.high %v934_v56, %v938_v58  ;;  %v7592_v6 = vcombine.low %v934_v56, %v938_v58  ;;  %v987_v49 = vld [vmem:[#allocation8 + $0x928] sm:$0xff] }
 0x218   : > { %v7594_v7 = vcombine.low %v935_v59, %v939_v61  ;;  %v7634_v51 = vcombine.low %v975_v39, %v979_v41  ;;  %v991_v56 = vld [vmem:[#allocation8 + $0x948] sm:$0xff]  ;;  %v7643_v58 = vcombine.high %v983_v47, %v987_v49 }
 0x219   : > { %v1035_v39 = vld [vmem:[#allocation8 + $0xaa8] sm:$0xff] }
 0x21a   : > { %3115 = vmatpush1.bf16.msra.mxu0 %v7528_v2  ;;  %3238 = vmatpush1.bf16.msra.mxu1 %v7530_v3  ;;  %v946_v2 = vld [vmem:[#allocation8 + $0x7e0] sm:$0xff]  ;;  %v943_v3 = vld [vmem:[#allocation8 + $0x7c8] sm:$0xff] }
 0x21b   : > { %3116 = vmatprep.subr.bf16.mxu0 %v7537_v4  ;;  %3239 = vmatprep.subr.bf16.mxu1 %v7539_v8  ;;  %v7595_v4 = vcombine.high %v935_v59, %v939_v61  ;;  %v7601_v8 = vcombine.high %v942_v1, %v946_v2  ;;  %v7600_v16 = vcombine.low %v942_v1, %v946_v2  ;;  %v995_v59 = vld [vmem:[#allocation8 + $0x968] sm:$0xff] }
 0x21c   : > { %v7642_v61 = vcombine.low %v983_v47, %v987_v49  ;;  %v999_v1 = vld [vmem:[#allocation8 + $0x988] sm:$0xff]  ;;  %v7651_v2 = vcombine.high %v991_v56, %v995_v59 }
 0x21d   : > { %v1043_v47 = vld [vmem:[#allocation8 + $0xae8] sm:$0xff] }
 0x21e   : > { %3117 = vmatpush1.bf16.msra.mxu0 %v7536_v10  ;;  %3240 = vmatpush1.bf16.msra.mxu1 %v7538_v11  ;;  %v954_v10 = vld [vmem:[#allocation8 + $0x820] sm:$0xff]  ;;  %v951_v11 = vld [vmem:[#allocation8 + $0x808] sm:$0xff] }
 0x21f   : > { %3118 = vmatprep.subr.bf16.mxu0 %v7545_v13  ;;  %3241 = vmatprep.subr.bf16.mxu1 %v7547_v18  ;;  %v7603_v13 = vcombine.high %v943_v3, %v947_v5  ;;  %v7602_v18 = vcombine.low %v943_v3, %v947_v5  ;;  %v7609_v19 = vcombine.high %v950_v9, %v954_v10  ;;  %v1003_v3 = vld [vmem:[#allocation8 + $0x9a8] sm:$0xff] }
 0x220   : > { %v7611_v23 = vcombine.high %v951_v11, %v955_v14  ;;  %v7610_v27 = vcombine.low %v951_v11, %v955_v14  ;;  %v7650_v5 = vcombine.low %v991_v56, %v995_v59  ;;  %v1011_v11 = vld [vmem:[#allocation8 + $0x9e8] sm:$0xff]  ;;  %v7658_v14 = vcombine.low %v999_v1, %v1003_v3 }
 0x221   : > { %v1051_v56 = vld [vmem:[#allocation8 + $0xb28] sm:$0xff] }
 0x222   : > { %3119 = vmatpush1.bf16.msra.mxu0 %v7544_v20  ;;  %3242 = vmatpush1.bf16.msra.mxu1 %v7546_v21  ;;  %v962_v20 = vld [vmem:[#allocation8 + $0x860] sm:$0xff]  ;;  %v959_v21 = vld [vmem:[#allocation8 + $0x848] sm:$0xff] }
 0x223   : > { %3120 = vmatprep.subr.bf16.mxu0 %v7553_v22  ;;  %3243 = vmatprep.subr.bf16.mxu1 %v7555_v26  ;;  %v963_v22 = vld [vmem:[#allocation8 + $0x868] sm:$0xff]  ;;  %v7608_v26 = vcombine.low %v950_v9, %v954_v10  ;;  %v7616_v15 = vcombine.low %v958_v17, %v962_v20  ;;  %v7659_v10 = vcombine.high %v999_v1, %v1003_v3 }
 0x224   : > { %v7619_v32 = vcombine.high %v959_v21, %v963_v22  ;;  %v7618_v35 = vcombine.low %v959_v21, %v963_v22  ;;  %v1007_v9 = vld [vmem:[#allocation8 + $0x9c8] sm:$0xff] }
 0x225   : > { %v1019_v21 = vld [vmem:[#allocation8 + $0xa28] sm:$0xff] }
 0x226   : > { %3121 = vmatpush1.bf16.msra.mxu0 %v7552_v28  ;;  %3244 = vmatpush1.bf16.msra.mxu1 %v7554_v29  ;;  %v7617_v28 = vcombine.high %v958_v17, %v962_v20  ;;  %v966_v29 = vld [vmem:[#allocation8 + $0x880] sm:$0xff]  ;;  %v7667_v20 = vcombine.high %v1007_v9, %v1011_v11  ;;  %v1059_v1 = vld [vmem:[#allocation8 + $0xb68] sm:$0xff] }
 0x227   : > { %3122 = vmatprep.subr.bf16.mxu0 %v7561_v30  ;;  %3245 = vmatprep.subr.bf16.mxu1 %v7563_v34  ;;  %v970_v30 = vld [vmem:[#allocation8 + $0x8a0] sm:$0xff]  ;;  %v10132_v34 = vcombine.high %v10124_v24, %v10124_v24 }
 0x228   : > { %v1014_v17 = vld [vmem:[#allocation8 + $0xa00] sm:$0xff] }
 0x22a   : > { %3123 = vmatpush1.bf16.msra.mxu0 %v7560_v36  ;;  %3246 = vmatpush1.bf16.msra.mxu1 %v7562_v37  ;;  %v7625_v36 = vcombine.high %v966_v29, %v970_v30  ;;  %v974_v37 = vld [vmem:[#allocation8 + $0x8c0] sm:$0xff] }
 0x22b   : > { %3124 = vmatprep.subr.bf16.mxu0 %v7569_v38  ;;  %3247 = vmatprep.subr.bf16.mxu1 %v7571_v42  ;;  %v978_v38 = vld [vmem:[#allocation8 + $0x8e0] sm:$0xff]  ;;  %v7624_v42 = vcombine.low %v966_v29, %v970_v30  ;;  %v1023_v29 = vld [vmem:[#allocation8 + $0xa48] sm:$0xff] }
 0x22c   : > { %v7682_v41 = vcombine.low %v1023_v29, %v1027_v31 }
 0x22e   : > { %3125 = vmatpush1.bf16.msra.mxu0 %v7568_v44  ;;  %3248 = vmatpush1.bf16.msra.mxu1 %v7570_v45  ;;  %v7633_v44 = vcombine.high %v974_v37, %v978_v38  ;;  %v982_v45 = vld [vmem:[#allocation8 + $0x900] sm:$0xff] }
 0x22f   : > { %3126 = vmatprep.subr.bf16.mxu0 %v7577_v46  ;;  %3249 = vmatprep.subr.bf16.mxu1 %v7579_v50  ;;  %v986_v46 = vld [vmem:[#allocation8 + $0x920] sm:$0xff]  ;;  %v7632_v50 = vcombine.low %v974_v37, %v978_v38  ;;  %v1031_v37 = vld [vmem:[#allocation8 + $0xa88] sm:$0xff]  ;;  %v7683_v38 = vcombine.high %v1023_v29, %v1027_v31  ;;  %v701_v29 = vld [vmem:[#allocation8 + $0x38] sm:$0xff] }
 0x230   : > { %v7690_v49 = vcombine.low %v1031_v37, %v1035_v39 }
 0x232   : > { %3127 = vmatpush1.bf16.msra.mxu0 %v7576_v52  ;;  %3250 = vmatpush1.bf16.msra.mxu1 %v7578_v54  ;;  %v7641_v52 = vcombine.high %v982_v45, %v986_v46  ;;  %v990_v54 = vld [vmem:[#allocation8 + $0x940] sm:$0xff] }
 0x233   : > { %3128 = vmatprep.subr.bf16.mxu0 %v7585_v55  ;;  %3251 = vmatprep.subr.bf16.mxu1 %v7587_v60  ;;  %v994_v55 = vld [vmem:[#allocation8 + $0x960] sm:$0xff]  ;;  %v7640_v60 = vcombine.low %v982_v45, %v986_v46  ;;  %v1039_v45 = vld [vmem:[#allocation8 + $0xac8] sm:$0xff]  ;;  %v7691_v46 = vcombine.high %v1031_v37, %v1035_v39  ;;  %v709_v37 = vld [vmem:[#allocation8 + $0x78] sm:$0xff] }
 0x234   : > { %v7698_v59 = vcombine.low %v1039_v45, %v1043_v47 }
 0x236   : > { %3129 = vmatpush1.bf16.msra.mxu0 %v7584_v62  ;;  %3252 = vmatpush1.bf16.msra.mxu1 %v7586_v63  ;;  %v7649_v62 = vcombine.high %v990_v54, %v994_v55  ;;  %v998_v63 = vld [vmem:[#allocation8 + $0x980] sm:$0xff] }
 0x237   : > { %3130 = vmatprep.subr.bf16.mxu0 %v7593_v0  ;;  %3253 = vmatprep.subr.bf16.mxu1 %v7595_v4  ;;  %v1002_v0 = vld [vmem:[#allocation8 + $0x9a0] sm:$0xff]  ;;  %v7648_v4 = vcombine.low %v990_v54, %v994_v55  ;;  %v1047_v54 = vld [vmem:[#allocation8 + $0xb08] sm:$0xff]  ;;  %v7699_v55 = vcombine.high %v1039_v45, %v1043_v47 }
 0x238   : > { %v7706_v3 = vcombine.low %v1047_v54, %v1051_v56 }
 0x23a   : > { %3131 = vmatpush1.bf16.msra.mxu0 %v7592_v6  ;;  %3254 = vmatpush1.bf16.msra.mxu1 %v7594_v7  ;;  %v7657_v6 = vcombine.high %v998_v63, %v1002_v0  ;;  %v1006_v7 = vld [vmem:[#allocation8 + $0x9c0] sm:$0xff] }
 0x23b   : > { %3132 = vmatprep.subr.bf16.mxu0 %v7601_v8  ;;  %3255 = vmatprep.subr.bf16.mxu1 %v7603_v13  ;;  %v1010_v8 = vld [vmem:[#allocation8 + $0x9e0] sm:$0xff]  ;;  %v7656_v13 = vcombine.low %v998_v63, %v1002_v0  ;;  %v1055_v63 = vld [vmem:[#allocation8 + $0xb48] sm:$0xff]  ;;  %v7707_v0 = vcombine.high %v1047_v54, %v1051_v56  ;;  %v725_v54 = vld [vmem:[#allocation8 + $0xf8] sm:$0xff] }
 0x23c   : > { %v7664_v22 = vcombine.low %v1006_v7, %v1010_v8 }
 0x23e   : > { %3133 = vmatpush1.bf16.msra.mxu0 %v7600_v16  ;;  %3256 = vmatpush1.bf16.msra.mxu1 %v7602_v18  ;;  %v7665_v16 = vcombine.high %v1006_v7, %v1010_v8  ;;  %v1018_v18 = vld [vmem:[#allocation8 + $0xa20] sm:$0xff]  ;;  %v1063_v7 = vld [vmem:[#allocation8 + $0xb88] sm:$0xff]  ;;  %v7715_v8 = vcombine.high %v1055_v63, %v1059_v1 }
 0x23f   : > { %3143 = vmatprep.subr.bf16.mxu0 %v7609_v19  ;;  %3266 = vmatprep.subr.bf16.mxu1 %v7611_v23  ;;  %v1015_v19 = vld [vmem:[#allocation8 + $0xa08] sm:$0xff]  ;;  %v7666_v23 = vcombine.low %v1007_v9, %v1011_v11  ;;  %v7714_v11 = vcombine.low %v1055_v63, %v1059_v1  ;;  %v733_v63 = vld [vmem:[#allocation8 + $0x138] sm:$0xff] }
 0x240   : > { %v7675_v30 = vcombine.high %v1015_v19, %v1019_v21  ;;  %v7674_v33 = vcombine.low %v1015_v19, %v1019_v21  ;;  %v1067_v9 = vld [vmem:[#allocation8 + $0xba8] sm:$0xff] }
 0x241   : > { %3135 = vmatmul.mubr.bf16.vlgmr.msra.gmra.mrb[0].mxu0 %v10128_v25  ;;  %3258 = vmatmul.mubr.bf16.vlgmr.msra.gmra.mrb[0].mxu1 %v10128_v25  ;;  %v1075_v19 = vld [vmem:[#allocation8 + $0xbe8] sm:$0xff]  ;;  %v7722_v21 = vcombine.low %v1063_v7, %v1067_v9 }
 0x242   : > { %3144 = vmatpush1.bf16.msra.mxu0 %v7608_v26  ;;  %3267 = vmatpush1.bf16.msra.mxu1 %v7610_v27  ;;  %v7673_v26 = vcombine.high %v1014_v17, %v1018_v18  ;;  %v1022_v27 = vld [vmem:[#allocation8 + $0xa40] sm:$0xff] }
 0x243   : > { %3145 = vmatprep.subr.bf16.mxu0 %v7617_v28  ;;  %3268 = vmatprep.subr.bf16.mxu1 %v7619_v32  ;;  %v1026_v28 = vld [vmem:[#allocation8 + $0xa60] sm:$0xff]  ;;  %v7672_v32 = vcombine.low %v1014_v17, %v1018_v18  ;;  %v1071_v17 = vld [vmem:[#allocation8 + $0xbc8] sm:$0xff]  ;;  %v7723_v18 = vcombine.high %v1063_v7, %v1067_v9 }
 0x244   : > { %3175 = vmatprep.mubr.bf16.mxu0 %v10132_v34  ;;  %3298 = vmatprep.mubr.bf16.mxu1 %v10132_v34  ;;  %v7730_v31 = vcombine.low %v1071_v17, %v1075_v19 }
 0x246   : > { %3146 = vmatpush1.bf16.msra.mxu0 %v7616_v15  ;;  %3269 = vmatpush1.bf16.msra.mxu1 %v7618_v35  ;;  %v7681_v15 = vcombine.high %v1022_v27, %v1026_v28  ;;  %v1030_v35 = vld [vmem:[#allocation8 + $0xa80] sm:$0xff] }
 0x247   : > { %3147 = vmatprep.subr.bf16.mxu0 %v7625_v36  ;;  %3270 = vmatprep.subr.bf16.mxu1 %v7627_v40  ;;  %v1034_v36 = vld [vmem:[#allocation8 + $0xaa0] sm:$0xff]  ;;  %v7680_v40 = vcombine.low %v1022_v27, %v1026_v28  ;;  %v697_v27 = vld [vmem:[#allocation8 + $0x18] sm:$0xff]  ;;  %v7731_v28 = vcombine.high %v1071_v17, %v1075_v19 }
 0x24a   : > { %3148 = vmatpush1.bf16.msra.mxu0 %v7624_v42  ;;  %3271 = vmatpush1.bf16.msra.mxu1 %v7626_v43  ;;  %v7689_v42 = vcombine.high %v1030_v35, %v1034_v36  ;;  %v1038_v43 = vld [vmem:[#allocation8 + $0xac0] sm:$0xff] }
 0x24b   : > { %3149 = vmatprep.subr.bf16.mxu0 %v7633_v44  ;;  %3272 = vmatprep.subr.bf16.mxu1 %v7635_v48  ;;  %v1042_v44 = vld [vmem:[#allocation8 + $0xae0] sm:$0xff]  ;;  %v7688_v48 = vcombine.low %v1030_v35, %v1034_v36  ;;  %v705_v35 = vld [vmem:[#allocation8 + $0x58] sm:$0xff]  ;;  %v7359_v36 = vcombine.high %v697_v27, %v701_v29 }
 0x24c   : > { %v7367_v45 = vcombine.high %v705_v35, %v709_v37 }
 0x24e   : > { %3150 = vmatpush1.bf16.msra.mxu0 %v7632_v50  ;;  %3273 = vmatpush1.bf16.msra.mxu1 %v7634_v51  ;;  %v7697_v50 = vcombine.high %v1038_v43, %v1042_v44  ;;  %v1046_v51 = vld [vmem:[#allocation8 + $0xb00] sm:$0xff] }
 0x24f   : > { %3151 = vmatprep.subr.bf16.mxu0 %v7641_v52  ;;  %3274 = vmatprep.subr.bf16.mxu1 %v7643_v58  ;;  %v1050_v52 = vld [vmem:[#allocation8 + $0xb20] sm:$0xff]  ;;  %v7696_v58 = vcombine.low %v1038_v43, %v1042_v44  ;;  %v716_v43 = vld [vmem:[#allocation8 + $0xb0] sm:$0xff]  ;;  %v713_v44 = vld [vmem:[#allocation8 + $0x98] sm:$0xff] }
 0x252   : > { %3152 = vmatpush1.bf16.msra.mxu0 %v7640_v60  ;;  %3275 = vmatpush1.bf16.msra.mxu1 %v7642_v61  ;;  %v7705_v60 = vcombine.high %v1046_v51, %v1050_v52  ;;  %v1054_v61 = vld [vmem:[#allocation8 + $0xb40] sm:$0xff] }
 0x253   : > { %3153 = vmatprep.subr.bf16.mxu0 %v7649_v62  ;;  %3276 = vmatprep.subr.bf16.mxu1 %v7651_v2  ;;  %v1058_v62 = vld [vmem:[#allocation8 + $0xb60] sm:$0xff]  ;;  %v7704_v2 = vcombine.low %v1046_v51, %v1050_v52  ;;  %v721_v51 = vld [vmem:[#allocation8 + $0xd8] sm:$0xff] }
 0x254   : > { %v7382_v1 = vcombine.low %v721_v51, %v725_v54 }
 0x256   : > { %3154 = vmatpush1.bf16.msra.mxu0 %v7648_v4  ;;  %3277 = vmatpush1.bf16.msra.mxu1 %v7650_v5  ;;  %v7713_v4 = vcombine.high %v1054_v61, %v1058_v62  ;;  %v1062_v5 = vld [vmem:[#allocation8 + $0xb80] sm:$0xff] }
 0x257   : > { %3155 = vmatprep.subr.bf16.mxu0 %v7657_v6  ;;  %3278 = vmatprep.subr.bf16.mxu1 %v7659_v10  ;;  %v1066_v6 = vld [vmem:[#allocation8 + $0xba0] sm:$0xff]  ;;  %v7712_v10 = vcombine.low %v1054_v61, %v1058_v62  ;;  %v729_v61 = vld [vmem:[#allocation8 + $0x118] sm:$0xff]  ;;  %v7383_v62 = vcombine.high %v721_v51, %v725_v54 }
 0x25a   : > { %3156 = vmatpush1.bf16.msra.mxu0 %v7656_v13  ;;  %3279 = vmatpush1.bf16.msra.mxu1 %v7658_v14  ;;  %v7721_v13 = vcombine.high %v1062_v5, %v1066_v6  ;;  %v1070_v14 = vld [vmem:[#allocation8 + $0xbc0] sm:$0xff] }
 0x25b   : > { %3157 = vmatprep.subr.bf16.mxu0 %v7665_v16  ;;  %3280 = vmatprep.subr.bf16.mxu1 %v7667_v20  ;;  %v1074_v16 = vld [vmem:[#allocation8 + $0xbe0] sm:$0xff]  ;;  %v7720_v20 = vcombine.low %v1062_v5, %v1066_v6  ;;  %v7391_v5 = vcombine.high %v729_v61, %v733_v63  ;;  %v741_v6 = vld [vmem:[#allocation8 + $0x178] sm:$0xff] }
 0x25e   : > { %3158 = vmatpush1.bf16.msra.mxu0 %v7664_v22  ;;  %3281 = vmatpush1.bf16.msra.mxu1 %v7666_v23  ;;  %v7729_v22 = vcombine.high %v1070_v14, %v1074_v16  ;;  %v696_v23 = vld [vmem:[#allocation8 + $0x10] sm:$0xff] }
 0x25f   : > { %3159 = vmatprep.subr.bf16.mxu0 %v7673_v26  ;;  %3282 = vmatprep.subr.bf16.mxu1 %v7675_v30  ;;  %v700_v26 = vld [vmem:[#allocation8 + $0x30] sm:$0xff]  ;;  %v7728_v30 = vcombine.low %v1070_v14, %v1074_v16  ;;  %v749_v16 = vld [vmem:[#allocation8 + $0x1b8] sm:$0xff] }
 0x260   : > { %v7356_v39 = vcombine.low %v696_v23, %v700_v26 }
 0x262   : > { %3160 = vmatpush1.bf16.msra.mxu0 %v7672_v32  ;;  %3283 = vmatpush1.bf16.msra.mxu1 %v7674_v33  ;;  %v7357_v32 = vcombine.high %v696_v23, %v700_v26  ;;  %v704_v33 = vld [vmem:[#allocation8 + $0x50] sm:$0xff]  ;;  %v757_v26 = vld [vmem:[#allocation8 + $0x1f8] sm:$0xff] }
 0x263   : > { %3161 = vmatprep.subr.bf16.mxu0 %v7681_v15  ;;  %3284 = vmatprep.subr.bf16.mxu1 %v7683_v38  ;;  %v708_v15 = vld [vmem:[#allocation8 + $0x70] sm:$0xff]  ;;  %v10140_v38 = vcombine.low %v10124_v24, %v10124_v24  ;;  %v7366_v24 = vcombine.low %v705_v35, %v709_v37 }
 0x264   : > { %v7364_v47 = vcombine.low %v704_v33, %v708_v15 }
 0x266   : > { %3162 = vmatpush1.bf16.msra.mxu0 %v7680_v40  ;;  %3285 = vmatpush1.bf16.msra.mxu1 %v7682_v41  ;;  %v7358_v40 = vcombine.low %v697_v27, %v701_v29  ;;  %v7365_v41 = vcombine.high %v704_v33, %v708_v15  ;;  %v765_v15 = vld [vmem:[#allocation8 + $0x238] sm:$0xff] }
 0x267   : > { %3163 = vmatprep.subr.bf16.mxu0 %v7689_v42  ;;  %3286 = vmatprep.subr.bf16.mxu1 %v7691_v46  ;;  %v712_v42 = vld [vmem:[#allocation8 + $0x90] sm:$0xff]  ;;  %v717_v46 = vld [vmem:[#allocation8 + $0xb8] sm:$0xff] }
 0x268   : > { %v7375_v52 = vcombine.high %v713_v44, %v717_v46  ;;  %v7374_v56 = vcombine.low %v713_v44, %v717_v46 }
 0x26a   : > { %3164 = vmatpush1.bf16.msra.mxu0 %v7688_v48  ;;  %3287 = vmatpush1.bf16.msra.mxu1 %v7690_v49  ;;  %v7373_v48 = vcombine.high %v712_v42, %v716_v43  ;;  %v720_v49 = vld [vmem:[#allocation8 + $0xd0] sm:$0xff] }
 0x26b   : > { %3165 = vmatprep.subr.bf16.mxu0 %v7697_v50  ;;  %3288 = vmatprep.subr.bf16.mxu1 %v7699_v55  ;;  %v724_v50 = vld [vmem:[#allocation8 + $0xf0] sm:$0xff]  ;;  %v7372_v55 = vcombine.low %v712_v42, %v716_v43  ;;  %v773_v43 = vld [vmem:[#allocation8 + $0x278] sm:$0xff] }
 0x26e   : > { %3166 = vmatpush1.bf16.msra.mxu0 %v7696_v58  ;;  %3289 = vmatpush1.bf16.msra.mxu1 %v7698_v59  ;;  %v7381_v58 = vcombine.high %v720_v49, %v724_v50  ;;  %v728_v59 = vld [vmem:[#allocation8 + $0x110] sm:$0xff] }
 0x26f   : > { %3167 = vmatprep.subr.bf16.mxu0 %v7705_v60  ;;  %3290 = vmatprep.subr.bf16.mxu1 %v7707_v0  ;;  %v732_v60 = vld [vmem:[#allocation8 + $0x130] sm:$0xff]  ;;  %v7380_v0 = vcombine.low %v720_v49, %v724_v50  ;;  %v781_v50 = vld [vmem:[#allocation8 + $0x2b8] sm:$0xff] }
 0x270   : > { %v7388_v7 = vcombine.low %v728_v59, %v732_v60 }
 0x272   : > { %3168 = vmatpush1.bf16.msra.mxu0 %v7704_v2  ;;  %3291 = vmatpush1.bf16.msra.mxu1 %v7706_v3  ;;  %v7389_v2 = vcombine.high %v728_v59, %v732_v60  ;;  %v736_v3 = vld [vmem:[#allocation8 + $0x150] sm:$0xff]  ;;  %v789_v60 = vld [vmem:[#allocation8 + $0x2f8] sm:$0xff] }
 0x273   : > { %3169 = vmatprep.subr.bf16.mxu0 %v7713_v4  ;;  %3292 = vmatprep.subr.bf16.mxu1 %v7715_v8  ;;  %v737_v4 = vld [vmem:[#allocation8 + $0x158] sm:$0xff]  ;;  %v7390_v8 = vcombine.low %v729_v61, %v733_v63 }
 0x274   : > { %v7399_v14 = vcombine.high %v737_v4, %v741_v6 }
 0x276   : > { %3170 = vmatpush1.bf16.msra.mxu0 %v7712_v10  ;;  %3293 = vmatpush1.bf16.msra.mxu1 %v7714_v11  ;;  %v744_v10 = vld [vmem:[#allocation8 + $0x190] sm:$0xff] }
 0x277   : > { %3171 = vmatprep.subr.bf16.mxu0 %v7721_v13  ;;  %3294 = vmatprep.subr.bf16.mxu1 %v7723_v18  ;;  %v748_v11 = vld [vmem:[#allocation8 + $0x1b0] sm:$0xff]  ;;  %v745_v13 = vld [vmem:[#allocation8 + $0x198] sm:$0xff]  ;;  %v7398_v18 = vcombine.low %v737_v4, %v741_v6 }
 0x278   : > { %v7405_v19 = vcombine.high %v744_v10, %v748_v11  ;;  %v7407_v23 = vcombine.high %v745_v13, %v749_v16  ;;  %v7404_v27 = vcombine.low %v744_v10, %v748_v11  ;;  %v805_v11 = vld [vmem:[#allocation8 + $0x378] sm:$0xff] }
 0x27a   : > { %3172 = vmatpush1.bf16.msra.mxu0 %v7720_v20  ;;  %3295 = vmatpush1.bf16.msra.mxu1 %v7722_v21  ;;  %v752_v20 = vld [vmem:[#allocation8 + $0x1d0] sm:$0xff] }
 0x27b   : > { %3173 = vmatprep.subr.bf16.mxu0 %v7729_v22  ;;  %3296 = vmatprep.subr.bf16.mxu1 %v7731_v28  ;;  %v756_v21 = vld [vmem:[#allocation8 + $0x1f0] sm:$0xff]  ;;  %v753_v22 = vld [vmem:[#allocation8 + $0x1d8] sm:$0xff]  ;;  %v7406_v28 = vcombine.low %v745_v13, %v749_v16 }
 0x27c   : > { %v7413_v29 = vcombine.high %v752_v20, %v756_v21  ;;  %v7415_v33 = vcombine.high %v753_v22, %v757_v26  ;;  %v7412_v35 = vcombine.low %v752_v20, %v756_v21  ;;  %v813_v21 = vld [vmem:[#allocation8 + $0x3b8] sm:$0xff] }
 0x27e   : > { %3174 = vmatpush1.bf16.msra.mxu0 %v7728_v30  ;;  %3297 = vmatpush1.bf16.msra.mxu1 %v7730_v31  ;;  %v760_v30 = vld [vmem:[#allocation8 + $0x210] sm:$0xff] }
 0x27f   : > { %3307 = vmatprep.subr.bf16.mxu0 %v7357_v32  ;;  %3430 = vmatprep.subr.bf16.mxu1 %v7359_v36  ;;  %v764_v31 = vld [vmem:[#allocation8 + $0x230] sm:$0xff]  ;;  %v761_v32 = vld [vmem:[#allocation8 + $0x218] sm:$0xff]  ;;  %v7414_v36 = vcombine.low %v753_v22, %v757_v26 }
 0x280   : > { %v7421_v37 = vcombine.high %v760_v30, %v764_v31  ;;  %v7423_v42 = vcombine.high %v761_v32, %v765_v15  ;;  %v7420_v44 = vcombine.low %v760_v30, %v764_v31  ;;  %v821_v31 = vld [vmem:[#allocation8 + $0x3f8] sm:$0xff] }
 0x281   : > { %3176 = vmatmul.mubr.bf16.vlgmr.msra.gmra.mrb[0].mxu0 %v10140_v38  ;;  %3299 = vmatmul.mubr.bf16.vlgmr.msra.gmra.mrb[0].mxu1 %v10140_v38 }
 0x282   : > { %3308 = vmatpush1.bf16.msra.mxu0 %v7356_v39  ;;  %3431 = vmatpush1.bf16.msra.mxu1 %v7358_v40  ;;  %v768_v39 = vld [vmem:[#allocation8 + $0x250] sm:$0xff] }
 0x283   : > { %3309 = vmatprep.subr.bf16.mxu0 %v7365_v41  ;;  %3432 = vmatprep.subr.bf16.mxu1 %v7367_v45  ;;  %v772_v40 = vld [vmem:[#allocation8 + $0x270] sm:$0xff]  ;;  %v769_v41 = vld [vmem:[#allocation8 + $0x258] sm:$0xff]  ;;  %v7422_v45 = vcombine.low %v761_v32, %v765_v15 }
 0x284   : > { %3339 = vmatprep.mubr.bf16.mxu0 %v10104_v57  ;;  %3462 = vmatprep.mubr.bf16.mxu1 %v10104_v57  ;;  %v740_v57 = vld [vmem:[#allocation8 + $0x170] sm:$0xff]  ;;  %v7429_v46 = vcombine.high %v768_v39, %v772_v40  ;;  %v7431_v49 = vcombine.high %v769_v41, %v773_v43  ;;  %v7428_v51 = vcombine.low %v768_v39, %v772_v40  ;;  %v829_v40 = vld [vmem:[#allocation8 + $0x438] sm:$0xff] }
 0x285   : > { %v7397_v9 = vcombine.high %v736_v3, %v740_v57  ;;  %v7396_v17 = vcombine.low %v736_v3, %v740_v57  ;;  %v797_v57 = vld [vmem:[#allocation8 + $0x338] sm:$0xff] }
 0x286   : > { %3310 = vmatpush1.bf16.msra.mxu0 %v7364_v47  ;;  %3433 = vmatpush1.bf16.msra.mxu1 %v7366_v24  ;;  %v776_v47 = vld [vmem:[#allocation8 + $0x290] sm:$0xff] }
 0x287   : > { %3311 = vmatprep.subr.bf16.mxu0 %v7373_v48  ;;  %3434 = vmatprep.subr.bf16.mxu1 %v7375_v52  ;;  %v780_v24 = vld [vmem:[#allocation8 + $0x2b0] sm:$0xff]  ;;  %v777_v48 = vld [vmem:[#allocation8 + $0x298] sm:$0xff]  ;;  %v7430_v52 = vcombine.low %v769_v41, %v773_v43 }
 0x288   : > { %v7437_v54 = vcombine.high %v776_v47, %v780_v24  ;;  %v7439_v59 = vcombine.high %v777_v48, %v781_v50  ;;  %v7436_v61 = vcombine.low %v776_v47, %v780_v24  ;;  %v837_v24 = vld [vmem:[#allocation8 + $0x478] sm:$0xff] }
 0x28a   : > { %3312 = vmatpush1.bf16.msra.mxu0 %v7372_v55  ;;  %3435 = vmatpush1.bf16.msra.mxu1 %v7374_v56  ;;  %v784_v55 = vld [vmem:[#allocation8 + $0x2d0] sm:$0xff] }
 0x28b   : > { %3313 = vmatprep.subr.bf16.mxu0 %v7381_v58  ;;  %3436 = vmatprep.subr.bf16.mxu1 %v7383_v62  ;;  %v788_v56 = vld [vmem:[#allocation8 + $0x2f0] sm:$0xff]  ;;  %v785_v58 = vld [vmem:[#allocation8 + $0x2d8] sm:$0xff]  ;;  %v7438_v62 = vcombine.low %v777_v48, %v781_v50 }
 0x28c   : > { %v7445_v63 = vcombine.high %v784_v55, %v788_v56  ;;  %v7447_v3 = vcombine.high %v785_v58, %v789_v60  ;;  %v7444_v4 = vcombine.low %v784_v55, %v788_v56  ;;  %v841_v55 = vld [vmem:[#allocation8 + $0x498] sm:$0xff] }
 0x28d   : > { %v845_v56 = vld [vmem:[#allocation8 + $0x4b8] sm:$0xff] }
 0x28e   : > { %3314 = vmatpush1.bf16.msra.mxu0 %v7380_v0  ;;  %3437 = vmatpush1.bf16.msra.mxu1 %v7382_v1  ;;  %v792_v0 = vld [vmem:[#allocation8 + $0x310] sm:$0xff] }
 0x28f   : > { %3315 = vmatprep.subr.bf16.mxu0 %v7389_v2  ;;  %3438 = vmatprep.subr.bf16.mxu1 %v7391_v5  ;;  %v796_v1 = vld [vmem:[#allocation8 + $0x330] sm:$0xff]  ;;  %v793_v2 = vld [vmem:[#allocation8 + $0x318] sm:$0xff]  ;;  %v7446_v5 = vcombine.low %v785_v58, %v789_v60 }
 0x290   : > { %v7453_v6 = vcombine.high %v792_v0, %v796_v1  ;;  %v7455_v10 = vcombine.high %v793_v2, %v797_v57  ;;  %v7452_v13 = vcombine.low %v792_v0, %v796_v1  ;;  %v7503_v0 = vcombine.high %v841_v55, %v845_v56  ;;  %v853_v1 = vld [vmem:[#allocation8 + $0x4f8] sm:$0xff] }
 0x292   : > { %3316 = vmatpush1.bf16.msra.mxu0 %v7388_v7  ;;  %3439 = vmatpush1.bf16.msra.mxu1 %v7390_v8  ;;  %v800_v7 = vld [vmem:[#allocation8 + $0x350] sm:$0xff] }
 0x293   : > { %3317 = vmatprep.subr.bf16.mxu0 %v7397_v9  ;;  %3440 = vmatprep.subr.bf16.mxu1 %v7399_v14  ;;  %v804_v8 = vld [vmem:[#allocation8 + $0x370] sm:$0xff]  ;;  %v801_v9 = vld [vmem:[#allocation8 + $0x358] sm:$0xff]  ;;  %v7454_v14 = vcombine.low %v793_v2, %v797_v57 }
 0x294   : > { %v7461_v16 = vcombine.high %v800_v7, %v804_v8  ;;  %v7463_v20 = vcombine.high %v801_v9, %v805_v11  ;;  %v7460_v22 = vcombine.low %v800_v7, %v804_v8  ;;  %v856_v57 = vld [vmem:[#allocation8 + $0x510] sm:$0xff]  ;;  %v861_v7 = vld [vmem:[#allocation8 + $0x538] sm:$0xff] }
 0x296   : > { %3318 = vmatpush1.bf16.msra.mxu0 %v7396_v17  ;;  %3441 = vmatpush1.bf16.msra.mxu1 %v7398_v18  ;;  %v808_v17 = vld [vmem:[#allocation8 + $0x390] sm:$0xff] }
 0x297   : > { %3319 = vmatprep.subr.bf16.mxu0 %v7405_v19  ;;  %3442 = vmatprep.subr.bf16.mxu1 %v7407_v23  ;;  %v812_v18 = vld [vmem:[#allocation8 + $0x3b0] sm:$0xff]  ;;  %v809_v19 = vld [vmem:[#allocation8 + $0x398] sm:$0xff]  ;;  %v7462_v23 = vcombine.low %v801_v9, %v805_v11 }
 0x298   : > { %v7469_v26 = vcombine.high %v808_v17, %v812_v18  ;;  %v7471_v30 = vcombine.high %v809_v19, %v813_v21  ;;  %v7468_v32 = vcombine.low %v808_v17, %v812_v18  ;;  %v864_v11 = vld [vmem:[#allocation8 + $0x550] sm:$0xff] }
 0x29a   : > { %3320 = vmatpush1.bf16.msra.mxu0 %v7404_v27  ;;  %3443 = vmatpush1.bf16.msra.mxu1 %v7406_v28  ;;  %v816_v27 = vld [vmem:[#allocation8 + $0x3d0] sm:$0xff] }
 0x29b   : > { %3321 = vmatprep.subr.bf16.mxu0 %v7413_v29  ;;  %3444 = vmatprep.subr.bf16.mxu1 %v7415_v33  ;;  %v820_v28 = vld [vmem:[#allocation8 + $0x3f0] sm:$0xff]  ;;  %v817_v29 = vld [vmem:[#allocation8 + $0x3d8] sm:$0xff]  ;;  %v7470_v33 = vcombine.low %v809_v19, %v813_v21 }
 0x29c   : > { %v7477_v15 = vcombine.high %v816_v27, %v820_v28  ;;  %v7479_v39 = vcombine.high %v817_v29, %v821_v31  ;;  %v7476_v41 = vcombine.low %v816_v27, %v820_v28  ;;  %v876_v21 = vld [vmem:[#allocation8 + $0x5b0] sm:$0xff] }
 0x29e   : > { %3322 = vmatpush1.bf16.msra.mxu0 %v7412_v35  ;;  %3445 = vmatpush1.bf16.msra.mxu1 %v7414_v36  ;;  %v824_v35 = vld [vmem:[#allocation8 + $0x410] sm:$0xff] }
 0x29f   : > { %3323 = vmatprep.subr.bf16.mxu0 %v7421_v37  ;;  %3446 = vmatprep.subr.bf16.mxu1 %v7423_v42  ;;  %v828_v36 = vld [vmem:[#allocation8 + $0x430] sm:$0xff]  ;;  %v825_v37 = vld [vmem:[#allocation8 + $0x418] sm:$0xff]  ;;  %v7478_v42 = vcombine.low %v817_v29, %v821_v31 }
 0x2a0   : > { %v7485_v43 = vcombine.high %v824_v35, %v828_v36  ;;  %v7487_v47 = vcombine.high %v825_v37, %v829_v40  ;;  %v7484_v48 = vcombine.low %v824_v35, %v828_v36  ;;  %v880_v31 = vld [vmem:[#allocation8 + $0x5d0] sm:$0xff] }
 0x2a2   : > { %3324 = vmatpush1.bf16.msra.mxu0 %v7420_v44  ;;  %3447 = vmatpush1.bf16.msra.mxu1 %v7422_v45  ;;  %v832_v44 = vld [vmem:[#allocation8 + $0x450] sm:$0xff] }
 0x2a3   : > { %3325 = vmatprep.subr.bf16.mxu0 %v7429_v46  ;;  %3448 = vmatprep.subr.bf16.mxu1 %v7431_v49  ;;  %v836_v45 = vld [vmem:[#allocation8 + $0x470] sm:$0xff]  ;;  %v833_v46 = vld [vmem:[#allocation8 + $0x458] sm:$0xff]  ;;  %v7486_v49 = vcombine.low %v825_v37, %v829_v40 }
 0x2a4   : > { %v7493_v50 = vcombine.high %v832_v44, %v836_v45  ;;  %v7492_v58 = vcombine.low %v832_v44, %v836_v45  ;;  %v888_v40 = vld [vmem:[#allocation8 + $0x610] sm:$0xff] }
 0x2a6   : > { %3326 = vmatpush1.bf16.msra.mxu0 %v7428_v51  ;;  %3449 = vmatpush1.bf16.msra.mxu1 %v7430_v52  ;;  %v7495_v51 = vcombine.high %v833_v46, %v837_v24  ;;  %v840_v52 = vld [vmem:[#allocation8 + $0x490] sm:$0xff] }
 0x2a7   : > { %3327 = vmatprep.subr.bf16.mxu0 %v7437_v54  ;;  %3450 = vmatprep.subr.bf16.mxu1 %v7439_v59  ;;  %v844_v54 = vld [vmem:[#allocation8 + $0x4b0] sm:$0xff]  ;;  %v7494_v59 = vcombine.low %v833_v46, %v837_v24 }
 0x2a8   : > { %v7501_v60 = vcombine.high %v840_v52, %v844_v54  ;;  %v7500_v2 = vcombine.low %v840_v52, %v844_v54  ;;  %v900_v24 = vld [vmem:[#allocation8 + $0x670] sm:$0xff] }
 0x2aa   : > { %3328 = vmatpush1.bf16.msra.mxu0 %v7436_v61  ;;  %3451 = vmatpush1.bf16.msra.mxu1 %v7438_v62  ;;  %v848_v61 = vld [vmem:[#allocation8 + $0x4d0] sm:$0xff] }
 0x2ab   : > { %3329 = vmatprep.subr.bf16.mxu0 %v7445_v63  ;;  %3452 = vmatprep.subr.bf16.mxu1 %v7447_v3  ;;  %v852_v62 = vld [vmem:[#allocation8 + $0x4f0] sm:$0xff]  ;;  %v849_v63 = vld [vmem:[#allocation8 + $0x4d8] sm:$0xff] }
 0x2ac   : > { %v7509_v3 = vcombine.high %v848_v61, %v852_v62  ;;  %v7508_v8 = vcombine.low %v848_v61, %v852_v62  ;;  %v7510_v9 = vcombine.low %v849_v63, %v853_v1 }
 0x2ae   : > { %3330 = vmatpush1.bf16.msra.mxu0 %v7444_v4  ;;  %3453 = vmatpush1.bf16.msra.mxu1 %v7446_v5  ;;  %v860_v4 = vld [vmem:[#allocation8 + $0x530] sm:$0xff]  ;;  %v857_v5 = vld [vmem:[#allocation8 + $0x518] sm:$0xff] }
 0x2af   : > { %3331 = vmatprep.subr.bf16.mxu0 %v7453_v6  ;;  %3454 = vmatprep.subr.bf16.mxu1 %v7455_v10  ;;  %v7511_v6 = vcombine.high %v849_v63, %v853_v1  ;;  %v7517_v10 = vcombine.high %v856_v57, %v860_v4  ;;  %v7516_v17 = vcombine.low %v856_v57, %v860_v4  ;;  %v916_v1 = vld [vmem:[#allocation8 + $0x6f0] sm:$0xff] }
 0x2b0   : > { %v7518_v18 = vcombine.low %v857_v5, %v861_v7 }
 0x2b2   : > { %3332 = vmatpush1.bf16.msra.mxu0 %v7452_v13  ;;  %3455 = vmatpush1.bf16.msra.mxu1 %v7454_v14  ;;  %v865_v13 = vld [vmem:[#allocation8 + $0x558] sm:$0xff]  ;;  %v7519_v14 = vcombine.high %v857_v5, %v861_v7  ;;  %v924_v7 = vld [vmem:[#allocation8 + $0x730] sm:$0xff] }
 0x2b3   : > { %3333 = vmatprep.subr.bf16.mxu0 %v7461_v16  ;;  %3456 = vmatprep.subr.bf16.mxu1 %v7463_v20  ;;  %v869_v16 = vld [vmem:[#allocation8 + $0x578] sm:$0xff]  ;;  %v872_v20 = vld [vmem:[#allocation8 + $0x590] sm:$0xff] }
 0x2b4   : > { %v7526_v28 = vcombine.low %v865_v13, %v869_v16  ;;  %v7533_v29 = vcombine.high %v872_v20, %v876_v21  ;;  %v7532_v35 = vcombine.low %v872_v20, %v876_v21 }
 0x2b6   : > { %3334 = vmatpush1.bf16.msra.mxu0 %v7460_v22  ;;  %3457 = vmatpush1.bf16.msra.mxu1 %v7462_v23  ;;  %v7527_v22 = vcombine.high %v865_v13, %v869_v16  ;;  %v873_v23 = vld [vmem:[#allocation8 + $0x598] sm:$0xff]  ;;  %v932_v16 = vld [vmem:[#allocation8 + $0x770] sm:$0xff] }
 0x2b7   : > { %3335 = vmatprep.subr.bf16.mxu0 %v7469_v26  ;;  %3458 = vmatprep.subr.bf16.mxu1 %v7471_v30  ;;  %v877_v26 = vld [vmem:[#allocation8 + $0x5b8] sm:$0xff] }
 0x2b8   : > { %v7535_v30 = vcombine.high %v873_v23, %v877_v26  ;;  %v7534_v36 = vcombine.low %v873_v23, %v877_v26  ;;  %v936_v26 = vld [vmem:[#allocation8 + $0x790] sm:$0xff] }
 0x2ba   : > { %3336 = vmatpush1.bf16.msra.mxu0 %v7468_v32  ;;  %3459 = vmatpush1.bf16.msra.mxu1 %v7470_v33  ;;  %v884_v32 = vld [vmem:[#allocation8 + $0x5f0] sm:$0xff]  ;;  %v881_v33 = vld [vmem:[#allocation8 + $0x5d8] sm:$0xff] }
 0x2bb   : > { %3337 = vmatprep.subr.bf16.mxu0 %v7477_v15  ;;  %3460 = vmatprep.subr.bf16.mxu1 %v7479_v39  ;;  %v885_v15 = vld [vmem:[#allocation8 + $0x5f8] sm:$0xff]  ;;  %v7541_v37 = vcombine.high %v880_v31, %v884_v32  ;;  %v7540_v44 = vcombine.low %v880_v31, %v884_v32 }
 0x2bc   : > { %v7543_v39 = vcombine.high %v881_v33, %v885_v15  ;;  %v7542_v45 = vcombine.low %v881_v33, %v885_v15  ;;  %v944_v15 = vld [vmem:[#allocation8 + $0x7d0] sm:$0xff] }
 0x2be   : > { %3338 = vmatpush1.bf16.msra.mxu0 %v7476_v41  ;;  %3461 = vmatpush1.bf16.msra.mxu1 %v7478_v42  ;;  %v892_v41 = vld [vmem:[#allocation8 + $0x630] sm:$0xff]  ;;  %v889_v42 = vld [vmem:[#allocation8 + $0x618] sm:$0xff] }
 0x2bf   : > { %3348 = vmatprep.subr.bf16.mxu0 %v7485_v43  ;;  %3471 = vmatprep.subr.bf16.mxu1 %v7487_v47  ;;  %v893_v43 = vld [vmem:[#allocation8 + $0x638] sm:$0xff]  ;;  %v7549_v46 = vcombine.high %v888_v40, %v892_v41  ;;  %v896_v47 = vld [vmem:[#allocation8 + $0x650] sm:$0xff] }
 0x2c0   : > { %v7550_v52 = vcombine.low %v889_v42, %v893_v43  ;;  %v7557_v54 = vcombine.high %v896_v47, %v900_v24  ;;  %v7556_v61 = vcombine.low %v896_v47, %v900_v24 }
 0x2c1   : > { %3340 = vmatmul.mubr.bf16.vlgmr.msra.gmra.mrb[4].mxu0 %v10110_v12  ;;  %3463 = vmatmul.mubr.bf16.vlgmr.msra.gmra.mrb[4].mxu1 %v10110_v12  ;;  %v7502_v12 = vcombine.low %v841_v55, %v845_v56  ;;  %v904_v55 = vld [vmem:[#allocation8 + $0x690] sm:$0xff] }
 0x2c2   : > { %3349 = vmatpush1.bf16.msra.mxu0 %v7484_v48  ;;  %3472 = vmatpush1.bf16.msra.mxu1 %v7486_v49  ;;  %v7551_v48 = vcombine.high %v889_v42, %v893_v43  ;;  %v897_v49 = vld [vmem:[#allocation8 + $0x658] sm:$0xff]  ;;  %v908_v56 = vld [vmem:[#allocation8 + $0x6b0] sm:$0xff] }
 0x2c3   : > { %3350 = vmatprep.subr.bf16.mxu0 %v7493_v50  ;;  %3473 = vmatprep.subr.bf16.mxu1 %v7495_v51  ;;  %v901_v50 = vld [vmem:[#allocation8 + $0x678] sm:$0xff]  ;;  %v7548_v51 = vcombine.low %v888_v40, %v892_v41  ;;  %v7565_v63 = vcombine.high %v904_v55, %v908_v56  ;;  %v7564_v57 = vcombine.low %v904_v55, %v908_v56  ;;  %v952_v43 = vld [vmem:[#allocation8 + $0x810] sm:$0xff] }
 0x2c4   : > { %3380 = vmatprep.mubr.bf16.mxu0 %v10117_v53  ;;  %3503 = vmatprep.mubr.bf16.mxu1 %v10117_v53  ;;  %v868_v53 = vld [vmem:[#allocation8 + $0x570] sm:$0xff]  ;;  %v7558_v62 = vcombine.low %v897_v49, %v901_v50 }
 0x2c5   : > { %v7525_v19 = vcombine.high %v864_v11, %v868_v53  ;;  %v7524_v27 = vcombine.low %v864_v11, %v868_v53 }
 0x2c6   : > { %3351 = vmatpush1.bf16.msra.mxu0 %v7492_v58  ;;  %3474 = vmatpush1.bf16.msra.mxu1 %v7494_v59  ;;  %v905_v58 = vld [vmem:[#allocation8 + $0x698] sm:$0xff]  ;;  %v7559_v59 = vcombine.high %v897_v49, %v901_v50  ;;  %v960_v50 = vld [vmem:[#allocation8 + $0x850] sm:$0xff] }
 0x2c7   : > { %3352 = vmatprep.subr.bf16.mxu0 %v7501_v60  ;;  %3475 = vmatprep.subr.bf16.mxu1 %v7503_v0  ;;  %v909_v60 = vld [vmem:[#allocation8 + $0x6b8] sm:$0xff]  ;;  %v912_v0 = vld [vmem:[#allocation8 + $0x6d0] sm:$0xff] }
 0x2c8   : > { %v7566_v4 = vcombine.low %v905_v58, %v909_v60  ;;  %v7573_v5 = vcombine.high %v912_v0, %v916_v1  ;;  %v7572_v11 = vcombine.low %v912_v0, %v916_v1 }
 0x2ca   : > { %3353 = vmatpush1.bf16.msra.mxu0 %v7500_v2  ;;  %3476 = vmatpush1.bf16.msra.mxu1 %v7502_v12  ;;  %v913_v2 = vld [vmem:[#allocation8 + $0x6d8] sm:$0xff]  ;;  %v7567_v12 = vcombine.high %v905_v58, %v909_v60  ;;  %v968_v60 = vld [vmem:[#allocation8 + $0x890] sm:$0xff] }
 0x2cb   : > { %3354 = vmatprep.subr.bf16.mxu0 %v7509_v3  ;;  %3477 = vmatprep.subr.bf16.mxu1 %v7511_v6  ;;  %v917_v3 = vld [vmem:[#allocation8 + $0x6f8] sm:$0xff]  ;;  %v920_v6 = vld [vmem:[#allocation8 + $0x710] sm:$0xff] }
 0x2cc   : > { %v7574_v53 = vcombine.low %v913_v2, %v917_v3  ;;  %v7581_v13 = vcombine.high %v920_v6, %v924_v7  ;;  %v7580_v20 = vcombine.low %v920_v6, %v924_v7 }
 0x2ce   : > { %3355 = vmatpush1.bf16.msra.mxu0 %v7508_v8  ;;  %3478 = vmatpush1.bf16.msra.mxu1 %v7510_v9  ;;  %v921_v8 = vld [vmem:[#allocation8 + $0x718] sm:$0xff]  ;;  %v7575_v9 = vcombine.high %v913_v2, %v917_v3  ;;  %v976_v3 = vld [vmem:[#allocation8 + $0x8d0] sm:$0xff] }
 0x2cf   : > { %3356 = vmatprep.subr.bf16.mxu0 %v7517_v10  ;;  %3479 = vmatprep.subr.bf16.mxu1 %v7519_v14  ;;  %v925_v10 = vld [vmem:[#allocation8 + $0x738] sm:$0xff]  ;;  %v928_v14 = vld [vmem:[#allocation8 + $0x750] sm:$0xff] }
 0x2d0   : > { %v7582_v21 = vcombine.low %v921_v8, %v925_v10 }
 0x2d2   : > { %3357 = vmatpush1.bf16.msra.mxu0 %v7516_v17  ;;  %3480 = vmatpush1.bf16.msra.mxu1 %v7518_v18  ;;  %v7583_v17 = vcombine.high %v921_v8, %v925_v10  ;;  %v929_v18 = vld [vmem:[#allocation8 + $0x758] sm:$0xff]  ;;  %v988_v10 = vld [vmem:[#allocation8 + $0x930] sm:$0xff] }
 0x2d3   : > { %3358 = vmatprep.subr.bf16.mxu0 %v7525_v19  ;;  %3481 = vmatprep.subr.bf16.mxu1 %v7527_v22  ;;  %v933_v19 = vld [vmem:[#allocation8 + $0x778] sm:$0xff]  ;;  %v7589_v22 = vcombine.high %v928_v14, %v932_v16 }
 0x2d4   : > { %v7591_v23 = vcombine.high %v929_v18, %v933_v19  ;;  %v7590_v31 = vcombine.low %v929_v18, %v933_v19  ;;  %v996_v18 = vld [vmem:[#allocation8 + $0x970] sm:$0xff]  ;;  %v993_v19 = vld [vmem:[#allocation8 + $0x958] sm:$0xff] }
 0x2d6   : > { %3359 = vmatpush1.bf16.msra.mxu0 %v7524_v27  ;;  %3482 = vmatpush1.bf16.msra.mxu1 %v7526_v28  ;;  %v940_v27 = vld [vmem:[#allocation8 + $0x7b0] sm:$0xff]  ;;  %v937_v28 = vld [vmem:[#allocation8 + $0x798] sm:$0xff] }
 0x2d7   : > { %3360 = vmatprep.subr.bf16.mxu0 %v7533_v29  ;;  %3483 = vmatprep.subr.bf16.mxu1 %v7535_v30  ;;  %v941_v29 = vld [vmem:[#allocation8 + $0x7b8] sm:$0xff]  ;;  %v7588_v30 = vcombine.low %v928_v14, %v932_v16  ;;  %v7597_v32 = vcombine.high %v936_v26, %v940_v27 }
 0x2d8   : > { %v7599_v33 = vcombine.high %v937_v28, %v941_v29  ;;  %v7598_v40 = vcombine.low %v937_v28, %v941_v29  ;;  %v1004_v28 = vld [vmem:[#allocation8 + $0x9b0] sm:$0xff]  ;;  %v1001_v29 = vld [vmem:[#allocation8 + $0x998] sm:$0xff] }
 0x2da   : > { %3361 = vmatpush1.bf16.msra.mxu0 %v7532_v35  ;;  %3484 = vmatpush1.bf16.msra.mxu1 %v7534_v36  ;;  %v948_v35 = vld [vmem:[#allocation8 + $0x7f0] sm:$0xff]  ;;  %v945_v36 = vld [vmem:[#allocation8 + $0x7d8] sm:$0xff] }
 0x2db   : > { %3362 = vmatprep.subr.bf16.mxu0 %v7541_v37  ;;  %3485 = vmatprep.subr.bf16.mxu1 %v7543_v39  ;;  %v949_v37 = vld [vmem:[#allocation8 + $0x7f8] sm:$0xff]  ;;  %v7596_v39 = vcombine.low %v936_v26, %v940_v27  ;;  %v7605_v41 = vcombine.high %v944_v15, %v948_v35  ;;  %v7604_v47 = vcombine.low %v944_v15, %v948_v35  ;;  %v1000_v27 = vld [vmem:[#allocation8 + $0x990] sm:$0xff] }
 0x2dc   : > { %v7607_v42 = vcombine.high %v945_v36, %v949_v37  ;;  %v7606_v24 = vcombine.low %v945_v36, %v949_v37  ;;  %v1008_v35 = vld [vmem:[#allocation8 + $0x9d0] sm:$0xff]  ;;  %v1009_v37 = vld [vmem:[#allocation8 + $0x9d8] sm:$0xff] }
 0x2dd   : > { %v1012_v36 = vld [vmem:[#allocation8 + $0x9f0] sm:$0xff] }
 0x2de   : > { %3363 = vmatpush1.bf16.msra.mxu0 %v7540_v44  ;;  %3486 = vmatpush1.bf16.msra.mxu1 %v7542_v45  ;;  %v956_v44 = vld [vmem:[#allocation8 + $0x830] sm:$0xff]  ;;  %v953_v45 = vld [vmem:[#allocation8 + $0x818] sm:$0xff] }
 0x2df   : > { %3364 = vmatprep.subr.bf16.mxu0 %v7549_v46  ;;  %3487 = vmatprep.subr.bf16.mxu1 %v7551_v48  ;;  %v957_v46 = vld [vmem:[#allocation8 + $0x838] sm:$0xff]  ;;  %v7613_v48 = vcombine.high %v952_v43, %v956_v44  ;;  %v7612_v55 = vcombine.low %v952_v43, %v956_v44  ;;  %v1016_v44 = vld [vmem:[#allocation8 + $0xa10] sm:$0xff] }
 0x2e0   : > { %v7615_v49 = vcombine.high %v953_v45, %v957_v46  ;;  %v7614_v56 = vcombine.low %v953_v45, %v957_v46  ;;  %v1020_v45 = vld [vmem:[#allocation8 + $0xa30] sm:$0xff]  ;;  %v1017_v46 = vld [vmem:[#allocation8 + $0xa18] sm:$0xff] }
 0x2e2   : > { %3365 = vmatpush1.bf16.msra.mxu0 %v7548_v51  ;;  %3488 = vmatpush1.bf16.msra.mxu1 %v7550_v52  ;;  %v964_v51 = vld [vmem:[#allocation8 + $0x870] sm:$0xff]  ;;  %v961_v52 = vld [vmem:[#allocation8 + $0x858] sm:$0xff] }
 0x2e3   : > { %3366 = vmatprep.subr.bf16.mxu0 %v7557_v54  ;;  %3489 = vmatprep.subr.bf16.mxu1 %v7559_v59  ;;  %v965_v54 = vld [vmem:[#allocation8 + $0x878] sm:$0xff]  ;;  %v7621_v58 = vcombine.high %v960_v50, %v964_v51  ;;  %v7620_v0 = vcombine.low %v960_v50, %v964_v51  ;;  %v1024_v51 = vld [vmem:[#allocation8 + $0xa50] sm:$0xff] }
 0x2e4   : > { %v7623_v59 = vcombine.high %v961_v52, %v965_v54  ;;  %v7622_v1 = vcombine.low %v961_v52, %v965_v54  ;;  %v1028_v52 = vld [vmem:[#allocation8 + $0xa70] sm:$0xff]  ;;  %v1025_v54 = vld [vmem:[#allocation8 + $0xa58] sm:$0xff] }
 0x2e6   : > { %3367 = vmatpush1.bf16.msra.mxu0 %v7556_v61  ;;  %3490 = vmatpush1.bf16.msra.mxu1 %v7558_v62  ;;  %v972_v61 = vld [vmem:[#allocation8 + $0x8b0] sm:$0xff]  ;;  %v969_v62 = vld [vmem:[#allocation8 + $0x898] sm:$0xff] }
 0x2e7   : > { %3368 = vmatprep.subr.bf16.mxu0 %v7565_v63  ;;  %3491 = vmatprep.subr.bf16.mxu1 %v7567_v12  ;;  %v973_v63 = vld [vmem:[#allocation8 + $0x8b8] sm:$0xff]  ;;  %v7629_v2 = vcombine.high %v968_v60, %v972_v61  ;;  %v7628_v6 = vcombine.low %v968_v60, %v972_v61  ;;  %v1032_v61 = vld [vmem:[#allocation8 + $0xa90] sm:$0xff] }
 0x2e8   : > { %v7631_v12 = vcombine.high %v969_v62, %v973_v63 }
 0x2ea   : > { %3369 = vmatpush1.bf16.msra.mxu0 %v7564_v57  ;;  %3492 = vmatpush1.bf16.msra.mxu1 %v7566_v4  ;;  %v980_v57 = vld [vmem:[#allocation8 + $0x8f0] sm:$0xff]  ;;  %v977_v4 = vld [vmem:[#allocation8 + $0x8d8] sm:$0xff] }
 0x2eb   : > { %3370 = vmatprep.subr.bf16.mxu0 %v7573_v5  ;;  %3493 = vmatprep.subr.bf16.mxu1 %v7575_v9  ;;  %v981_v5 = vld [vmem:[#allocation8 + $0x8f8] sm:$0xff]  ;;  %v7637_v7 = vcombine.high %v976_v3, %v980_v57  ;;  %v984_v9 = vld [vmem:[#allocation8 + $0x910] sm:$0xff] }
 0x2ec   : > { %v7639_v8 = vcombine.high %v977_v4, %v981_v5  ;;  %v7638_v14 = vcombine.low %v977_v4, %v981_v5  ;;  %v7645_v16 = vcombine.high %v984_v9, %v988_v10  ;;  %v1044_v4 = vld [vmem:[#allocation8 + $0xaf0] sm:$0xff]  ;;  %v1041_v5 = vld [vmem:[#allocation8 + $0xad8] sm:$0xff] }
 0x2ee   : > { %3371 = vmatpush1.bf16.msra.mxu0 %v7572_v11  ;;  %3494 = vmatpush1.bf16.msra.mxu1 %v7574_v53  ;;  %v985_v11 = vld [vmem:[#allocation8 + $0x918] sm:$0xff] }
 0x2ef   : > { %3372 = vmatprep.subr.bf16.mxu0 %v7581_v13  ;;  %3495 = vmatprep.subr.bf16.mxu1 %v7583_v17  ;;  %v989_v53 = vld [vmem:[#allocation8 + $0x938] sm:$0xff]  ;;  %v7636_v13 = vcombine.low %v976_v3, %v980_v57  ;;  %v992_v17 = vld [vmem:[#allocation8 + $0x950] sm:$0xff] }
 0x2f0   : > { %v1040_v57 = vld [vmem:[#allocation8 + $0xad0] sm:$0xff] }
 0x2f2   : > { %3373 = vmatpush1.bf16.msra.mxu0 %v7580_v20  ;;  %3496 = vmatpush1.bf16.msra.mxu1 %v7582_v21  ;;  %v997_v20 = vld [vmem:[#allocation8 + $0x978] sm:$0xff]  ;;  %v7644_v21 = vcombine.low %v984_v9, %v988_v10  ;;  %v1048_v10 = vld [vmem:[#allocation8 + $0xb10] sm:$0xff] }
 0x2f3   : > { %3374 = vmatprep.subr.bf16.mxu0 %v7589_v22  ;;  %3497 = vmatprep.subr.bf16.mxu1 %v7591_v23  ;;  %v7646_v22 = vcombine.low %v985_v11, %v989_v53  ;;  %v7653_v23 = vcombine.high %v992_v17, %v996_v18  ;;  %v7655_v26 = vcombine.high %v993_v19, %v997_v20 }
 0x2f6   : > { %3375 = vmatpush1.bf16.msra.mxu0 %v7588_v30  ;;  %3498 = vmatpush1.bf16.msra.mxu1 %v7590_v31  ;;  %v1005_v30 = vld [vmem:[#allocation8 + $0x9b8] sm:$0xff]  ;;  %v7652_v31 = vcombine.low %v992_v17, %v996_v18  ;;  %v1056_v18 = vld [vmem:[#allocation8 + $0xb50] sm:$0xff] }
 0x2f7   : > { %3376 = vmatprep.subr.bf16.mxu0 %v7597_v32  ;;  %3499 = vmatprep.subr.bf16.mxu1 %v7599_v33  ;;  %v7654_v32 = vcombine.low %v993_v19, %v997_v20  ;;  %v7661_v33 = vcombine.high %v1000_v27, %v1004_v28  ;;  %v7663_v15 = vcombine.high %v1001_v29, %v1005_v30  ;;  %v1060_v19 = vld [vmem:[#allocation8 + $0xb70] sm:$0xff]  ;;  %v1057_v20 = vld [vmem:[#allocation8 + $0xb58] sm:$0xff] }
 0x2fa   : > { %3377 = vmatpush1.bf16.msra.mxu0 %v7596_v39  ;;  %3500 = vmatpush1.bf16.msra.mxu1 %v7598_v40  ;;  %v1013_v39 = vld [vmem:[#allocation8 + $0x9f8] sm:$0xff]  ;;  %v7660_v40 = vcombine.low %v1000_v27, %v1004_v28  ;;  %v1064_v28 = vld [vmem:[#allocation8 + $0xb90] sm:$0xff] }
 0x2fb   : > { %3378 = vmatprep.subr.bf16.mxu0 %v7605_v41  ;;  %3501 = vmatprep.subr.bf16.mxu1 %v7607_v42  ;;  %v7662_v41 = vcombine.low %v1001_v29, %v1005_v30  ;;  %v7669_v42 = vcombine.high %v1008_v35, %v1012_v36  ;;  %v7671_v43 = vcombine.high %v1009_v37, %v1013_v39  ;;  %v1068_v29 = vld [vmem:[#allocation8 + $0xbb0] sm:$0xff]  ;;  %v1065_v30 = vld [vmem:[#allocation8 + $0xb98] sm:$0xff] }
 0x2fe   : > { %3379 = vmatpush1.bf16.msra.mxu0 %v7604_v47  ;;  %3502 = vmatpush1.bf16.msra.mxu1 %v7606_v24  ;;  %v1021_v47 = vld [vmem:[#allocation8 + $0xa38] sm:$0xff]  ;;  %v7668_v24 = vcombine.low %v1008_v35, %v1012_v36  ;;  %v1072_v36 = vld [vmem:[#allocation8 + $0xbd0] sm:$0xff] }
 0x2ff   : > { %3389 = vmatprep.subr.bf16.mxu0 %v7613_v48  ;;  %3512 = vmatprep.subr.bf16.mxu1 %v7615_v49  ;;  %v7670_v48 = vcombine.low %v1009_v37, %v1013_v39  ;;  %v7677_v49 = vcombine.high %v1016_v44, %v1020_v45  ;;  %v7679_v50 = vcombine.high %v1017_v46, %v1021_v47  ;;  %v1076_v37 = vld [vmem:[#allocation8 + $0xbf0] sm:$0xff]  ;;  %v1073_v39 = vld [vmem:[#allocation8 + $0xbd8] sm:$0xff] }
 0x301   : > { %3381 = vmatmul.mubr.bf16.vlgmr.msra.gmra.mrb[4].mxu0 %v10128_v25  ;;  %3504 = vmatmul.mubr.bf16.vlgmr.msra.gmra.mrb[4].mxu1 %v10128_v25  ;;  %v7630_v25 = vcombine.low %v969_v62, %v973_v63  ;;  %v1036_v62 = vld [vmem:[#allocation8 + $0xab0] sm:$0xff]  ;;  %v1033_v63 = vld [vmem:[#allocation8 + $0xa98] sm:$0xff] }
 0x302   : > { %3390 = vmatpush1.bf16.msra.mxu0 %v7612_v55  ;;  %3513 = vmatpush1.bf16.msra.mxu1 %v7614_v56  ;;  %v1029_v55 = vld [vmem:[#allocation8 + $0xa78] sm:$0xff]  ;;  %v7676_v56 = vcombine.low %v1016_v44, %v1020_v45  ;;  %v7732_v45 = vcombine.low %v1072_v36, %v1076_v37 }
 0x303   : > { %3391 = vmatprep.subr.bf16.mxu0 %v7621_v58  ;;  %3514 = vmatprep.subr.bf16.mxu1 %v7623_v59  ;;  %v7678_v58 = vcombine.low %v1017_v46, %v1021_v47  ;;  %v7685_v59 = vcombine.high %v1024_v51, %v1028_v52  ;;  %v7687_v60 = vcombine.high %v1025_v54, %v1029_v55  ;;  %v8537_v47 = vld [vmem:[#allocation13 + $0x4] ss:$16 sps:$4 sm:$0xff]  }
 0x304   : > { %3421 = vmatprep.mubr.bf16.mxu0 %v10132_v34  ;;  %3544 = vmatprep.mubr.bf16.mxu1 %v10132_v34  ;;  %v7647_v34 = vcombine.high %v985_v11, %v989_v53  ;;  %v1052_v11 = vld [vmem:[#allocation8 + $0xb30] sm:$0xff]  ;;  %v1049_v53 = vld [vmem:[#allocation8 + $0xb18] sm:$0xff] }
 0x306   : > { %3392 = vmatpush1.bf16.msra.mxu0 %v7620_v0  ;;  %3515 = vmatpush1.bf16.msra.mxu1 %v7622_v1  ;;  %v1037_v0 = vld [vmem:[#allocation8 + $0xab8] sm:$0xff]  ;;  %v7684_v1 = vcombine.low %v1024_v51, %v1028_v52  ;;  %v8546_v51 = vld [vmem:[#allocation13 + $0x2c] ss:$16 sps:$4 sm:$0xff]  }
 0x307   : > { %3393 = vmatprep.subr.bf16.mxu0 %v7629_v2  ;;  %3516 = vmatprep.subr.bf16.mxu1 %v7631_v12  ;;  %v7686_v2 = vcombine.low %v1025_v54, %v1029_v55  ;;  %v7693_v12 = vcombine.high %v1032_v61, %v1036_v62  ;;  %v7695_v3 = vcombine.high %v1033_v63, %v1037_v0  ;;  %v8541_v52 = vld [vmem:[#allocation13 + $0x20] ss:$16 sps:$4 sm:$0xff]   ;;  %v8544_v54 = vld [vmem:[#allocation13 + $0x28] ss:$16 sps:$4 sm:$0xff]   ;;  %v8549_v55 = vld [vmem:[#allocation13 + $0x44] ss:$16 sps:$4 sm:$0xff]  }
 0x30a   : > { %3394 = vmatpush1.bf16.msra.mxu0 %v7628_v6  ;;  %3517 = vmatpush1.bf16.msra.mxu1 %v7630_v25  ;;  %v1045_v6 = vld [vmem:[#allocation8 + $0xaf8] sm:$0xff]  ;;  %v7692_v25 = vcombine.low %v1032_v61, %v1036_v62  ;;  %v8558_v62 = vld [vmem:[#allocation13 + $0x6c] ss:$16 sps:$4 sm:$0xff]  }
 0x30b   : > { %3395 = vmatprep.subr.bf16.mxu0 %v7637_v7  ;;  %3518 = vmatprep.subr.bf16.mxu1 %v7639_v8  ;;  %v7694_v7 = vcombine.low %v1033_v63, %v1037_v0  ;;  %v7701_v8 = vcombine.high %v1040_v57, %v1044_v4  ;;  %v7703_v9 = vcombine.high %v1041_v5, %v1045_v6  ;;  %v8555_v61 = vld [vmem:[#allocation13 + $0x64] ss:$16 sps:$4 sm:$0xff]   ;;  %v8553_v63 = vld [vmem:[#allocation13 + $0x60] ss:$16 sps:$4 sm:$0xff]   ;;  %v8556_v0 = vld [vmem:[#allocation13 + $0x68] ss:$16 sps:$4 sm:$0xff]  }
 0x30e   : > { %3396 = vmatpush1.bf16.msra.mxu0 %v7636_v13  ;;  %3519 = vmatpush1.bf16.msra.mxu1 %v7638_v14  ;;  %v1053_v13 = vld [vmem:[#allocation8 + $0xb38] sm:$0xff]  ;;  %v7700_v14 = vcombine.low %v1040_v57, %v1044_v4  ;;  %v8562_v57 = vld [vmem:[#allocation13 + $0x88] ss:$16 sps:$4 sm:$0xff]  }
 0x30f   : > { %3397 = vmatprep.subr.bf16.mxu0 %v7645_v16  ;;  %3520 = vmatprep.subr.bf16.mxu1 %v7647_v34  ;;  %v7702_v16 = vcombine.low %v1041_v5, %v1045_v6  ;;  %v7709_v34 = vcombine.high %v1048_v10, %v1052_v11  ;;  %v7711_v17 = vcombine.high %v1049_v53, %v1053_v13  ;;  %v10161_v4 = vld [vmem:[#allocation10] sm:$0xff]  ;;  %v8567_v5 = vld [vmem:[#allocation13 + $0xa4] ss:$16 sps:$4 sm:$0xff]  }
 0x310   : > { %v8570_v6 = vld [vmem:[#allocation13 + $0xac] ss:$16 sps:$4 sm:$0xff]  }
 0x312   : > { %3398 = vmatpush1.bf16.msra.mxu0 %v7644_v21  ;;  %3521 = vmatpush1.bf16.msra.mxu1 %v7646_v22  ;;  %v1061_v21 = vld [vmem:[#allocation8 + $0xb78] sm:$0xff]  ;;  %v7708_v22 = vcombine.low %v1048_v10, %v1052_v11  ;;  %v8576_v11 = vld [vmem:[#allocation13 + $0xcc] ss:$16 sps:$4 sm:$0xff]  }
 0x313   : > { %3399 = vmatprep.subr.bf16.mxu0 %v7653_v23  ;;  %3522 = vmatprep.subr.bf16.mxu1 %v7655_v26  ;;  %v7710_v23 = vcombine.low %v1049_v53, %v1053_v13  ;;  %v7717_v26 = vcombine.high %v1056_v18, %v1060_v19  ;;  %v7719_v27 = vcombine.high %v1057_v20, %v1061_v21 }
 0x316   : > { %3400 = vmatpush1.bf16.msra.mxu0 %v7652_v31  ;;  %3523 = vmatpush1.bf16.msra.mxu1 %v7654_v32  ;;  %v1069_v31 = vld [vmem:[#allocation8 + $0xbb8] sm:$0xff]  ;;  %v7716_v32 = vcombine.low %v1056_v18, %v1060_v19 }
 0x317   : > { %3401 = vmatprep.subr.bf16.mxu0 %v7661_v33  ;;  %3524 = vmatprep.subr.bf16.mxu1 %v7663_v15  ;;  %v7718_v33 = vcombine.low %v1057_v20, %v1061_v21  ;;  %v7725_v15 = vcombine.high %v1064_v28, %v1068_v29  ;;  %v7727_v35 = vcombine.high %v1065_v30, %v1069_v31  ;;  %v8574_v20 = vld [vmem:[#allocation13 + $0xc8] ss:$16 sps:$4 sm:$0xff]  }
 0x31a   : > { %3402 = vmatpush1.bf16.msra.mxu0 %v7660_v40  ;;  %3525 = vmatpush1.bf16.msra.mxu1 %v7662_v41  ;;  %v1077_v40 = vld [vmem:[#allocation8 + $0xbf8] sm:$0xff]  ;;  %v7724_v41 = vcombine.low %v1064_v28, %v1068_v29  ;;  %v8580_v28 = vld [vmem:[#allocation13 + $0xe8] ss:$16 sps:$4 sm:$0xff]  }
 0x31b   : > { %3403 = vmatprep.subr.bf16.mxu0 %v7669_v42  ;;  %3526 = vmatprep.subr.bf16.mxu1 %v7671_v43  ;;  %v7726_v42 = vcombine.low %v1065_v30, %v1069_v31  ;;  %v7733_v43 = vcombine.high %v1072_v36, %v1076_v37  ;;  %v7735_v44 = vcombine.high %v1073_v39, %v1077_v40  ;;  %v8585_v29 = vld [vmem:[#allocation13 + $0x104] ss:$16 sps:$4 sm:$0xff]   ;;  %v8588_v30 = vld [vmem:[#allocation13 + $0x10c] ss:$16 sps:$4 sm:$0xff]   ;;  %v8583_v31 = vld [vmem:[#allocation13 + $0x100] ss:$16 sps:$4 sm:$0xff]  }
 0x31c   : > { %v7734_v46 = vcombine.low %v1073_v39, %v1077_v40  ;;  %v8592_v36 = vld [vmem:[#allocation13 + $0x128] ss:$16 sps:$4 sm:$0xff]   ;;  %v8597_v37 = vld [vmem:[#allocation13 + $0x144] ss:$16 sps:$4 sm:$0xff]   ;;  %v8600_v39 = vld [vmem:[#allocation13 + $0x14c] ss:$16 sps:$4 sm:$0xff]  }
 0x31d   : > { %v8595_v40 = vld [vmem:[#allocation13 + $0x140] ss:$16 sps:$4 sm:$0xff]  }
 0x31e   : > { %3404 = vmatpush1.bf16.msra.mxu0 %v7668_v24  ;;  %3527 = vmatpush1.bf16.msra.mxu1 %v7670_v48  ;;  %v8540_v24 = vld [vmem:[#allocation13 + $0xc] ss:$16 sps:$4 sm:$0xff]   ;;  %v8535_v48 = vld [vmem:[#allocation13] ss:$16 sps:$4 sm:$0xff]  }
 0x31f   : > { %3405 = vmatprep.subr.bf16.mxu0 %v7677_v49  ;;  %3528 = vmatprep.subr.bf16.mxu1 %v7679_v50  ;;  %v8538_v49 = vld [vmem:[#allocation13 + $0x8] ss:$16 sps:$4 sm:$0xff]   ;;  %v8543_v50 = vld [vmem:[#allocation13 + $0x24] ss:$16 sps:$4 sm:$0xff]  }
 0x322   : > { %3406 = vmatpush1.bf16.msra.mxu0 %v7676_v56  ;;  %3529 = vmatpush1.bf16.msra.mxu1 %v7678_v58  ;;  %v8552_v56 = vld [vmem:[#allocation13 + $0x4c] ss:$16 sps:$4 sm:$0xff]   ;;  %v8547_v58 = vld [vmem:[#allocation13 + $0x40] ss:$16 sps:$4 sm:$0xff]  }
 0x323   : > { %3407 = vmatprep.subr.bf16.mxu0 %v7685_v59  ;;  %3530 = vmatprep.subr.bf16.mxu1 %v7687_v60  ;;  %v1080_v59 = vlaneseq  ;;  %v8550_v60 = vld [vmem:[#allocation13 + $0x48] ss:$16 sps:$4 sm:$0xff]  }
 0x326   : > { %3408 = vmatpush1.bf16.msra.mxu0 %v7684_v1  ;;  %3531 = vmatpush1.bf16.msra.mxu1 %v7686_v2  ;;  %v8561_v1 = vld [vmem:[#allocation13 + $0x84] ss:$16 sps:$4 sm:$0xff]   ;;  %v8564_v2 = vld [vmem:[#allocation13 + $0x8c] ss:$16 sps:$4 sm:$0xff]  }
 0x327   : > { %3409 = vmatprep.subr.bf16.mxu0 %v7693_v12  ;;  %3532 = vmatprep.subr.bf16.mxu1 %v7695_v3  ;;  %v8559_v12 = vld [vmem:[#allocation13 + $0x80] ss:$16 sps:$4 sm:$0xff]  }
 0x32a   : > { %3410 = vmatpush1.bf16.msra.mxu0 %v7692_v25  ;;  %3533 = vmatpush1.bf16.msra.mxu1 %v7694_v7  ;;  %v8565_v7 = vld [vmem:[#allocation13 + $0xa0] ss:$16 sps:$4 sm:$0xff]  }
 0x32b   : > { %3411 = vmatprep.subr.bf16.mxu0 %v7701_v8  ;;  %3534 = vmatprep.subr.bf16.mxu1 %v7703_v9  ;;  %v8568_v8 = vld [vmem:[#allocation13 + $0xa8] ss:$16 sps:$4 sm:$0xff]   ;;  %v8573_v9 = vld [vmem:[#allocation13 + $0xc4] ss:$16 sps:$4 sm:$0xff]  }
 0x32e   : > { %3412 = vmatpush1.bf16.msra.mxu0 %v7700_v14  ;;  %3535 = vmatpush1.bf16.msra.mxu1 %v7702_v16 }
 0x32f   : > { %3413 = vmatprep.subr.bf16.mxu0 %v7709_v34  ;;  %3536 = vmatprep.subr.bf16.mxu1 %v7711_v17  ;;  %v8571_v17 = vld [vmem:[#allocation13 + $0xc0] ss:$16 sps:$4 sm:$0xff]  }
 0x332   : > { %3414 = vmatpush1.bf16.msra.mxu0 %v7708_v22  ;;  %3537 = vmatpush1.bf16.msra.mxu1 %v7710_v23  ;;  %v8579_v23 = vld [vmem:[#allocation13 + $0xe4] ss:$16 sps:$4 sm:$0xff]  }
 0x333   : > { %3415 = vmatprep.subr.bf16.mxu0 %v7717_v26  ;;  %3538 = vmatprep.subr.bf16.mxu1 %v7719_v27  ;;  %v8582_v26 = vld [vmem:[#allocation13 + $0xec] ss:$16 sps:$4 sm:$0xff]   ;;  %v8577_v27 = vld [vmem:[#allocation13 + $0xe0] ss:$16 sps:$4 sm:$0xff]  }
 0x336   : > { %3416 = vmatpush1.bf16.msra.mxu0 %v7716_v32  ;;  %3539 = vmatpush1.bf16.msra.mxu1 %v7718_v33  ;;  %v8586_v32 = vld [vmem:[#allocation13 + $0x108] ss:$16 sps:$4 sm:$0xff]   ;;  %v8591_v33 = vld [vmem:[#allocation13 + $0x124] ss:$16 sps:$4 sm:$0xff]  }
 0x337   : > { %3417 = vmatprep.subr.bf16.mxu0 %v7725_v15  ;;  %3540 = vmatprep.subr.bf16.mxu1 %v7727_v35  ;;  %v8594_v15 = vld [vmem:[#allocation13 + $0x12c] ss:$16 sps:$4 sm:$0xff]   ;;  %v8589_v35 = vld [vmem:[#allocation13 + $0x120] ss:$16 sps:$4 sm:$0xff]  }
 0x33a   : > { %3418 = vmatpush1.bf16.msra.mxu0 %v7724_v41  ;;  %3541 = vmatpush1.bf16.msra.mxu1 %v7726_v42  ;;  %v8598_v41 = vld [vmem:[#allocation13 + $0x148] ss:$16 sps:$4 sm:$0xff]   ;;  %v8603_v42 = vld [vmem:[#allocation13 + $0x164] ss:$16 sps:$4 sm:$0xff]  }
 0x33b   : > { %3419 = vmatprep.subr.bf16.mxu0 %v7733_v43  ;;  %3542 = vmatprep.subr.bf16.mxu1 %v7735_v44  ;;  %v8606_v43 = vld [vmem:[#allocation13 + $0x16c] ss:$16 sps:$4 sm:$0xff]   ;;  %v8601_v44 = vld [vmem:[#allocation13 + $0x160] ss:$16 sps:$4 sm:$0xff]  }
 0x33e   : > { %3420 = vmatpush1.bf16.msra.mxu0 %v7732_v45  ;;  %3543 = vmatpush1.bf16.msra.mxu1 %v7734_v46  ;;  %v8604_v45 = vld [vmem:[#allocation13 + $0x168] ss:$16 sps:$4 sm:$0xff]   ;;  %v8609_v46 = vld [vmem:[#allocation13 + $0x184] ss:$16 sps:$4 sm:$0xff]  }
 0x33f   : > { %5109 = vmatprep.subr.bf16.mxu0 %v8537_v47  ;;  %5273 = vmatprep.subr.bf16.mxu1 %v8540_v24  ;;  %v8612_v47 = vld [vmem:[#allocation13 + $0x18c] ss:$16 sps:$4 sm:$0xff]   ;;  %v8607_v24 = vld [vmem:[#allocation13 + $0x180] ss:$16 sps:$4 sm:$0xff]  }
 0x341   : > { %3422 = vmatmul.mubr.bf16.vlgmr.msra.gmra.mrb[4].mxu0 %v10140_v38  ;;  %3545 = vmatmul.mubr.bf16.vlgmr.msra.gmra.mrb[4].mxu1 %v10140_v38  ;;  %v10156_v38 = vshrl.u32 %v1080_v59, 7  ;;  %v8619_v59 = vld [vmem:[#allocation13 + $0x1c0] ss:$16 sps:$4 sm:$0xff]  }
 0x342   : > { %5110 = vmatpush1.bf16.msra.mxu0 %v8535_v48  ;;  %5274 = vmatpush1.bf16.msra.mxu1 %v8538_v49  ;;  %v8610_v48 = vld [vmem:[#allocation13 + $0x188] ss:$16 sps:$4 sm:$0xff]   ;;  %v8615_v49 = vld [vmem:[#allocation13 + $0x1a4] ss:$16 sps:$4 sm:$0xff]  }
 0x343   : > { %5111 = vmatprep.subr.bf16.mxu0 %v8543_v50  ;;  %5275 = vmatprep.subr.bf16.mxu1 %v8546_v51  ;;  %v10159_v3 = vsub.s32 1, %v10156_v38  ;;  %v8618_v50 = vld [vmem:[#allocation13 + $0x1ac] ss:$16 sps:$4 sm:$0xff]   ;;  %v8613_v51 = vld [vmem:[#allocation13 + $0x1a0] ss:$16 sps:$4 sm:$0xff]  }
 0x345   : > { %v1087_v25 = vrot.slane %v10161_v4, %v10159_v3 }
 0x346   : > { %5112 = vmatpush1.bf16.msra.mxu0 %v8541_v52  ;;  %5276 = vmatpush1.bf16.msra.mxu1 %v8544_v54  ;;  %v10172_v52 = vsub.s32 0, %v10156_v38  ;;  %v8616_v54 = vld [vmem:[#allocation13 + $0x1a8] ss:$16 sps:$4 sm:$0xff]  }
 0x347   : > { %5113 = vmatprep.subr.bf16.mxu0 %v8549_v55  ;;  %5277 = vmatprep.subr.bf16.mxu1 %v8552_v56  ;;  %v8621_v55 = vld [vmem:[#allocation13 + $0x1c4] ss:$16 sps:$4 sm:$0xff]   ;;  %v8624_v56 = vld [vmem:[#allocation13 + $0x1cc] ss:$16 sps:$4 sm:$0xff]  }
 0x34a   : > { %5114 = vmatpush1.bf16.msra.mxu0 %v8547_v58  ;;  %5278 = vmatpush1.bf16.msra.mxu1 %v8550_v60  ;;  %v1094_v58 = vsub.s32 3, %v10156_v38  ;;  %v1083_v60 = vrot.slane %v10161_v4, %v10172_v52 }
 0x34b   : > { %5115 = vmatprep.subr.bf16.mxu0 %v8555_v61  ;;  %5279 = vmatprep.subr.bf16.mxu1 %v8558_v62  ;;  %v8622_v61 = vld [vmem:[#allocation13 + $0x1c8] ss:$16 sps:$4 sm:$0xff]   ;;  %v8627_v62 = vld [vmem:[#allocation13 + $0x1e4] ss:$16 sps:$4 sm:$0xff]  }
 0x34e   : > { %5116 = vmatpush1.bf16.msra.mxu0 %v8553_v63  ;;  %5280 = vmatpush1.bf16.msra.mxu1 %v8556_v0  ;;  %v8630_v63 = vld [vmem:[#allocation13 + $0x1ec] ss:$16 sps:$4 sm:$0xff]   ;;  %v1095_v0 = vrot.slane %v10161_v4, %v1094_v58 }
 0x34f   : > { %5117 = vmatprep.subr.bf16.mxu0 %v8561_v1  ;;  %5281 = vmatprep.subr.bf16.mxu1 %v8564_v2  ;;  %v8625_v1 = vld [vmem:[#allocation13 + $0x1e0] ss:$16 sps:$4 sm:$0xff]  }
 0x352   : > { %5118 = vmatpush1.bf16.msra.mxu0 %v8559_v12  ;;  %5282 = vmatpush1.bf16.msra.mxu1 %v8562_v57  ;;  %v8628_v12 = vld [vmem:[#allocation13 + $0x1e8] ss:$16 sps:$4 sm:$0xff]   ;;  %v8633_v57 = vld [vmem:[#allocation13 + $0x204] ss:$16 sps:$4 sm:$0xff]  }
 0x353   : > { %5119 = vmatprep.subr.bf16.mxu0 %v8567_v5  ;;  %5283 = vmatprep.subr.bf16.mxu1 %v8570_v6  ;;  %v8636_v5 = vld [vmem:[#allocation13 + $0x20c] ss:$16 sps:$4 sm:$0xff]  }
 0x354   : > { %v10165_v10 = vpop.f32.mrb[0].mxu0  ;;  %v10167_v53 = vpop.f32.mrb[0].mxu1 }
 0x355   : > { %v3179_v13 = vpop.f32.mrb[1].mxu0  ;;  %v10169_v16 = vpop.f32.mrb[1].mxu1  ;;  %v8282_v2 = vadd.f32 %v10165_v10, %v1083_v60  ;;  %v8637_v10 = vld [vmem:[#allocation13 + $0x220] ss:$16 sps:$4 sm:$0xff]   ;;  %v8700_v60 = vld [vmem:[#allocation13 + $0x368] ss:$16 sps:$4 sm:$0xff]  }
 0x356   : > { %v8283_v14 = vadd.f32 %v3179_v13, %v1087_v25  ;;  %v3181_v34 = vpop.f32.mrb[2].mxu0  ;;  %5120 = vmatpush1.bf16.msra.mxu0 %v8565_v7  ;;  %v3304_v18 = vpop.f32.mrb[2].mxu1  ;;  %5284 = vmatpush1.bf16.msra.mxu1 %v8568_v8  ;;  %v8285_v6 = vadd.f32 %v10169_v16, %v1095_v0  ;;  %v8631_v25 = vld [vmem:[#allocation13 + $0x200] ss:$16 sps:$4 sm:$0xff]   ;;  %v8634_v8 = vld [vmem:[#allocation13 + $0x208] ss:$16 sps:$4 sm:$0xff]  }
 0x357   : > { %v3182_v19 = vpop.f32.mrb[3].mxu0  ;;  %5121 = vmatprep.subr.bf16.mxu0 %v8573_v9  ;;  %v3305_v22 = vpop.f32.mrb[3].mxu1  ;;  %5285 = vmatprep.subr.bf16.mxu1 %v8576_v11  ;;  %v3565_v7 = vpack.c.bf16 %v8282_v2, %v8282_v2  ;;  %v8639_v9 = vld [vmem:[#allocation13 + $0x224] ss:$16 sps:$4 sm:$0xff]   ;;  %v8642_v13 = vld [vmem:[#allocation13 + $0x22c] ss:$16 sps:$4 sm:$0xff]  }
 0x358   : > { %v3566_v21 = vpack.c.bf16 %v8283_v14, %v8283_v14  ;;  %v3568_v11 = vpack.c.bf16 %v8285_v6, %v8285_v6  ;;  %v8640_v14 = vld [vmem:[#allocation13 + $0x228] ss:$16 sps:$4 sm:$0xff]   ;;  %v8645_v34 = vld [vmem:[#allocation13 + $0x244] ss:$16 sps:$4 sm:$0xff]   ;;  %v8648_v16 = vld [vmem:[#allocation13 + $0x24c] ss:$16 sps:$4 sm:$0xff]  }
 0x359   : > { %v8646_v18 = vld [vmem:[#allocation13 + $0x248] ss:$16 sps:$4 sm:$0xff]   ;;  %v8651_v19 = vld [vmem:[#allocation13 + $0x264] ss:$16 sps:$4 sm:$0xff]   ;;  %v8714_v2 = vld [vmem:[#allocation13 + $0x3ac] ss:$16 sps:$4 sm:$0xff]  }
 0x35a   : > { %5122 = vmatpush1.bf16.msra.mxu0 %v8571_v17  ;;  %5141 = vmatprep.mubr.bf16.mxu0 %v3566_v21  ;;  %v8643_v17 = vld [vmem:[#allocation13 + $0x240] ss:$16 sps:$4 sm:$0xff]   ;;  %v8652_v22 = vld [vmem:[#allocation13 + $0x268] ss:$16 sps:$4 sm:$0xff]   ;;  %v8717_v6 = vld [vmem:[#allocation13 + $0x3c4] ss:$16 sps:$4 sm:$0xff]  }
 0x35b   : > { %5286 = vmatpush1.bf16.msra.mxu1 %v8574_v20  ;;  %5305 = vmatprep.mubr.bf16.mxu1 %v3566_v21  ;;  %v8654_v20 = vld [vmem:[#allocation13 + $0x26c] ss:$16 sps:$4 sm:$0xff]   ;;  %v8649_v21 = vld [vmem:[#allocation13 + $0x260] ss:$16 sps:$4 sm:$0xff]   ;;  %v8706_v0 = vld [vmem:[#allocation13 + $0x388] ss:$16 sps:$4 sm:$0xff]  }
 0x35c   : > { %5123 = vmatprep.subr.bf16.mxu0 %v8579_v23  ;;  %5287 = vmatprep.subr.bf16.mxu1 %v8582_v26  ;;  %v8657_v23 = vld [vmem:[#allocation13 + $0x284] ss:$16 sps:$4 sm:$0xff]   ;;  %v8660_v26 = vld [vmem:[#allocation13 + $0x28c] ss:$16 sps:$4 sm:$0xff]  }
 0x35e   : > { %5124 = vmatpush1.bf16.msra.mxu0 %v8577_v27  ;;  %v8655_v27 = vld [vmem:[#allocation13 + $0x280] ss:$16 sps:$4 sm:$0xff]  }
 0x35f   : > { %5288 = vmatpush1.bf16.msra.mxu1 %v8580_v28  ;;  %5125 = vmatprep.subr.bf16.mxu0 %v8585_v29  ;;  %v8658_v28 = vld [vmem:[#allocation13 + $0x288] ss:$16 sps:$4 sm:$0xff]   ;;  %v8663_v29 = vld [vmem:[#allocation13 + $0x2a4] ss:$16 sps:$4 sm:$0xff]  }
 0x360   : > { %5289 = vmatprep.subr.bf16.mxu1 %v8588_v30  ;;  %v8666_v30 = vld [vmem:[#allocation13 + $0x2ac] ss:$16 sps:$4 sm:$0xff]  }
 0x362   : > { %5126 = vmatpush1.bf16.msra.mxu0 %v8583_v31  ;;  %v8661_v31 = vld [vmem:[#allocation13 + $0x2a0] ss:$16 sps:$4 sm:$0xff]  }
 0x363   : > { %5290 = vmatpush1.bf16.msra.mxu1 %v8586_v32  ;;  %5127 = vmatprep.subr.bf16.mxu0 %v8591_v33  ;;  %v8664_v32 = vld [vmem:[#allocation13 + $0x2a8] ss:$16 sps:$4 sm:$0xff]   ;;  %v8669_v33 = vld [vmem:[#allocation13 + $0x2c4] ss:$16 sps:$4 sm:$0xff]  }
 0x364   : > { %5291 = vmatprep.subr.bf16.mxu1 %v8594_v15  ;;  %v8672_v15 = vld [vmem:[#allocation13 + $0x2cc] ss:$16 sps:$4 sm:$0xff]  }
 0x366   : > { %5128 = vmatpush1.bf16.msra.mxu0 %v8589_v35  ;;  %v8667_v35 = vld [vmem:[#allocation13 + $0x2c0] ss:$16 sps:$4 sm:$0xff]  }
 0x367   : > { %5292 = vmatpush1.bf16.msra.mxu1 %v8592_v36  ;;  %5129 = vmatprep.subr.bf16.mxu0 %v8597_v37  ;;  %v8670_v36 = vld [vmem:[#allocation13 + $0x2c8] ss:$16 sps:$4 sm:$0xff]   ;;  %v8675_v37 = vld [vmem:[#allocation13 + $0x2e4] ss:$16 sps:$4 sm:$0xff]  }
 0x368   : > { %5293 = vmatprep.subr.bf16.mxu1 %v8600_v39  ;;  %v8678_v39 = vld [vmem:[#allocation13 + $0x2ec] ss:$16 sps:$4 sm:$0xff]  }
 0x36a   : > { %5130 = vmatpush1.bf16.msra.mxu0 %v8595_v40  ;;  %v8673_v40 = vld [vmem:[#allocation13 + $0x2e0] ss:$16 sps:$4 sm:$0xff]  }
 0x36b   : > { %5294 = vmatpush1.bf16.msra.mxu1 %v8598_v41  ;;  %5131 = vmatprep.subr.bf16.mxu0 %v8603_v42  ;;  %v8676_v41 = vld [vmem:[#allocation13 + $0x2e8] ss:$16 sps:$4 sm:$0xff]   ;;  %v8681_v42 = vld [vmem:[#allocation13 + $0x304] ss:$16 sps:$4 sm:$0xff]  }
 0x36c   : > { %5295 = vmatprep.subr.bf16.mxu1 %v8606_v43  ;;  %v8684_v43 = vld [vmem:[#allocation13 + $0x30c] ss:$16 sps:$4 sm:$0xff]  }
 0x36e   : > { %5132 = vmatpush1.bf16.msra.mxu0 %v8601_v44  ;;  %v8679_v44 = vld [vmem:[#allocation13 + $0x300] ss:$16 sps:$4 sm:$0xff]  }
 0x36f   : > { %5296 = vmatpush1.bf16.msra.mxu1 %v8604_v45  ;;  %5133 = vmatprep.subr.bf16.mxu0 %v8609_v46  ;;  %v8682_v45 = vld [vmem:[#allocation13 + $0x308] ss:$16 sps:$4 sm:$0xff]   ;;  %v8687_v46 = vld [vmem:[#allocation13 + $0x324] ss:$16 sps:$4 sm:$0xff]  }
 0x370   : > { %5297 = vmatprep.subr.bf16.mxu1 %v8612_v47  ;;  %v8690_v47 = vld [vmem:[#allocation13 + $0x32c] ss:$16 sps:$4 sm:$0xff]  }
 0x372   : > { %5134 = vmatpush1.bf16.msra.mxu0 %v8607_v24  ;;  %v8685_v24 = vld [vmem:[#allocation13 + $0x320] ss:$16 sps:$4 sm:$0xff]  }
 0x373   : > { %5298 = vmatpush1.bf16.msra.mxu1 %v8610_v48  ;;  %5135 = vmatprep.subr.bf16.mxu0 %v8615_v49  ;;  %v8688_v48 = vld [vmem:[#allocation13 + $0x328] ss:$16 sps:$4 sm:$0xff]   ;;  %v8693_v49 = vld [vmem:[#allocation13 + $0x344] ss:$16 sps:$4 sm:$0xff]  }
 0x374   : > { %5299 = vmatprep.subr.bf16.mxu1 %v8618_v50  ;;  %v8696_v50 = vld [vmem:[#allocation13 + $0x34c] ss:$16 sps:$4 sm:$0xff]  }
 0x376   : > { %5136 = vmatpush1.bf16.msra.mxu0 %v8613_v51  ;;  %v8691_v51 = vld [vmem:[#allocation13 + $0x340] ss:$16 sps:$4 sm:$0xff]  }
 0x377   : > { %5300 = vmatpush1.bf16.msra.mxu1 %v8616_v54  ;;  %5137 = vmatprep.subr.bf16.mxu0 %v8621_v55  ;;  %v8694_v54 = vld [vmem:[#allocation13 + $0x348] ss:$16 sps:$4 sm:$0xff]   ;;  %v8699_v55 = vld [vmem:[#allocation13 + $0x364] ss:$16 sps:$4 sm:$0xff]  }
 0x378   : > { %5301 = vmatprep.subr.bf16.mxu1 %v8624_v56  ;;  %v8702_v56 = vld [vmem:[#allocation13 + $0x36c] ss:$16 sps:$4 sm:$0xff]  }
 0x37a   : > { %5138 = vmatpush1.bf16.msra.mxu0 %v8619_v59  ;;  %v8697_v59 = vld [vmem:[#allocation13 + $0x360] ss:$16 sps:$4 sm:$0xff]  }
 0x37b   : > { %5302 = vmatpush1.bf16.msra.mxu1 %v8622_v61  ;;  %5139 = vmatprep.subr.bf16.mxu0 %v8627_v62  ;;  %v8705_v61 = vld [vmem:[#allocation13 + $0x384] ss:$16 sps:$4 sm:$0xff]   ;;  %v8708_v62 = vld [vmem:[#allocation13 + $0x38c] ss:$16 sps:$4 sm:$0xff]  }
 0x37c   : > { %5303 = vmatprep.subr.bf16.mxu1 %v8630_v63  ;;  %v8703_v63 = vld [vmem:[#allocation13 + $0x380] ss:$16 sps:$4 sm:$0xff]  }
 0x37e   : > { %5140 = vmatpush1.bf16.msra.mxu0 %v8625_v1  ;;  %v8711_v1 = vld [vmem:[#allocation13 + $0x3a4] ss:$16 sps:$4 sm:$0xff]  }
 0x37f   : > { %5304 = vmatpush1.bf16.msra.mxu1 %v8628_v12  ;;  %5150 = vmatprep.subr.bf16.mxu0 %v8633_v57  ;;  %v8709_v12 = vld [vmem:[#allocation13 + $0x3a0] ss:$16 sps:$4 sm:$0xff]   ;;  %v1090_v57 = vsub.s32 2, %v10156_v38 }
 0x380   : > { %5314 = vmatprep.subr.bf16.mxu1 %v8636_v5  ;;  %v8712_v5 = vld [vmem:[#allocation13 + $0x3a8] ss:$16 sps:$4 sm:$0xff]  }
 0x381   : > { %5142 = vmatmul.mubr.bf16.vlgmr.msra.gmra.mrb[8].mxu0 %v3565_v7 }
 0x382   : > { %5306 = vmatmul.mubr.bf16.vlgmr.msra.gmra.mrb[8].mxu1 %v3565_v7  ;;  %5151 = vmatpush1.bf16.msra.mxu0 %v8631_v25  ;;  %v8720_v25 = vld [vmem:[#allocation13 + $0x3cc] ss:$16 sps:$4 sm:$0xff]   ;;  %v8715_v7 = vld [vmem:[#allocation13 + $0x3c0] ss:$16 sps:$4 sm:$0xff]  }
 0x383   : > { %5182 = vmatprep.mubr.bf16.mxu0 %v3568_v11  ;;  %5315 = vmatpush1.bf16.msra.mxu1 %v8634_v8  ;;  %v1091_v8 = vrot.slane %v10161_v4, %v1090_v57 }
 0x384   : > { %5346 = vmatprep.mubr.bf16.mxu1 %v3568_v11  ;;  %5152 = vmatprep.subr.bf16.mxu0 %v8639_v9  ;;  %v8718_v9 = vld [vmem:[#allocation13 + $0x3c8] ss:$16 sps:$4 sm:$0xff]   ;;  %v8723_v11 = vld [vmem:[#allocation13 + $0x3e4] ss:$16 sps:$4 sm:$0xff]  }
 0x385   : > { %5316 = vmatprep.subr.bf16.mxu1 %v8642_v13  ;;  %v8726_v13 = vld [vmem:[#allocation13 + $0x3ec] ss:$16 sps:$4 sm:$0xff]  }
 0x386   : > { %5153 = vmatpush1.bf16.msra.mxu0 %v8637_v10  ;;  %v8721_v10 = vld [vmem:[#allocation13 + $0x3e0] ss:$16 sps:$4 sm:$0xff]  }
 0x387   : > { %5317 = vmatpush1.bf16.msra.mxu1 %v8640_v14  ;;  %5154 = vmatprep.subr.bf16.mxu0 %v8645_v34  ;;  %v8284_v14 = vadd.f32 %v10167_v53, %v1091_v8  ;;  %v8724_v34 = vld [vmem:[#allocation13 + $0x3e8] ss:$16 sps:$4 sm:$0xff]   ;;  %v8799_v8 = vld [vmem:[#allocation13 + $0x580] ss:$16 sps:$4 sm:$0xff]  }
 0x388   : > { %5318 = vmatprep.subr.bf16.mxu1 %v8648_v16  ;;  %v8729_v16 = vld [vmem:[#allocation13 + $0x404] ss:$16 sps:$4 sm:$0xff]   ;;  %v8736_v53 = vld [vmem:[#allocation13 + $0x428] ss:$16 sps:$4 sm:$0xff]  }
 0x38a   : > { %5155 = vmatpush1.bf16.msra.mxu0 %v8643_v17  ;;  %v8732_v17 = vld [vmem:[#allocation13 + $0x40c] ss:$16 sps:$4 sm:$0xff]  }
 0x38b   : > { %5319 = vmatpush1.bf16.msra.mxu1 %v8646_v18  ;;  %5156 = vmatprep.subr.bf16.mxu0 %v8651_v19  ;;  %v8727_v18 = vld [vmem:[#allocation13 + $0x400] ss:$16 sps:$4 sm:$0xff]   ;;  %v3567_v19 = vpack.c.bf16 %v8284_v14, %v8284_v14  ;;  %v8808_v14 = vld [vmem:[#allocation13 + $0x5a8] ss:$16 sps:$4 sm:$0xff]  }
 0x38c   : > { %5320 = vmatprep.subr.bf16.mxu1 %v8654_v20  ;;  %v8730_v20 = vld [vmem:[#allocation13 + $0x408] ss:$16 sps:$4 sm:$0xff]  }
 0x38e   : > { %5157 = vmatpush1.bf16.msra.mxu0 %v8649_v21  ;;  %v8735_v21 = vld [vmem:[#allocation13 + $0x424] ss:$16 sps:$4 sm:$0xff]  }
 0x38f   : > { %5321 = vmatpush1.bf16.msra.mxu1 %v8652_v22  ;;  %5158 = vmatprep.subr.bf16.mxu0 %v8657_v23  ;;  %v8738_v22 = vld [vmem:[#allocation13 + $0x42c] ss:$16 sps:$4 sm:$0xff]   ;;  %v8733_v23 = vld [vmem:[#allocation13 + $0x420] ss:$16 sps:$4 sm:$0xff]  }
 0x390   : > { %5322 = vmatprep.subr.bf16.mxu1 %v8660_v26  ;;  %v8741_v26 = vld [vmem:[#allocation13 + $0x444] ss:$16 sps:$4 sm:$0xff]  }
 0x392   : > { %5159 = vmatpush1.bf16.msra.mxu0 %v8655_v27  ;;  %v8744_v27 = vld [vmem:[#allocation13 + $0x44c] ss:$16 sps:$4 sm:$0xff]  }
 0x393   : > { %5323 = vmatpush1.bf16.msra.mxu1 %v8658_v28  ;;  %5160 = vmatprep.subr.bf16.mxu0 %v8663_v29  ;;  %v8739_v28 = vld [vmem:[#allocation13 + $0x440] ss:$16 sps:$4 sm:$0xff]   ;;  %v8742_v29 = vld [vmem:[#allocation13 + $0x448] ss:$16 sps:$4 sm:$0xff]  }
 0x394   : > { %5324 = vmatprep.subr.bf16.mxu1 %v8666_v30  ;;  %v8747_v30 = vld [vmem:[#allocation13 + $0x464] ss:$16 sps:$4 sm:$0xff]  }
 0x396   : > { %5161 = vmatpush1.bf16.msra.mxu0 %v8661_v31  ;;  %v8750_v31 = vld [vmem:[#allocation13 + $0x46c] ss:$16 sps:$4 sm:$0xff]  }
 0x397   : > { %5325 = vmatpush1.bf16.msra.mxu1 %v8664_v32  ;;  %5162 = vmatprep.subr.bf16.mxu0 %v8669_v33  ;;  %v8745_v32 = vld [vmem:[#allocation13 + $0x460] ss:$16 sps:$4 sm:$0xff]   ;;  %v8748_v33 = vld [vmem:[#allocation13 + $0x468] ss:$16 sps:$4 sm:$0xff]  }
 0x398   : > { %5326 = vmatprep.subr.bf16.mxu1 %v8672_v15  ;;  %v8753_v15 = vld [vmem:[#allocation13 + $0x484] ss:$16 sps:$4 sm:$0xff]  }
 0x39a   : > { %5163 = vmatpush1.bf16.msra.mxu0 %v8667_v35  ;;  %v8756_v35 = vld [vmem:[#allocation13 + $0x48c] ss:$16 sps:$4 sm:$0xff]  }
 0x39b   : > { %5327 = vmatpush1.bf16.msra.mxu1 %v8670_v36  ;;  %5164 = vmatprep.subr.bf16.mxu0 %v8675_v37  ;;  %v8751_v36 = vld [vmem:[#allocation13 + $0x480] ss:$16 sps:$4 sm:$0xff]   ;;  %v8754_v37 = vld [vmem:[#allocation13 + $0x488] ss:$16 sps:$4 sm:$0xff]  }
 0x39c   : > { %5328 = vmatprep.subr.bf16.mxu1 %v8678_v39  ;;  %v8759_v39 = vld [vmem:[#allocation13 + $0x4a4] ss:$16 sps:$4 sm:$0xff]  }
 0x39e   : > { %5165 = vmatpush1.bf16.msra.mxu0 %v8673_v40  ;;  %v8762_v40 = vld [vmem:[#allocation13 + $0x4ac] ss:$16 sps:$4 sm:$0xff]  }
 0x39f   : > { %5329 = vmatpush1.bf16.msra.mxu1 %v8676_v41  ;;  %5166 = vmatprep.subr.bf16.mxu0 %v8681_v42  ;;  %v8757_v41 = vld [vmem:[#allocation13 + $0x4a0] ss:$16 sps:$4 sm:$0xff]   ;;  %v8760_v42 = vld [vmem:[#allocation13 + $0x4a8] ss:$16 sps:$4 sm:$0xff]  }
 0x3a0   : > { %5330 = vmatprep.subr.bf16.mxu1 %v8684_v43  ;;  %v8765_v43 = vld [vmem:[#allocation13 + $0x4c4] ss:$16 sps:$4 sm:$0xff]  }
 0x3a2   : > { %5167 = vmatpush1.bf16.msra.mxu0 %v8679_v44  ;;  %v8768_v44 = vld [vmem:[#allocation13 + $0x4cc] ss:$16 sps:$4 sm:$0xff]  }
 0x3a3   : > { %5331 = vmatpush1.bf16.msra.mxu1 %v8682_v45  ;;  %5168 = vmatprep.subr.bf16.mxu0 %v8687_v46  ;;  %v8763_v45 = vld [vmem:[#allocation13 + $0x4c0] ss:$16 sps:$4 sm:$0xff]   ;;  %v8766_v46 = vld [vmem:[#allocation13 + $0x4c8] ss:$16 sps:$4 sm:$0xff]  }
 0x3a4   : > { %5332 = vmatprep.subr.bf16.mxu1 %v8690_v47  ;;  %v8771_v47 = vld [vmem:[#allocation13 + $0x4e4] ss:$16 sps:$4 sm:$0xff]  }
 0x3a6   : > { %5169 = vmatpush1.bf16.msra.mxu0 %v8685_v24  ;;  %v8774_v24 = vld [vmem:[#allocation13 + $0x4ec] ss:$16 sps:$4 sm:$0xff]  }
 0x3a7   : > { %5333 = vmatpush1.bf16.msra.mxu1 %v8688_v48  ;;  %5170 = vmatprep.subr.bf16.mxu0 %v8693_v49  ;;  %v8769_v48 = vld [vmem:[#allocation13 + $0x4e0] ss:$16 sps:$4 sm:$0xff]   ;;  %v8772_v49 = vld [vmem:[#allocation13 + $0x4e8] ss:$16 sps:$4 sm:$0xff]  }
 0x3a8   : > { %5334 = vmatprep.subr.bf16.mxu1 %v8696_v50  ;;  %v8777_v50 = vld [vmem:[#allocation13 + $0x504] ss:$16 sps:$4 sm:$0xff]  }
 0x3aa   : > { %5171 = vmatpush1.bf16.msra.mxu0 %v8691_v51  ;;  %v8780_v51 = vld [vmem:[#allocation13 + $0x50c] ss:$16 sps:$4 sm:$0xff]  }
 0x3ab   : > { %5335 = vmatpush1.bf16.msra.mxu1 %v8694_v54  ;;  %5172 = vmatprep.subr.bf16.mxu0 %v8699_v55  ;;  %v8775_v54 = vld [vmem:[#allocation13 + $0x500] ss:$16 sps:$4 sm:$0xff]   ;;  %v8778_v55 = vld [vmem:[#allocation13 + $0x508] ss:$16 sps:$4 sm:$0xff]  }
 0x3ac   : > { %5336 = vmatprep.subr.bf16.mxu1 %v8702_v56  ;;  %v8783_v56 = vld [vmem:[#allocation13 + $0x524] ss:$16 sps:$4 sm:$0xff]  }
 0x3ae   : > { %5173 = vmatpush1.bf16.msra.mxu0 %v8697_v59  ;;  %v8786_v59 = vld [vmem:[#allocation13 + $0x52c] ss:$16 sps:$4 sm:$0xff]  }
 0x3af   : > { %5337 = vmatpush1.bf16.msra.mxu1 %v8700_v60  ;;  %5174 = vmatprep.subr.bf16.mxu0 %v8705_v61  ;;  %v8781_v60 = vld [vmem:[#allocation13 + $0x520] ss:$16 sps:$4 sm:$0xff]   ;;  %v8784_v61 = vld [vmem:[#allocation13 + $0x528] ss:$16 sps:$4 sm:$0xff]  }
 0x3b0   : > { %5338 = vmatprep.subr.bf16.mxu1 %v8708_v62  ;;  %v8789_v62 = vld [vmem:[#allocation13 + $0x544] ss:$16 sps:$4 sm:$0xff]  }
 0x3b2   : > { %5175 = vmatpush1.bf16.msra.mxu0 %v8703_v63  ;;  %v8792_v63 = vld [vmem:[#allocation13 + $0x54c] ss:$16 sps:$4 sm:$0xff]  }
 0x3b3   : > { %5339 = vmatpush1.bf16.msra.mxu1 %v8706_v0  ;;  %5176 = vmatprep.subr.bf16.mxu0 %v8711_v1  ;;  %v8787_v0 = vld [vmem:[#allocation13 + $0x540] ss:$16 sps:$4 sm:$0xff]   ;;  %v8790_v1 = vld [vmem:[#allocation13 + $0x548] ss:$16 sps:$4 sm:$0xff]  }
 0x3b4   : > { %5340 = vmatprep.subr.bf16.mxu1 %v8714_v2  ;;  %v8795_v2 = vld [vmem:[#allocation13 + $0x564] ss:$16 sps:$4 sm:$0xff]  }
 0x3b6   : > { %5177 = vmatpush1.bf16.msra.mxu0 %v8709_v12  ;;  %v8798_v12 = vld [vmem:[#allocation13 + $0x56c] ss:$16 sps:$4 sm:$0xff]  }
 0x3b7   : > { %5341 = vmatpush1.bf16.msra.mxu1 %v8712_v5  ;;  %5178 = vmatprep.subr.bf16.mxu0 %v8717_v6  ;;  %v8793_v5 = vld [vmem:[#allocation13 + $0x560] ss:$16 sps:$4 sm:$0xff]   ;;  %v8796_v6 = vld [vmem:[#allocation13 + $0x568] ss:$16 sps:$4 sm:$0xff]  }
 0x3b8   : > { %5342 = vmatprep.subr.bf16.mxu1 %v8720_v25  ;;  %v8801_v25 = vld [vmem:[#allocation13 + $0x584] ss:$16 sps:$4 sm:$0xff]  }
 0x3ba   : > { %5179 = vmatpush1.bf16.msra.mxu0 %v8715_v7  ;;  %v8804_v7 = vld [vmem:[#allocation13 + $0x58c] ss:$16 sps:$4 sm:$0xff]  }
 0x3bb   : > { %5343 = vmatpush1.bf16.msra.mxu1 %v8718_v9  ;;  %5180 = vmatprep.subr.bf16.mxu0 %v8723_v11  ;;  %v8802_v9 = vld [vmem:[#allocation13 + $0x588] ss:$16 sps:$4 sm:$0xff]   ;;  %v8807_v11 = vld [vmem:[#allocation13 + $0x5a4] ss:$16 sps:$4 sm:$0xff]  }
 0x3bc   : > { %5344 = vmatprep.subr.bf16.mxu1 %v8726_v13  ;;  %v8810_v13 = vld [vmem:[#allocation13 + $0x5ac] ss:$16 sps:$4 sm:$0xff]  }
 0x3be   : > { %5181 = vmatpush1.bf16.msra.mxu0 %v8721_v10  ;;  %v8805_v10 = vld [vmem:[#allocation13 + $0x5a0] ss:$16 sps:$4 sm:$0xff]  }
 0x3bf   : > { %5345 = vmatpush1.bf16.msra.mxu1 %v8724_v34  ;;  %5191 = vmatprep.subr.bf16.mxu0 %v8729_v16  ;;  %v8813_v34 = vld [vmem:[#allocation13 + $0x5c4] ss:$16 sps:$4 sm:$0xff]   ;;  %v8816_v16 = vld [vmem:[#allocation13 + $0x5cc] ss:$16 sps:$4 sm:$0xff]  }
 0x3c0   : > { %5355 = vmatprep.subr.bf16.mxu1 %v8732_v17  ;;  %v8811_v17 = vld [vmem:[#allocation13 + $0x5c0] ss:$16 sps:$4 sm:$0xff]  }
 0x3c1   : > { %5183 = vmatmul.mubr.bf16.vlgmr.msra.gmra.mrb[8].mxu0 %v3567_v19 }
 0x3c2   : > { %5347 = vmatmul.mubr.bf16.vlgmr.msra.gmra.mrb[8].mxu1 %v3567_v19  ;;  %5192 = vmatpush1.bf16.msra.mxu0 %v8727_v18  ;;  %v8814_v18 = vld [vmem:[#allocation13 + $0x5c8] ss:$16 sps:$4 sm:$0xff]   ;;  %v8819_v19 = vld [vmem:[#allocation13 + $0x5e4] ss:$16 sps:$4 sm:$0xff]  }
 0x3c3   : > { %5356 = vmatpush1.bf16.msra.mxu1 %v8730_v20  ;;  %5193 = vmatprep.subr.bf16.mxu0 %v8735_v21  ;;  %v8822_v20 = vld [vmem:[#allocation13 + $0x5ec] ss:$16 sps:$4 sm:$0xff]   ;;  %v8817_v21 = vld [vmem:[#allocation13 + $0x5e0] ss:$16 sps:$4 sm:$0xff]  }
 0x3c4   : > { %5357 = vmatprep.subr.bf16.mxu1 %v8738_v22  ;;  %v8820_v22 = vld [vmem:[#allocation13 + $0x5e8] ss:$16 sps:$4 sm:$0xff]  }
 0x3c6   : > { %5194 = vmatpush1.bf16.msra.mxu0 %v8733_v23  ;;  %v8825_v23 = vld [vmem:[#allocation13 + $0x604] ss:$16 sps:$4 sm:$0xff]  }
 0x3c7   : > { %5358 = vmatpush1.bf16.msra.mxu1 %v8736_v53  ;;  %5195 = vmatprep.subr.bf16.mxu0 %v8741_v26  ;;  %v8828_v53 = vld [vmem:[#allocation13 + $0x60c] ss:$16 sps:$4 sm:$0xff]   ;;  %v1098_v26 = vsub.s32 4, %v10156_v38 }
 0x3c8   : > { %5359 = vmatprep.subr.bf16.mxu1 %v8744_v27  ;;  %v1102_v27 = vsub.s32 5, %v10156_v38 }
 0x3ca   : > { %5196 = vmatpush1.bf16.msra.mxu0 %v8739_v28  ;;  %v1110_v28 = vsub.s32 7, %v10156_v38 }
 0x3cb   : > { %5360 = vmatpush1.bf16.msra.mxu1 %v8742_v29  ;;  %5197 = vmatprep.subr.bf16.mxu0 %v8747_v30  ;;  %v1099_v29 = vrot.slane %v10161_v4, %v1098_v26  ;;  %v1103_v30 = vrot.slane %v10161_v4, %v1102_v27  ;;  %v8888_v26 = vld [vmem:[#allocation13 + $0x74c] ss:$16 sps:$4 sm:$0xff]   ;;  %v8883_v27 = vld [vmem:[#allocation13 + $0x740] ss:$16 sps:$4 sm:$0xff]  }
 0x3cc   : > { %5361 = vmatprep.subr.bf16.mxu1 %v8750_v31  ;;  %v1111_v31 = vrot.slane %v10161_v4, %v1110_v28  ;;  %v8834_v4 = vld [vmem:[#allocation13 + $0x62c] ss:$16 sps:$4 sm:$0xff]   ;;  %v8886_v28 = vld [vmem:[#allocation13 + $0x748] ss:$16 sps:$4 sm:$0xff]  }
 0x3ce   : > { %5198 = vmatpush1.bf16.msra.mxu0 %v8745_v32 }
 0x3cf   : > { %5362 = vmatpush1.bf16.msra.mxu1 %v8748_v33  ;;  %5199 = vmatprep.subr.bf16.mxu0 %v8753_v15 }
 0x3d0   : > { %5363 = vmatprep.subr.bf16.mxu1 %v8756_v35 }
 0x3d2   : > { %5200 = vmatpush1.bf16.msra.mxu0 %v8751_v36 }
 0x3d3   : > { %5364 = vmatpush1.bf16.msra.mxu1 %v8754_v37  ;;  %5201 = vmatprep.subr.bf16.mxu0 %v8759_v39 }
 0x3d4   : > { %5365 = vmatprep.subr.bf16.mxu1 %v8762_v40 }
 0x3d6   : > { %5202 = vmatpush1.bf16.msra.mxu0 %v8757_v41 }
 0x3d7   : > { %5366 = vmatpush1.bf16.msra.mxu1 %v8760_v42  ;;  %5203 = vmatprep.subr.bf16.mxu0 %v8765_v43 }
 0x3d8   : > { %5367 = vmatprep.subr.bf16.mxu1 %v8768_v44 }
 0x3da   : > { %5204 = vmatpush1.bf16.msra.mxu0 %v8763_v45  ;;  %v8823_v45 = vld [vmem:[#allocation13 + $0x600] ss:$16 sps:$4 sm:$0xff]  }
 0x3db   : > { %5368 = vmatpush1.bf16.msra.mxu1 %v8766_v46  ;;  %5205 = vmatprep.subr.bf16.mxu0 %v8771_v47  ;;  %v8826_v46 = vld [vmem:[#allocation13 + $0x608] ss:$16 sps:$4 sm:$0xff]  }
 0x3dc   : > { %5369 = vmatprep.subr.bf16.mxu1 %v8774_v24  ;;  %v8831_v24 = vld [vmem:[#allocation13 + $0x624] ss:$16 sps:$4 sm:$0xff]  }
 0x3de   : > { %5206 = vmatpush1.bf16.msra.mxu0 %v8769_v48 }
 0x3df   : > { %5370 = vmatpush1.bf16.msra.mxu1 %v8772_v49  ;;  %5207 = vmatprep.subr.bf16.mxu0 %v8777_v50  ;;  %v8829_v49 = vld [vmem:[#allocation13 + $0x620] ss:$16 sps:$4 sm:$0xff]   ;;  %v8832_v50 = vld [vmem:[#allocation13 + $0x628] ss:$16 sps:$4 sm:$0xff]  }
 0x3e0   : > { %5371 = vmatprep.subr.bf16.mxu1 %v8780_v51  ;;  %v8837_v51 = vld [vmem:[#allocation13 + $0x644] ss:$16 sps:$4 sm:$0xff]  }
 0x3e2   : > { %5208 = vmatpush1.bf16.msra.mxu0 %v8775_v54  ;;  %v8840_v54 = vld [vmem:[#allocation13 + $0x64c] ss:$16 sps:$4 sm:$0xff]  }
 0x3e3   : > { %5372 = vmatpush1.bf16.msra.mxu1 %v8778_v55  ;;  %5209 = vmatprep.subr.bf16.mxu0 %v8783_v56  ;;  %v8835_v55 = vld [vmem:[#allocation13 + $0x640] ss:$16 sps:$4 sm:$0xff]   ;;  %v8838_v56 = vld [vmem:[#allocation13 + $0x648] ss:$16 sps:$4 sm:$0xff]  }
 0x3e4   : > { %5373 = vmatprep.subr.bf16.mxu1 %v8786_v59  ;;  %v8843_v59 = vld [vmem:[#allocation13 + $0x664] ss:$16 sps:$4 sm:$0xff]  }
 0x3e6   : > { %5210 = vmatpush1.bf16.msra.mxu0 %v8781_v60  ;;  %v8846_v60 = vld [vmem:[#allocation13 + $0x66c] ss:$16 sps:$4 sm:$0xff]  }
 0x3e7   : > { %5374 = vmatpush1.bf16.msra.mxu1 %v8784_v61  ;;  %5211 = vmatprep.subr.bf16.mxu0 %v8789_v62  ;;  %v8841_v61 = vld [vmem:[#allocation13 + $0x660] ss:$16 sps:$4 sm:$0xff]   ;;  %v8844_v62 = vld [vmem:[#allocation13 + $0x668] ss:$16 sps:$4 sm:$0xff]  }
 0x3e8   : > { %5375 = vmatprep.subr.bf16.mxu1 %v8792_v63  ;;  %v8849_v63 = vld [vmem:[#allocation13 + $0x684] ss:$16 sps:$4 sm:$0xff]  }
 0x3ea   : > { %5212 = vmatpush1.bf16.msra.mxu0 %v8787_v0  ;;  %v8852_v0 = vld [vmem:[#allocation13 + $0x68c] ss:$16 sps:$4 sm:$0xff]  }
 0x3eb   : > { %5376 = vmatpush1.bf16.msra.mxu1 %v8790_v1  ;;  %5213 = vmatprep.subr.bf16.mxu0 %v8795_v2  ;;  %v8847_v1 = vld [vmem:[#allocation13 + $0x680] ss:$16 sps:$4 sm:$0xff]   ;;  %v8850_v2 = vld [vmem:[#allocation13 + $0x688] ss:$16 sps:$4 sm:$0xff]  }
 0x3ec   : > { %5377 = vmatprep.subr.bf16.mxu1 %v8798_v12  ;;  %v8855_v12 = vld [vmem:[#allocation13 + $0x6a4] ss:$16 sps:$4 sm:$0xff]  }
 0x3ee   : > { %5214 = vmatpush1.bf16.msra.mxu0 %v8793_v5  ;;  %v8858_v5 = vld [vmem:[#allocation13 + $0x6ac] ss:$16 sps:$4 sm:$0xff]  }
 0x3ef   : > { %5378 = vmatpush1.bf16.msra.mxu1 %v8796_v6  ;;  %5215 = vmatprep.subr.bf16.mxu0 %v8801_v25  ;;  %v8853_v6 = vld [vmem:[#allocation13 + $0x6a0] ss:$16 sps:$4 sm:$0xff]   ;;  %v8856_v25 = vld [vmem:[#allocation13 + $0x6a8] ss:$16 sps:$4 sm:$0xff]  }
 0x3f0   : > { %5379 = vmatprep.subr.bf16.mxu1 %v8804_v7  ;;  %v8861_v7 = vld [vmem:[#allocation13 + $0x6c4] ss:$16 sps:$4 sm:$0xff]  }
 0x3f2   : > { %5216 = vmatpush1.bf16.msra.mxu0 %v8799_v8  ;;  %v8864_v8 = vld [vmem:[#allocation13 + $0x6cc] ss:$16 sps:$4 sm:$0xff]  }
 0x3f3   : > { %5380 = vmatpush1.bf16.msra.mxu1 %v8802_v9  ;;  %5217 = vmatprep.subr.bf16.mxu0 %v8807_v11  ;;  %v8859_v9 = vld [vmem:[#allocation13 + $0x6c0] ss:$16 sps:$4 sm:$0xff]   ;;  %v8862_v11 = vld [vmem:[#allocation13 + $0x6c8] ss:$16 sps:$4 sm:$0xff]  }
 0x3f4   : > { %5381 = vmatprep.subr.bf16.mxu1 %v8810_v13  ;;  %v8867_v13 = vld [vmem:[#allocation13 + $0x6e4] ss:$16 sps:$4 sm:$0xff]  }
 0x3f6   : > { %5218 = vmatpush1.bf16.msra.mxu0 %v8805_v10  ;;  %v8870_v10 = vld [vmem:[#allocation13 + $0x6ec] ss:$16 sps:$4 sm:$0xff]  }
 0x3f7   : > { %5382 = vmatpush1.bf16.msra.mxu1 %v8808_v14  ;;  %5219 = vmatprep.subr.bf16.mxu0 %v8813_v34  ;;  %v8865_v14 = vld [vmem:[#allocation13 + $0x6e0] ss:$16 sps:$4 sm:$0xff]   ;;  %v8868_v34 = vld [vmem:[#allocation13 + $0x6e8] ss:$16 sps:$4 sm:$0xff]  }
 0x3f8   : > { %5383 = vmatprep.subr.bf16.mxu1 %v8816_v16  ;;  %v8873_v16 = vld [vmem:[#allocation13 + $0x704] ss:$16 sps:$4 sm:$0xff]  }
 0x3fa   : > { %5220 = vmatpush1.bf16.msra.mxu0 %v8811_v17  ;;  %v8876_v17 = vld [vmem:[#allocation13 + $0x70c] ss:$16 sps:$4 sm:$0xff]  }
 0x3fb   : > { %5384 = vmatpush1.bf16.msra.mxu1 %v8814_v18  ;;  %5221 = vmatprep.subr.bf16.mxu0 %v8819_v19  ;;  %v8871_v18 = vld [vmem:[#allocation13 + $0x700] ss:$16 sps:$4 sm:$0xff]   ;;  %v8874_v19 = vld [vmem:[#allocation13 + $0x708] ss:$16 sps:$4 sm:$0xff]  }
 0x3fc   : > { %5385 = vmatprep.subr.bf16.mxu1 %v8822_v20  ;;  %v8879_v20 = vld [vmem:[#allocation13 + $0x724] ss:$16 sps:$4 sm:$0xff]  }
 0x3fe   : > { %5222 = vmatpush1.bf16.msra.mxu0 %v8817_v21  ;;  %v8882_v21 = vld [vmem:[#allocation13 + $0x72c] ss:$16 sps:$4 sm:$0xff]  }
 0x3ff   : > { %5386 = vmatpush1.bf16.msra.mxu1 %v8820_v22  ;;  %5232 = vmatprep.subr.bf16.mxu0 %v8825_v23  ;;  %v8877_v22 = vld [vmem:[#allocation13 + $0x720] ss:$16 sps:$4 sm:$0xff]   ;;  %v8880_v23 = vld [vmem:[#allocation13 + $0x728] ss:$16 sps:$4 sm:$0xff]  }
 0x400   : > { %5396 = vmatprep.subr.bf16.mxu1 %v8828_v53  ;;  %v8885_v53 = vld [vmem:[#allocation13 + $0x744] ss:$16 sps:$4 sm:$0xff]  }
 0x414   : > { %v3423_v32 = vpop.f32.mrb[4].mxu0  ;;  %v10193_v15 = vpop.f32.mrb[4].mxu1 }
 0x415   : > { %v8286_v33 = vadd.f32 %v3423_v32, %v1099_v29  ;;  %v3425_v35 = vpop.f32.mrb[5].mxu0  ;;  %v3548_v37 = vpop.f32.mrb[5].mxu1  ;;  %v8891_v29 = vld [vmem:[#allocation13 + $0x764] ss:$16 sps:$4 sm:$0xff]   ;;  %v8892_v32 = vld [vmem:[#allocation13 + $0x768] ss:$16 sps:$4 sm:$0xff]  }
 0x416   : > { %v8287_v36 = vadd.f32 %v3425_v35, %v1103_v30  ;;  %v3427_v39 = vpop.f32.mrb[6].mxu0  ;;  %v8289_v40 = vadd.f32 %v3548_v37, %v1111_v31  ;;  %v3550_v41 = vpop.f32.mrb[6].mxu1  ;;  %v8894_v30 = vld [vmem:[#allocation13 + $0x76c] ss:$16 sps:$4 sm:$0xff]   ;;  %v8889_v31 = vld [vmem:[#allocation13 + $0x760] ss:$16 sps:$4 sm:$0xff]  }
 0x417   : > { %v3428_v42 = vpop.f32.mrb[7].mxu0  ;;  %v3551_v44 = vpop.f32.mrb[7].mxu1  ;;  %v3569_v47 = vpack.c.bf16 %v8286_v33, %v8286_v33  ;;  %v8897_v33 = vld [vmem:[#allocation13 + $0x784] ss:$16 sps:$4 sm:$0xff]   ;;  %v8900_v35 = vld [vmem:[#allocation13 + $0x78c] ss:$16 sps:$4 sm:$0xff]  }
 0x418   : > { %v3570_v43 = vpack.c.bf16 %v8287_v36, %v8287_v36  ;;  %v3572_v48 = vpack.c.bf16 %v8289_v40, %v8289_v40  ;;  %v8895_v36 = vld [vmem:[#allocation13 + $0x780] ss:$16 sps:$4 sm:$0xff]   ;;  %v8898_v37 = vld [vmem:[#allocation13 + $0x788] ss:$16 sps:$4 sm:$0xff]   ;;  %v8903_v39 = vld [vmem:[#allocation13 + $0x7a4] ss:$16 sps:$4 sm:$0xff]  }
 0x419   : > { %v8906_v40 = vld [vmem:[#allocation13 + $0x7ac] ss:$16 sps:$4 sm:$0xff]   ;;  %v8901_v41 = vld [vmem:[#allocation13 + $0x7a0] ss:$16 sps:$4 sm:$0xff]   ;;  %v8904_v42 = vld [vmem:[#allocation13 + $0x7a8] ss:$16 sps:$4 sm:$0xff]  }
 0x41a   : > { %5223 = vmatprep.mubr.bf16.mxu0 %v3570_v43  ;;  %5387 = vmatprep.mubr.bf16.mxu1 %v3570_v43  ;;  %v1106_v43 = vsub.s32 6, %v10156_v38  ;;  %v8909_v44 = vld [vmem:[#allocation13 + $0x7c4] ss:$16 sps:$4 sm:$0xff]  }
 0x41b   : > { %5224 = vmatmul.mubr.bf16.vlgmr.msra.gmra.mrb[8].mxu0 %v3569_v47  ;;  %5388 = vmatmul.mubr.bf16.vlgmr.msra.gmra.mrb[8].mxu1 %v3569_v47  ;;  %v8910_v47 = vld [vmem:[#allocation13 + $0x7c8] ss:$16 sps:$4 sm:$0xff]  }
 0x41c   : > { %5233 = vmatpush1.bf16.msra.mxu0 %v8823_v45  ;;  %5397 = vmatpush1.bf16.msra.mxu1 %v8826_v46  ;;  %v8912_v45 = vld [vmem:[#allocation13 + $0x7cc] ss:$16 sps:$4 sm:$0xff]   ;;  %v8907_v46 = vld [vmem:[#allocation13 + $0x7c0] ss:$16 sps:$4 sm:$0xff]  }
 0x41d   : > { %5264 = vmatprep.mubr.bf16.mxu0 %v3572_v48  ;;  %5428 = vmatprep.mubr.bf16.mxu1 %v3572_v48  ;;  %v8915_v48 = vld [vmem:[#allocation13 + $0x7e4] ss:$16 sps:$4 sm:$0xff]  }
 0x41e   : > { %5234 = vmatprep.subr.bf16.mxu0 %v8831_v24  ;;  %5398 = vmatprep.subr.bf16.mxu1 %v8834_v4  ;;  %v9107_v24 = vld [vmem:[#allocation10] sm:$0xff] }
 0x41f   : > { %v1107_v4 = vrot.slane %v9107_v24, %v1106_v43  ;;  %v8979_v43 = vld [vmem:[#allocation16 + $0xe4] ss:$8 sps:$4 sm:$0xff]  }
 0x420   : > { %5235 = vmatpush1.bf16.msra.mxu0 %v8829_v49  ;;  %5399 = vmatpush1.bf16.msra.mxu1 %v8832_v50  ;;  %v8918_v49 = vld [vmem:[#allocation13 + $0x7ec] ss:$16 sps:$4 sm:$0xff]   ;;  %v8913_v50 = vld [vmem:[#allocation13 + $0x7e0] ss:$16 sps:$4 sm:$0xff]  }
 0x421   : > { %5236 = vmatprep.subr.bf16.mxu0 %v8837_v51  ;;  %5400 = vmatprep.subr.bf16.mxu1 %v8840_v54  ;;  %v8916_v51 = vld [vmem:[#allocation13 + $0x7e8] ss:$16 sps:$4 sm:$0xff]   ;;  %v8288_v54 = vadd.f32 %v10193_v15, %v1107_v4  ;;  %v8925_v15 = vld [vmem:[#allocation11 + $0x20] ss:$16 sps:$4 sm:$0xff]  }
 0x422   : > { %v9031_v38 = vld [vmem:[#allocation19 + $0x40] sm:$0xff]  }
 0x424   : > { %5237 = vmatpush1.bf16.msra.mxu0 %v8835_v55  ;;  %5401 = vmatpush1.bf16.msra.mxu1 %v8838_v56  ;;  %v8921_v55 = vld [vmem:[#allocation11 + $0x4] ss:$16 sps:$4 sm:$0xff]   ;;  %v8924_v56 = vld [vmem:[#allocation11 + $0xc] ss:$16 sps:$4 sm:$0xff]  }
 0x425   : > { %5238 = vmatprep.subr.bf16.mxu0 %v8843_v59  ;;  %5402 = vmatprep.subr.bf16.mxu1 %v8846_v60  ;;  %v8919_v59 = vld [vmem:[#allocation11] ss:$16 sps:$4 sm:$0xff]   ;;  %v8922_v60 = vld [vmem:[#allocation11 + $0x8] ss:$16 sps:$4 sm:$0xff]  }
 0x428   : > { %5239 = vmatpush1.bf16.msra.mxu0 %v8841_v61  ;;  %5403 = vmatpush1.bf16.msra.mxu1 %v8844_v62  ;;  %v3571_v61 = vpack.c.bf16 %v8288_v54, %v8288_v54  ;;  %v8927_v62 = vld [vmem:[#allocation11 + $0x24] ss:$16 sps:$4 sm:$0xff]  }
 0x429   : > { %5240 = vmatprep.subr.bf16.mxu0 %v8849_v63  ;;  %5404 = vmatprep.subr.bf16.mxu1 %v8852_v0  ;;  %v8930_v63 = vld [vmem:[#allocation11 + $0x2c] ss:$16 sps:$4 sm:$0xff]   ;;  %v3563_v0 = vld [vmem:[#allocation11 + $0x40] sm:$0x33] }
 0x42c   : > { %5241 = vmatpush1.bf16.msra.mxu0 %v8847_v1  ;;  %5405 = vmatpush1.bf16.msra.mxu1 %v8850_v2  ;;  %v3564_v1 = vld [vmem:[#allocation11 + $0x48] sm:$0x33] }
 0x42d   : > { %5242 = vmatprep.subr.bf16.mxu0 %v8855_v12  ;;  %5406 = vmatprep.subr.bf16.mxu1 %v8858_v5  ;;  %v8928_v2 = vld [vmem:[#allocation11 + $0x28] ss:$16 sps:$4 sm:$0xff]   ;;  %v8001_v12 = vcombine.high %v3563_v0, %v3563_v0  ;;  %v8003_v5 = vcombine.high %v3564_v1, %v3564_v1 }
 0x430   : > { %5243 = vmatpush1.bf16.msra.mxu0 %v8853_v6  ;;  %5407 = vmatpush1.bf16.msra.mxu1 %v8856_v25  ;;  %v8000_v6 = vcombine.low %v3563_v0, %v3563_v0  ;;  %v8002_v25 = vcombine.low %v3564_v1, %v3564_v1  ;;  %v8985_v0 = vld [vmem:[#allocation16 + $0x104] ss:$8 sps:$4 sm:$0xff]   ;;  %v10214_v1 = vld [vmem:[#allocation14] sm:$0xf] }
 0x431   : > { %5244 = vmatprep.subr.bf16.mxu0 %v8861_v7  ;;  %5408 = vmatprep.subr.bf16.mxu1 %v8864_v8  ;;  %v9591_v7 = vmov 0  }
 0x432   : > { %v5493_v8 = vsel %vm5491_vm0, %v8000_v6, 0 }
 0x434   : > { %5245 = vmatpush1.bf16.msra.mxu0 %v8859_v9  ;;  %5409 = vmatpush1.bf16.msra.mxu1 %v8862_v11  ;;  %v5499_v9 = vsel %vm5491_vm0, %v8002_v25, 0  ;;  %v3554_v11 = vld [vmem:[%s10071_s7] sm:$0xf]  ;;  %s10585_s7 = sld [smem:[#allocation50_spill]] }
 0x435   : > { %5246 = vmatprep.subr.bf16.mxu0 %v8867_v13  ;;  %5410 = vmatprep.subr.bf16.mxu1 %v8870_v10  ;;  %v8935_v13 = vld [vmem:[#allocation16] ss:$8 sps:$4 sm:$0xff]   ;;  %v8937_v10 = vld [vmem:[#allocation16 + $0x4] ss:$8 sps:$4 sm:$0xff]  }
 0x438   : > { %5247 = vmatpush1.bf16.msra.mxu0 %v8865_v14  ;;  %5411 = vmatpush1.bf16.msra.mxu1 %v8868_v34  ;;  %v8940_v14 = vld [vmem:[#allocation16 + $0x14] ss:$8 sps:$4 sm:$0xff]   ;;  %v8938_v34 = vld [vmem:[#allocation16 + $0x10] ss:$8 sps:$4 sm:$0xff]  }
 0x439   : > { %5248 = vmatprep.subr.bf16.mxu0 %v8873_v16  ;;  %5412 = vmatprep.subr.bf16.mxu1 %v8876_v17  ;;  %v8943_v16 = vld [vmem:[#allocation16 + $0x24] ss:$8 sps:$4 sm:$0xff]   ;;  %v8941_v17 = vld [vmem:[#allocation16 + $0x20] ss:$8 sps:$4 sm:$0xff]  }
 0x43c   : > { %5249 = vmatpush1.bf16.msra.mxu0 %v8871_v18  ;;  %5413 = vmatpush1.bf16.msra.mxu1 %v8874_v19  ;;  %v8946_v18 = vld [vmem:[#allocation16 + $0x34] ss:$8 sps:$4 sm:$0xff]   ;;  %v8944_v19 = vld [vmem:[#allocation16 + $0x30] ss:$8 sps:$4 sm:$0xff]  }
 0x43d   : > { %5250 = vmatprep.subr.bf16.mxu0 %v8879_v20  ;;  %5414 = vmatprep.subr.bf16.mxu1 %v8882_v21  ;;  %v8949_v20 = vld [vmem:[#allocation16 + $0x44] ss:$8 sps:$4 sm:$0xff]   ;;  %v8947_v21 = vld [vmem:[#allocation16 + $0x40] ss:$8 sps:$4 sm:$0xff]  }
 0x440   : > { %5251 = vmatpush1.bf16.msra.mxu0 %v8877_v22  ;;  %5415 = vmatpush1.bf16.msra.mxu1 %v8880_v23  ;;  %v8952_v22 = vld [vmem:[#allocation16 + $0x54] ss:$8 sps:$4 sm:$0xff]   ;;  %v8950_v23 = vld [vmem:[#allocation16 + $0x50] ss:$8 sps:$4 sm:$0xff]  }
 0x441   : > { %5252 = vmatprep.subr.bf16.mxu0 %v8885_v53  ;;  %5416 = vmatprep.subr.bf16.mxu1 %v8888_v26  ;;  %v8955_v53 = vld [vmem:[#allocation16 + $0x64] ss:$8 sps:$4 sm:$0xff]   ;;  %v8953_v26 = vld [vmem:[#allocation16 + $0x60] ss:$8 sps:$4 sm:$0xff]  }
 0x444   : > { %5253 = vmatpush1.bf16.msra.mxu0 %v8883_v27  ;;  %5417 = vmatpush1.bf16.msra.mxu1 %v8886_v28  ;;  %v8958_v27 = vld [vmem:[#allocation16 + $0x74] ss:$8 sps:$4 sm:$0xff]   ;;  %v8956_v28 = vld [vmem:[#allocation16 + $0x70] ss:$8 sps:$4 sm:$0xff]  }
 0x445   : > { %5254 = vmatprep.subr.bf16.mxu0 %v8891_v29  ;;  %5418 = vmatprep.subr.bf16.mxu1 %v8894_v30  ;;  %v8961_v29 = vld [vmem:[#allocation16 + $0x84] ss:$8 sps:$4 sm:$0xff]   ;;  %v8959_v30 = vld [vmem:[#allocation16 + $0x80] ss:$8 sps:$4 sm:$0xff]  }
 0x448   : > { %5255 = vmatpush1.bf16.msra.mxu0 %v8889_v31  ;;  %5419 = vmatpush1.bf16.msra.mxu1 %v8892_v32  ;;  %v8964_v31 = vld [vmem:[#allocation16 + $0x94] ss:$8 sps:$4 sm:$0xff]   ;;  %v8962_v32 = vld [vmem:[#allocation16 + $0x90] ss:$8 sps:$4 sm:$0xff]  }
 0x449   : > { %5256 = vmatprep.subr.bf16.mxu0 %v8897_v33  ;;  %5420 = vmatprep.subr.bf16.mxu1 %v8900_v35  ;;  %v8967_v33 = vld [vmem:[#allocation16 + $0xa4] ss:$8 sps:$4 sm:$0xff]   ;;  %v8965_v35 = vld [vmem:[#allocation16 + $0xa0] ss:$8 sps:$4 sm:$0xff]  }
 0x44c   : > { %5257 = vmatpush1.bf16.msra.mxu0 %v8895_v36  ;;  %5421 = vmatpush1.bf16.msra.mxu1 %v8898_v37  ;;  %v8970_v36 = vld [vmem:[#allocation16 + $0xb4] ss:$8 sps:$4 sm:$0xff]   ;;  %v8968_v37 = vld [vmem:[#allocation16 + $0xb0] ss:$8 sps:$4 sm:$0xff]  }
 0x44d   : > { %5258 = vmatprep.subr.bf16.mxu0 %v8903_v39  ;;  %5422 = vmatprep.subr.bf16.mxu1 %v8906_v40  ;;  %v8973_v39 = vld [vmem:[#allocation16 + $0xc4] ss:$8 sps:$4 sm:$0xff]   ;;  %v8971_v40 = vld [vmem:[#allocation16 + $0xc0] ss:$8 sps:$4 sm:$0xff]  }
 0x450   : > { %5259 = vmatpush1.bf16.msra.mxu0 %v8901_v41  ;;  %5423 = vmatpush1.bf16.msra.mxu1 %v8904_v42  ;;  %v8976_v41 = vld [vmem:[#allocation16 + $0xd4] ss:$8 sps:$4 sm:$0xff]   ;;  %v8974_v42 = vld [vmem:[#allocation16 + $0xd0] ss:$8 sps:$4 sm:$0xff]  }
 0x451   : > { %5260 = vmatprep.subr.bf16.mxu0 %v8909_v44  ;;  %5424 = vmatprep.subr.bf16.mxu1 %v8912_v45  ;;  %v8977_v44 = vld [vmem:[#allocation16 + $0xe0] ss:$8 sps:$4 sm:$0xff]  }
 0x454   : > { %5261 = vmatpush1.bf16.msra.mxu0 %v8907_v46  ;;  %5425 = vmatpush1.bf16.msra.mxu1 %v8910_v47 }
 0x455   : > { %5262 = vmatprep.subr.bf16.mxu0 %v8915_v48  ;;  %5426 = vmatprep.subr.bf16.mxu1 %v8918_v49 }
 0x458   : > { %5263 = vmatpush1.bf16.msra.mxu0 %v8913_v50  ;;  %5427 = vmatpush1.bf16.msra.mxu1 %v8916_v51 }
 0x459   : > { %5504 = vmatprep.subr.bf16.mxu0 %v8921_v55  ;;  %5545 = vmatprep.subr.bf16.mxu1 %v8924_v56 }
 0x45b   : > { %5265 = vmatmul.mubr.bf16.vlgmr.msra.gmra.mrb[8].mxu0 %v3571_v61  ;;  %5429 = vmatmul.mubr.bf16.vlgmr.msra.gmra.mrb[8].mxu1 %v3571_v61 }
 0x45c   : > { %5505 = vmatpush1.bf16.msra.mxu0 %v8919_v59  ;;  %5546 = vmatpush1.bf16.msra.mxu1 %v8922_v60  ;;  %v10204_v60 = vld [vmem:[%s10077_s8] sm:$0xf]  ;;  %s10437_s8 = scalar_lea.hbm %s10585_s7, %s8154_s14 }
 0x45d   : > { %5506 = vmatprep.subr.bf16.mxu0 %v8927_v62  ;;  %5547 = vmatprep.subr.bf16.mxu1 %v8930_v63  ;;  %v8982_v62 = vld [vmem:[#allocation16 + $0xf4] ss:$8 sps:$4 sm:$0xff]   ;;  %v8980_v63 = vld [vmem:[#allocation16 + $0xf0] ss:$8 sps:$4 sm:$0xff]  }
 0x45e   : > { %5536 = vmatprep.mubr.bf16.mxu0 %v9591_v7  ;;  %5577 = vmatprep.mubr.bf16.mxu1 %v9591_v7 }
 0x460   : > { %5507 = vmatpush1.bf16.msra.mxu0 %v8925_v15  ;;  %5548 = vmatpush1.bf16.msra.mxu1 %v8928_v2  ;;  %v5595_v15 = vrot.slane %v10214_v1, %v10172_v52  ;;  %v5599_v2 = vrot.slane %v10214_v1, %v10159_v3 }
 0x461   : > { %8004 = vmatprep.subr.msk.bf16.mxu0 %vm5491_vm0, %v8001_v12  ;;  %8006 = vmatprep.subr.msk.bf16.mxu1 %vm5491_vm0, %v8003_v5 }
 0x464   : > { %5509 = vmatpush1.bf16.msra.mxu0 %v5493_v8  ;;  %5550 = vmatpush1.bf16.msra.mxu1 %v5499_v9 }
 0x465   : > { %6099 = vmatprep.subr.bf16.mxu0 %v8937_v10  ;;  %v8988_v10 = vld [vmem:[#allocation16 + $0x114] ss:$8 sps:$4 sm:$0xff]  }
 0x467   : > { %8005 = vmatmul.mubr.msk.bf16.vlgmr.msra.gmra.mrb[8].mxu0 %vm5487_vm1, %v3554_v11  ;;  %8007 = vmatmul.mubr.msk.bf16.vlgmr.msra.gmra.mrb[8].mxu1 %vm5487_vm1, %v3554_v11  ;;  %v8983_v11 = vld [vmem:[#allocation16 + $0x100] ss:$8 sps:$4 sm:$0xff]  }
 0x468   : > { %5661 = vmatprep.mubr.bf16.mxu1 %v9591_v7  ;;  %6100 = vmatpush1.bf16.msra.mxu0 %v8935_v13 }
 0x469   : > { %6101 = vmatprep.subr.bf16.mxu0 %v8940_v14  ;;  %v5607_v14 = vrot.slane %v10214_v1, %v1094_v58  ;;  %v8992_v58 = vld [vmem:[#allocation16 + $0x130] ss:$8 sps:$4 sm:$0xff]  }
 0x46c   : > { %6102 = vmatpush1.bf16.msra.mxu0 %v8938_v34  ;;  %v8986_v34 = vld [vmem:[#allocation16 + $0x110] ss:$8 sps:$4 sm:$0xff]  }
 0x46d   : > { %6103 = vmatprep.subr.bf16.mxu0 %v8943_v16 }
 0x470   : > { %6104 = vmatpush1.bf16.msra.mxu0 %v8941_v17  ;;  %v8991_v17 = vld [vmem:[#allocation16 + $0x124] ss:$8 sps:$4 sm:$0xff]  }
 0x471   : > { %6105 = vmatprep.subr.bf16.mxu0 %v8946_v18 }
 0x474   : > { %6106 = vmatpush1.bf16.msra.mxu0 %v8944_v19 }
 0x475   : > { %6107 = vmatprep.subr.bf16.mxu0 %v8949_v20 }
 0x478   : > { %6108 = vmatpush1.bf16.msra.mxu0 %v8947_v21 }
 0x479   : > { %6109 = vmatprep.subr.bf16.mxu0 %v8952_v22  ;;  %v8989_v22 = vld [vmem:[#allocation16 + $0x120] ss:$8 sps:$4 sm:$0xff]  }
 0x47c   : > { %6110 = vmatpush1.bf16.msra.mxu0 %v8950_v23 }
 0x47d   : > { %6111 = vmatprep.subr.bf16.mxu0 %v8955_v53  ;;  %v8994_v53 = vld [vmem:[#allocation16 + $0x134] ss:$8 sps:$4 sm:$0xff]  }
 0x480   : > { %6112 = vmatpush1.bf16.msra.mxu0 %v8953_v26  ;;  %v8997_v26 = vld [vmem:[#allocation16 + $0x144] ss:$8 sps:$4 sm:$0xff]  }
 0x481   : > { %6113 = vmatprep.subr.bf16.mxu0 %v8958_v27  ;;  %v8995_v27 = vld [vmem:[#allocation16 + $0x140] ss:$8 sps:$4 sm:$0xff]  }
 0x484   : > { %6114 = vmatpush1.bf16.msra.mxu0 %v8956_v28  ;;  %v9000_v28 = vld [vmem:[#allocation16 + $0x154] ss:$8 sps:$4 sm:$0xff]  }
 0x485   : > { %6115 = vmatprep.subr.bf16.mxu0 %v8961_v29  ;;  %v8998_v29 = vld [vmem:[#allocation16 + $0x150] ss:$8 sps:$4 sm:$0xff]  }
 0x488   : > { %6116 = vmatpush1.bf16.msra.mxu0 %v8959_v30  ;;  %v9003_v30 = vld [vmem:[#allocation16 + $0x164] ss:$8 sps:$4 sm:$0xff]  }
 0x489   : > { %6117 = vmatprep.subr.bf16.mxu0 %v8964_v31  ;;  %v9001_v31 = vld [vmem:[#allocation16 + $0x160] ss:$8 sps:$4 sm:$0xff]  }
 0x48c   : > { %6118 = vmatpush1.bf16.msra.mxu0 %v8962_v32  ;;  %v9006_v32 = vld [vmem:[#allocation16 + $0x174] ss:$8 sps:$4 sm:$0xff]  }
 0x48d   : > { %6119 = vmatprep.subr.bf16.mxu0 %v8967_v33  ;;  %v9004_v33 = vld [vmem:[#allocation16 + $0x170] ss:$8 sps:$4 sm:$0xff]  }
 0x490   : > { %6120 = vmatpush1.bf16.msra.mxu0 %v8965_v35  ;;  %v9009_v35 = vld [vmem:[#allocation16 + $0x184] ss:$8 sps:$4 sm:$0xff]  }
 0x491   : > { %6121 = vmatprep.subr.bf16.mxu0 %v8970_v36  ;;  %v9007_v36 = vld [vmem:[#allocation16 + $0x180] ss:$8 sps:$4 sm:$0xff]  }
 0x494   : > { %6122 = vmatpush1.bf16.msra.mxu0 %v8968_v37  ;;  %v9012_v37 = vld [vmem:[#allocation16 + $0x194] ss:$8 sps:$4 sm:$0xff]  }
 0x495   : > { %6123 = vmatprep.subr.bf16.mxu0 %v8973_v39  ;;  %v9010_v39 = vld [vmem:[#allocation16 + $0x190] ss:$8 sps:$4 sm:$0xff]  }
 0x498   : > { %6124 = vmatpush1.bf16.msra.mxu0 %v8971_v40  ;;  %v9015_v40 = vld [vmem:[#allocation16 + $0x1a4] ss:$8 sps:$4 sm:$0xff]  }
 0x499   : > { %6125 = vmatprep.subr.bf16.mxu0 %v8976_v41  ;;  %v9013_v41 = vld [vmem:[#allocation16 + $0x1a0] ss:$8 sps:$4 sm:$0xff]  }
 0x49c   : > { %6126 = vmatpush1.bf16.msra.mxu0 %v8974_v42  ;;  %v9018_v42 = vld [vmem:[#allocation16 + $0x1b4] ss:$8 sps:$4 sm:$0xff]  }
 0x49d   : > { %6127 = vmatprep.subr.bf16.mxu0 %v8979_v43  ;;  %v9016_v43 = vld [vmem:[#allocation16 + $0x1b0] ss:$8 sps:$4 sm:$0xff]  }
 0x4a0   : > { %6128 = vmatpush1.bf16.msra.mxu0 %v8977_v44  ;;  %v9021_v44 = vld [vmem:[#allocation16 + $0x1c4] ss:$8 sps:$4 sm:$0xff]  }
 0x4a1   : > { %6129 = vmatprep.subr.bf16.mxu0 %v8982_v62 }
 0x4a4   : > { %6130 = vmatpush1.bf16.msra.mxu0 %v8980_v63 }
 0x4a5   : > { %6140 = vmatprep.subr.bf16.mxu0 %v8985_v0  ;;  %v9032_v0 = vld [vmem:[#allocation19] sm:$0xff]  }
 0x53a   : > { %v5538_v45 = vpop.f32.mrb[8].mxu0  ;;  %v5579_v46 = vpop.f32.mrb[8].mxu1 }
 0x53b   : > { %v5586_v47 = vpack.c.bf16 %v5538_v45, %v5538_v45  ;;  %v5540_v24 = vpop.f32.mrb[9].mxu0  ;;  %v5581_v4 = vpop.f32.mrb[9].mxu1  ;;  %v5588_v56 = vpack.c.bf16 %v5579_v46, %v5579_v46  ;;  %v9019_v45 = vld [vmem:[#allocation16 + $0x1c0] ss:$8 sps:$4 sm:$0xff]   ;;  %v9024_v46 = vld [vmem:[#allocation16 + $0x1d4] ss:$8 sps:$4 sm:$0xff]  }
 0x53c   : > { %v5587_v48 = vpack.c.bf16 %v5540_v24, %v5540_v24  ;;  %v5542_v49 = vpop.f32.mrb[10].mxu0  ;;  %v5583_v50 = vpop.f32.mrb[10].mxu1  ;;  %v5589_v59 = vpack.c.bf16 %v5581_v4, %v5581_v4  ;;  %v9027_v24 = vld [vmem:[#allocation16 + $0x1e4] ss:$8 sps:$4 sm:$0xff]   ;;  %v9025_v4 = vld [vmem:[#allocation16 + $0x1e0] ss:$8 sps:$4 sm:$0xff]  }
 0x53d   : > { %v5618_v51 = vsel %vm5616_vm2, %v5586_v47, 0  ;;  %v5543_v54 = vpop.f32.mrb[11].mxu0  ;;  %v5584_v55 = vpop.f32.mrb[11].mxu1  ;;  %v5624_v61 = vsel %vm5616_vm2, %v5588_v56, 0  ;;  %v9022_v47 = vld [vmem:[#allocation16 + $0x1d0] ss:$8 sps:$4 sm:$0xff]  }
 0x53e   : > { %8008 = vmatprep.subr.msk.bf16.mxu1 %vm5616_vm2, %v5587_v48  ;;  %v5603_v48 = vrot.slane %v10214_v1, %v1090_v57  ;;  %v9030_v49 = vld [vmem:[#allocation16 + $0x1f4] ss:$8 sps:$4 sm:$0xff]   ;;  %v9028_v50 = vld [vmem:[#allocation16 + $0x1f0] ss:$8 sps:$4 sm:$0xff]  }
 0x53f   : > { %5630 = vmatpush1.bf16.msra.mxu1 %v5618_v51  ;;  %v9033_v1 = vld [vmem:[#allocation19 + $0x48] sm:$0xff]  }
 0x540   : > { %8010 = vmatprep.subr.msk.bf16.mxu1 %vm5616_vm2, %v5589_v59 }
 0x542   : > { %8009 = vmatmul.mubr.msk.bf16.vlgmr.msra.gmra.mrb[12].mxu1 %vm5612_vm3, %v10204_v60 }
 0x543   : > { %5671 = vmatpush1.bf16.msra.mxu1 %v5624_v61  ;;  %5702 = vmatprep.mubr.bf16.mxu1 %v9591_v7 }
 0x54a   : > { %8011 = vmatmul.mubr.msk.bf16.vlgmr.msra.gmra.mrb[16].mxu1 %vm5612_vm3, %v10204_v60 }
 0x54b   : > { %6233 = vmatprep.mubr.bf16.mxu1 %v9591_v7 }
 0x615   : > { %v5663_v12 = vpop.f32.mrb[12].mxu1 }
 0x616   : > { %v5664_v5 = vadd.f32 %v5663_v12, %v5595_v15  ;;  %v5665_v6 = vpop.f32.mrb[13].mxu1  ;;  %v9034_v15 = vld [vmem:[#allocation19 + $0x8] sm:$0xff]   ;;  %v9036_v12 = vld [vmem:[#allocation19 + $0x10] sm:$0xff]  }
 0x617   : > { %v5666_v25 = vadd.f32 %v5665_v6, %v5599_v2  ;;  %v5667_v8 = vpop.f32.mrb[14].mxu1  ;;  %v9035_v2 = vld [vmem:[#allocation19 + $0x50] sm:$0xff]   ;;  %v9038_v6 = vld [vmem:[#allocation19 + $0x18] sm:$0xff]  }
 0x618   : > { %v5668_v7 = vpop.f32.mrb[15].mxu1  ;;  %v10222_v13 = vpack.c.bf16 %v5664_v5, %v5664_v5  ;;  %v9037_v5 = vld [vmem:[#allocation19 + $0x58] sm:$0xff]   ;;  %v9040_v8 = vld [vmem:[#allocation19 + $0x20] sm:$0xff]  }
 0x619   : > { %v10220_v9 = vpack.c.bf16 %v5666_v25, %v5666_v25  ;;  %v9039_v25 = vld [vmem:[#allocation19 + $0x60] sm:$0xff]   ;;  %v9041_v7 = vld [vmem:[#allocation19 + $0x68] sm:$0xff]  }
 0x61b   : > { %6131 = vmatprep.mubr.bf16.mxu0 %v10220_v9 }
 0x61c   : > { %6132 = vmatmul.mubr.bf16.vlgmr.msra.gmra.mrb[12].mxu0 %v10222_v13 }
 0x61d   : > { %6141 = vmatpush1.bf16.msra.mxu0 %v8983_v11  ;;  %v10229_v16 = vpop.f32.mrb[16].mxu1  ;;  %v9042_v11 = vld [vmem:[#allocation19 + $0x28] sm:$0xff]  }
 0x61e   : > { %6142 = vmatprep.subr.bf16.mxu0 %v8988_v10  ;;  %v5706_v18 = vpop.f32.mrb[17].mxu1  ;;  %v5705_v51 = vadd.f32 %v10229_v16, %v5603_v48  ;;  %v9043_v10 = vld [vmem:[#allocation19 + $0x70] sm:$0xff]   ;;  %v9046_v16 = vld [vmem:[#allocation19 + $0x38] sm:$0xff]   ;;  %v9055_v48 = vld [vmem:[%s10584_s10 + $0x60] sm:$0xff]  }
 0x61f   : > { %v5707_v19 = vadd.f32 %v5706_v18, %v5607_v14  ;;  %v5708_v20 = vpop.f32.mrb[18].mxu1  ;;  %v9044_v14 = vld [vmem:[#allocation19 + $0x30] sm:$0xff]  }
 0x620   : > { %v5709_v21 = vpop.f32.mrb[19].mxu1  ;;  %v10238_v54 = vpack.c.bf16 %v5705_v51, %v5705_v51  ;;  %v9058_v51 = vld [vmem:[%s10584_s10 + $0x28] sm:$0xff]  }
 0x621   : > { %6143 = vmatpush1.bf16.msra.mxu0 %v8986_v34  ;;  %v10231_v23 = vpack.c.bf16 %v5707_v19, %v5707_v19  ;;  %v9045_v34 = vld [vmem:[#allocation19 + $0x78] sm:$0xff]  }
 0x622   : > { %6144 = vmatprep.subr.bf16.mxu0 %v8991_v17  ;;  %v6183_v17 = vld [vmem:[#allocation17] sm:$0x3] }
 0x623   : > { %6172 = vmatprep.mubr.bf16.mxu0 %v10231_v23  ;;  %v6188_v18 = vrot.slane %v6183_v17, %v10172_v52  ;;  %v6192_v19 = vrot.slane %v6183_v17, %v10159_v3  ;;  %v9095_v3 = vld [vmem:[%s10584_s10 + $0x180] sm:$0xff]   ;;  %v9096_v52 = vld [vmem:[%s10584_s10 + $0x188] sm:$0xff]   ;;  %v9084_v17 = vld [vmem:[%s10584_s10 + $0x110] sm:$0xff]  }
 0x625   : > { %6145 = vmatpush1.bf16.msra.mxu0 %v8989_v22 }
 0x626   : > { %6146 = vmatprep.subr.bf16.mxu0 %v8994_v53 }
 0x629   : > { %6147 = vmatpush1.bf16.msra.mxu0 %v8992_v58 }
 0x62a   : > { %6148 = vmatprep.subr.bf16.mxu0 %v8997_v26 }
 0x62d   : > { %6149 = vmatpush1.bf16.msra.mxu0 %v8995_v27 }
 0x62e   : > { %6150 = vmatprep.subr.bf16.mxu0 %v9000_v28 }
 0x631   : > { %6151 = vmatpush1.bf16.msra.mxu0 %v8998_v29  ;;  %v9592_v29 = vmov 0.0  }
 0x632   : > { %6152 = vmatprep.subr.bf16.mxu0 %v9003_v30  ;;  %v9097_v30 = vld [vmem:[%s10584_s10 + $0x190] sm:$0xff]  }
 0x635   : > { %6153 = vmatpush1.bf16.msra.mxu0 %v9001_v31  ;;  %v9098_v31 = vld [vmem:[%s10584_s10 + $0x198] sm:$0xff]  }
 0x636   : > { %6154 = vmatprep.subr.bf16.mxu0 %v9006_v32  ;;  %v9099_v32 = vld [vmem:[%s10584_s10 + $0x1a0] sm:$0xff]  }
 0x639   : > { %6155 = vmatpush1.bf16.msra.mxu0 %v9004_v33  ;;  %v9100_v33 = vld [vmem:[%s10584_s10 + $0x1a8] sm:$0xff]  }
 0x63a   : > { %6156 = vmatprep.subr.bf16.mxu0 %v9009_v35 }
 0x63d   : > { %6157 = vmatpush1.bf16.msra.mxu0 %v9007_v36  ;;  %v9101_v36 = vld [vmem:[%s10584_s10 + $0x1b0] sm:$0xff]  }
 0x63e   : > { %6158 = vmatprep.subr.bf16.mxu0 %v9012_v37 }
 0x641   : > { %6159 = vmatpush1.bf16.msra.mxu0 %v9010_v39 }
 0x642   : > { %6160 = vmatprep.subr.bf16.mxu0 %v9015_v40 }
 0x645   : > { %6161 = vmatpush1.bf16.msra.mxu0 %v9013_v41 }
 0x646   : > { %6162 = vmatprep.subr.bf16.mxu0 %v9018_v42 }
 0x649   : > { %6163 = vmatpush1.bf16.msra.mxu0 %v9016_v43  ;;  %v9047_v43 = vld [vmem:[%s10584_s10 + $0x40] sm:$0xff]  }
 0x64a   : > { %6164 = vmatprep.subr.bf16.mxu0 %v9021_v44 }
 0x64d   : > { %6165 = vmatpush1.bf16.msra.mxu0 %v9019_v45  ;;  %v9048_v45 = vld [vmem:[%s10584_s10] sm:$0xff]  }
 0x64e   : > { %6166 = vmatprep.subr.bf16.mxu0 %v9024_v46  ;;  %v9049_v46 = vld [vmem:[%s10584_s10 + $0x48] sm:$0xff]  }
 0x651   : > { %6167 = vmatpush1.bf16.msra.mxu0 %v9022_v47  ;;  %v9050_v47 = vld [vmem:[%s10584_s10 + $0x8] sm:$0xff]  }
 0x652   : > { %6168 = vmatprep.subr.bf16.mxu0 %v9027_v24  ;;  %v9051_v24 = vld [vmem:[%s10584_s10 + $0x50] sm:$0xff]  }
 0x655   : > { %6169 = vmatpush1.bf16.msra.mxu0 %v9025_v4  ;;  %v9052_v4 = vld [vmem:[%s10584_s10 + $0x10] sm:$0xff]  }
 0x656   : > { %6170 = vmatprep.subr.bf16.mxu0 %v9030_v49  ;;  %v9056_v49 = vld [vmem:[%s10584_s10 + $0x20] sm:$0xff]  }
 0x659   : > { %6171 = vmatpush1.bf16.msra.mxu0 %v9028_v50  ;;  %v9057_v50 = vld [vmem:[%s10584_s10 + $0x68] sm:$0xff]  }
 0x65a   : > { %8262 = vmatprep.subr.bf16.mxu0 %v9592_v29 }
 0x65c   : > { %6173 = vmatmul.mubr.bf16.vlgmr.msra.gmra.mrb[12].mxu0 %v10238_v54 }
 0x65d   : > { %8278 = vmatprep.mubr.msk.bf16.mxu0 %vm9593_vm4, %v9592_v29  ;;  %8263 = vmatpush3.bf16.msra.mxu0 %v9095_v3  ;;  %v8094_v3 = vld [vmem:[#allocation20] ss:$0 sm:$0xff] }
 0x65e   : > { %8264 = vmatprep.subr.bf16.mxu0 %v9592_v29 }
 0x661   : > { %8265 = vmatpush3.bf16.msra.mxu0 %v9096_v52 }
 0x662   : > { %8266 = vmatprep.subr.bf16.mxu0 %v9592_v29 }
 0x665   : > { %8267 = vmatpush3.bf16.msra.mxu0 %v9097_v30 }
 0x666   : > { %8268 = vmatprep.subr.bf16.mxu0 %v9592_v29 }
 0x669   : > { %8269 = vmatpush3.bf16.msra.mxu0 %v9098_v31 }
 0x66a   : > { %8270 = vmatprep.subr.bf16.mxu0 %v9592_v29 }
 0x66d   : > { %8271 = vmatpush3.bf16.msra.mxu0 %v9099_v32 }
 0x66e   : > { %8272 = vmatprep.subr.bf16.mxu0 %v9592_v29 }
 0x671   : > { %8273 = vmatpush3.bf16.msra.mxu0 %v9100_v33 }
 0x672   : > { %8274 = vmatprep.subr.bf16.mxu0 %v9592_v29 }
 0x675   : > { %8275 = vmatpush3.bf16.msra.mxu0 %v9101_v36 }
 0x676   : > { %8276 = vmatprep.subr.bf16.mxu0 %v9592_v29 }
 0x72f   : > { %v6174_v55 = vpop.f32.mrb[12].mxu0 }
 0x730   : > { %v6181_v56 = vpack.c.bf16 %v6174_v55, %v6174_v55  ;;  %v6176_v59 = vpop.f32.mrb[13].mxu0  ;;  %v9059_v55 = vld [vmem:[%s10584_s10 + $0x70] sm:$0xff]  }
 0x731   : > { %v6182_v61 = vpack.c.bf16 %v6176_v59, %v6176_v59  ;;  %v6178_v62 = vpop.f32.mrb[14].mxu0  ;;  %v9061_v59 = vld [vmem:[%s10584_s10 + $0x78] sm:$0xff]  }
 0x732   : > { %v6196_v57 = vsel %vm5616_vm2, %v6181_v56, 0  ;;  %v6179_v63 = vpop.f32.mrb[15].mxu0  ;;  %v9060_v56 = vld [vmem:[%s10584_s10 + $0x30] sm:$0xff]   ;;  %v9063_v62 = vld [vmem:[%s10584_s10 + $0xc0] sm:$0xff]  }
 0x733   : > { %8076 = vmatprep.subr.msk.bf16.mxu1 %vm5616_vm2, %v6182_v61  ;;  %v9062_v61 = vld [vmem:[%s10584_s10 + $0x38] sm:$0xff]   ;;  %v9066_v63 = vld [vmem:[%s10584_s10 + $0x88] sm:$0xff]  }
 0x734   : > { %6202 = vmatpush1.bf16.msra.mxu1 %v6196_v57  ;;  %v9065_v57 = vld [vmem:[%s10584_s10 + $0xc8] sm:$0xff]  }
 0x735   : > { %8157 = vmatprep.subr.bf16.mxu1 %v9031_v38  ;;  %v9064_v38 = vld [vmem:[%s10584_s10 + $0x80] sm:$0xff]  }
 0x737   : > { %8077 = vmatmul.mubr.msk.bf16.vlgmr.msra.gmra.mrb[20].mxu1 %vm5612_vm3, %v10204_v60 }
 0x738   : > { %8158 = vmatpush3.bf16.msra.mxu1 %v9032_v0  ;;  %v9067_v0 = vld [vmem:[%s10584_s10 + $0xd0] sm:$0xff]  }
 0x739   : > { %8159 = vmatprep.subr.bf16.mxu1 %v9033_v1  ;;  %v9068_v1 = vld [vmem:[%s10584_s10 + $0x90] sm:$0xff]  }
 0x73c   : > { %8160 = vmatpush3.bf16.msra.mxu1 %v9034_v15  ;;  %v9071_v15 = vld [vmem:[%s10584_s10 + $0xe0] sm:$0xff]  }
 0x73d   : > { %8161 = vmatprep.subr.bf16.mxu1 %v9035_v2  ;;  %v9072_v2 = vld [vmem:[%s10584_s10 + $0xa0] sm:$0xff]  }
 0x740   : > { %8162 = vmatpush3.bf16.msra.mxu1 %v9036_v12  ;;  %v9073_v12 = vld [vmem:[%s10584_s10 + $0xe8] sm:$0xff]  }
 0x741   : > { %8163 = vmatprep.subr.bf16.mxu1 %v9037_v5  ;;  %v9074_v5 = vld [vmem:[%s10584_s10 + $0xa8] sm:$0xff]  }
 0x744   : > { %8164 = vmatpush3.bf16.msra.mxu1 %v9038_v6  ;;  %v9075_v6 = vld [vmem:[%s10584_s10 + $0xf0] sm:$0xff]  }
 0x745   : > { %8165 = vmatprep.subr.bf16.mxu1 %v9039_v25  ;;  %v9076_v25 = vld [vmem:[%s10584_s10 + $0xb0] sm:$0xff]  }
 0x748   : > { %8166 = vmatpush3.bf16.msra.mxu1 %v9040_v8  ;;  %v9077_v8 = vld [vmem:[%s10584_s10 + $0xf8] sm:$0xff]  }
 0x749   : > { %8167 = vmatprep.subr.bf16.mxu1 %v9041_v7  ;;  %v9078_v7 = vld [vmem:[%s10584_s10 + $0xb8] sm:$0xff]  }
 0x74c   : > { %8168 = vmatpush3.bf16.msra.mxu1 %v9042_v11  ;;  %v9079_v11 = vld [vmem:[%s10584_s10 + $0x140] sm:$0xff]  }
 0x74d   : > { %8169 = vmatprep.subr.bf16.mxu1 %v9043_v10  ;;  %v9080_v10 = vld [vmem:[%s10584_s10 + $0x100] sm:$0xff]  }
 0x750   : > { %8170 = vmatpush3.bf16.msra.mxu1 %v9044_v14  ;;  %v9081_v14 = vld [vmem:[%s10584_s10 + $0x148] sm:$0xff]  }
 0x751   : > { %8171 = vmatprep.subr.bf16.mxu1 %v9045_v34  ;;  %v9082_v34 = vld [vmem:[%s10584_s10 + $0x108] sm:$0xff]  }
 0x754   : > { %8172 = vmatpush3.bf16.msra.mxu1 %v9046_v16  ;;  %v9083_v16 = vld [vmem:[%s10584_s10 + $0x150] sm:$0xff]  }
 0x755   : > { %8256 = vmatprep.subr.bf16.mxu1 %v9592_v29 }
 0x80a   : > { %v6235_v20 = vpop.f32.mrb[20].mxu1 }
 0x80b   : > { %v6236_v21 = vadd.f32 %v6235_v20, %v6188_v18  ;;  %v6237_v22 = vpop.f32.mrb[21].mxu1  ;;  %v9086_v18 = vld [vmem:[%s10584_s10 + $0x118] sm:$0xff]   ;;  %v9088_v20 = vld [vmem:[%s10584_s10 + $0x120] sm:$0xff]  }
 0x80c   : > { %v6238_v53 = vadd.f32 %v6237_v22, %v6192_v19  ;;  %v6239_v58 = vpop.f32.mrb[22].mxu1  ;;  %v9087_v19 = vld [vmem:[%s10584_s10 + $0x160] sm:$0xff]   ;;  %v9090_v22 = vld [vmem:[%s10584_s10 + $0x128] sm:$0xff]  }
 0x80d   : > { %v6240_v26 = vpop.f32.mrb[23].mxu1  ;;  %v10249_v28 = vpack.c.bf16 %v6236_v21, %v6236_v21  ;;  %v9089_v21 = vld [vmem:[%s10584_s10 + $0x168] sm:$0xff]   ;;  %v9102_v58 = vld [vmem:[%s10584_s10 + $0x1b8] sm:$0xff]  }
 0x80e   : > { %v10247_v27 = vpack.c.bf16 %v6238_v53, %v6238_v53  ;;  %v9091_v53 = vld [vmem:[%s10584_s10 + $0x170] sm:$0xff]   ;;  %8277 = vmatpush3.bf16.msra.mxu0 %v9102_v58 }
 0x80f   : > { %v9092_v26 = vld [vmem:[%s10584_s10 + $0x130] sm:$0xff]  }
 0x810   : > { %6404 = vmatprep.mubr.bf16.mxu1 %v10247_v27 }
 0x811   : > { %6405 = vmatmul.mubr.bf16.vlgmr.msra.gmra.mrb[24].mxu1 %v10249_v28 }
 0x812   : > { %8258 = vmatprep.mubr.msk.bf16.mxu1 %vm9593_vm4, %v9592_v29  ;;  %v9094_v29 = vld [vmem:[%s10584_s10 + $0x138] sm:$0xff]  }
 0x8e4   : > { %v8173_v35 = vpop.f32.mrb[24].mxu1 }
 0x8e5   : > { %v8174_v37 = vpop.f32.mrb[25].mxu1 }
 0x8e6   : > { %v8175_v39 = vadd.f32 %v8174_v37, %v8173_v35  ;;  %v8176_v40 = vpop.f32.mrb[26].mxu1 }
 0x8e7   : > { %v8177_v41 = vpop.f32.mrb[27].mxu1 }
 0x8e8   : > { %v6412_v42 = vpack.c.bf16 %v8175_v39, %v8175_v39 }
 0x8ea   : > { %v6421_v44 = vsel %vm5616_vm2, %v6412_v42, 0  ;;  %v8096_v42 = vld [vmem:[#allocation22] ss:$0 sm:$0xff] }
 0x8eb   : > { %8257 = vmatpush3.bf16.msra.mxu1 %v6421_v44 }
 0x8ec   : > { %8181 = vmatprep.subr.bf16.mxu1 %v9047_v43 }
 0x8ee   : > { %8259 = vmatmul.mubr.msk.bf16.vlgmr.msra.gmra.mrb[28].mxu1 %vm5612_vm3, %v10204_v60  ;;  %v9053_v60 = vld [vmem:[%s10584_s10 + $0x58] sm:$0xff]  }
 0x8ef   : > { %8182 = vmatpush3.bf16.msra.mxu1 %v9048_v45  ;;  %6951 = vmatprep.mubr.bf16.mxu1 %v10220_v9  ;;  %v9054_v9 = vld [vmem:[%s10584_s10 + $0x18] sm:$0xff]  }
 0x8f0   : > { %8183 = vmatprep.subr.bf16.mxu1 %v9049_v46 }
 0x8f3   : > { %8184 = vmatpush3.bf16.msra.mxu1 %v9050_v47 }
 0x8f4   : > { %8185 = vmatprep.subr.bf16.mxu1 %v9051_v24 }
 0x8f7   : > { %8186 = vmatpush3.bf16.msra.mxu1 %v9052_v4 }
 0x8f8   : > { %8187 = vmatprep.subr.bf16.mxu1 %v9053_v60 }
 0x8fb   : > { %8188 = vmatpush3.bf16.msra.mxu1 %v9054_v9 }
 0x8fc   : > { %8189 = vmatprep.subr.bf16.mxu1 %v9055_v48 }
 0x8ff   : > { %8190 = vmatpush3.bf16.msra.mxu1 %v9056_v49 }
 0x900   : > { %8191 = vmatprep.subr.bf16.mxu1 %v9057_v50 }
 0x903   : > { %8192 = vmatpush3.bf16.msra.mxu1 %v9058_v51 }
 0x904   : > { %8193 = vmatprep.subr.bf16.mxu1 %v9059_v55 }
 0x907   : > { %8194 = vmatpush3.bf16.msra.mxu1 %v9060_v56 }
 0x908   : > { %8195 = vmatprep.subr.bf16.mxu1 %v9061_v59 }
 0x90b   : > { %8196 = vmatpush3.bf16.msra.mxu1 %v9062_v61 }
 0x90c   : > { %8203 = vmatprep.subr.bf16.mxu1 %v9063_v62 }
 0x90e   : > { %6952 = vmatmul.mubr.bf16.vlgmr.msra.gmra.mrb[32].mxu1 %v10222_v13  ;;  %v9069_v13 = vld [vmem:[%s10584_s10 + $0xd8] sm:$0xff]  }
 0x90f   : > { %8204 = vmatpush3.bf16.msra.mxu1 %v9064_v38  ;;  %6991 = vmatprep.mubr.bf16.mxu1 %v10231_v23  ;;  %v9070_v23 = vld [vmem:[%s10584_s10 + $0x98] sm:$0xff]  }
 0x910   : > { %8205 = vmatprep.subr.bf16.mxu1 %v9065_v57 }
 0x913   : > { %8206 = vmatpush3.bf16.msra.mxu1 %v9066_v63 }
 0x914   : > { %8207 = vmatprep.subr.bf16.mxu1 %v9067_v0 }
 0x917   : > { %8208 = vmatpush3.bf16.msra.mxu1 %v9068_v1 }
 0x918   : > { %8209 = vmatprep.subr.bf16.mxu1 %v9069_v13 }
 0x91b   : > { %8210 = vmatpush3.bf16.msra.mxu1 %v9070_v23 }
 0x91c   : > { %8211 = vmatprep.subr.bf16.mxu1 %v9071_v15 }
 0x91f   : > { %8212 = vmatpush3.bf16.msra.mxu1 %v9072_v2 }
 0x920   : > { %8213 = vmatprep.subr.bf16.mxu1 %v9073_v12 }
 0x923   : > { %8214 = vmatpush3.bf16.msra.mxu1 %v9074_v5 }
 0x924   : > { %8215 = vmatprep.subr.bf16.mxu1 %v9075_v6 }
 0x927   : > { %8216 = vmatpush3.bf16.msra.mxu1 %v9076_v25 }
 0x928   : > { %8217 = vmatprep.subr.bf16.mxu1 %v9077_v8 }
 0x92b   : > { %8218 = vmatpush3.bf16.msra.mxu1 %v9078_v7 }
 0x92c   : > { %8225 = vmatprep.subr.bf16.mxu1 %v9079_v11 }
 0x92e   : > { %6992 = vmatmul.mubr.bf16.vlgmr.msra.gmra.mrb[36].mxu1 %v10238_v54  ;;  %v9085_v54 = vld [vmem:[%s10584_s10 + $0x158] sm:$0xff]  }
 0x92f   : > { %8226 = vmatpush3.bf16.msra.mxu1 %v9080_v10  ;;  %7031 = vmatprep.mubr.bf16.mxu1 %v10247_v27  ;;  %v9093_v27 = vld [vmem:[%s10584_s10 + $0x178] sm:$0xff]  }
 0x930   : > { %8227 = vmatprep.subr.bf16.mxu1 %v9081_v14 }
 0x933   : > { %8228 = vmatpush3.bf16.msra.mxu1 %v9082_v34 }
 0x934   : > { %8229 = vmatprep.subr.bf16.mxu1 %v9083_v16 }
 0x937   : > { %8230 = vmatpush3.bf16.msra.mxu1 %v9084_v17 }
 0x938   : > { %8231 = vmatprep.subr.bf16.mxu1 %v9085_v54 }
 0x93b   : > { %8232 = vmatpush3.bf16.msra.mxu1 %v9086_v18 }
 0x93c   : > { %8233 = vmatprep.subr.bf16.mxu1 %v9087_v19 }
 0x93f   : > { %8234 = vmatpush3.bf16.msra.mxu1 %v9088_v20 }
 0x940   : > { %8235 = vmatprep.subr.bf16.mxu1 %v9089_v21 }
 0x943   : > { %8236 = vmatpush3.bf16.msra.mxu1 %v9090_v22 }
 0x944   : > { %8237 = vmatprep.subr.bf16.mxu1 %v9091_v53 }
 0x947   : > { %8238 = vmatpush3.bf16.msra.mxu1 %v9092_v26 }
 0x948   : > { %8239 = vmatprep.subr.bf16.mxu1 %v9093_v27 }
 0x94b   : > { %8240 = vmatpush3.bf16.msra.mxu1 %v9094_v29 }
 0x94e   : > { %7032 = vmatmul.mubr.bf16.vlgmr.msra.gmra.mrb[40].mxu1 %v10249_v28 }
 0x9c1   : > { %v6457_v52 = vpop.f32.mrb[28].mxu1 }
 0x9c2   : > { %v6458_v30 = vadd.f32 %v8094_v3, %v6457_v52  ;;  %v8260_v31 = vpop.f32.mrb[29].mxu1 }
 0x9c3   : > { %v6460_v32 = vpop.f32.mrb[30].mxu1 }
 0x9c4   : > { %v6463_v33 = vpack.c.bf16 %v6458_v30, %v6458_v30  ;;  %v8261_v35 = vpop.f32.mrb[31].mxu1 }
 0x9c6   : > { %8279 = vmatmul.mubr.bf16.vlgmr.msra.gmra.mrb[16].mxu0 %v6463_v33 }
 0x9e1   : > { %v8197_v36 = vpop.f32.mrb[32].mxu1 }
 0x9e2   : > { %v8198_v37 = vpop.f32.mrb[33].mxu1 }
 0x9e3   : > { %v8199_v39 = vadd.f32 %v8198_v37, %v8197_v36  ;;  %v8200_v40 = vpop.f32.mrb[34].mxu1 }
 0x9e4   : > { %v8201_v41 = vpop.f32.mrb[35].mxu1 }
 0x9e5   : > { %v6954_v45 = vadd.f32 %v8199_v39, %v8096_v42 }
 0xa01   : > { %v8219_v43 = vpop.f32.mrb[36].mxu1 }
 0xa02   : > { %v8220_v44 = vpop.f32.mrb[37].mxu1 }
 0xa03   : > { %v8221_v46 = vadd.f32 %v8220_v44, %v8219_v43  ;;  %v8222_v47 = vpop.f32.mrb[38].mxu1 }
 0xa04   : > { %v8223_v28 = vpop.f32.mrb[39].mxu1 }
 0xa05   : > { %v6994_v24 = vadd.f32 %v8221_v46, %v6954_v45 }
 0xa21   : > { %v8241_v4 = vpop.f32.mrb[40].mxu1 }
 0xa22   : > { %v8242_v60 = vpop.f32.mrb[41].mxu1 }
 0xa23   : > { %v8243_v9 = vadd.f32 %v8242_v60, %v8241_v4  ;;  %v8244_v48 = vpop.f32.mrb[42].mxu1 }
 0xa24   : > { %v8245_v49 = vpop.f32.mrb[43].mxu1 }
 0xa25   : > { %v7034_v50 = vadd.f32 %v8243_v9, %v6994_v24 }
 0xa99   : > { %v7073_v51 = vpop.f32.mrb[16].mxu0 }
 0xa9a   : > { %v7074_v55 = vadd.f32 %v7073_v51, %v7034_v50  ;;  %v8280_v56 = vpop.f32.mrb[17].mxu0 }
 0xa9b   : > { %v7076_v59 = vpop.f32.mrb[18].mxu0 }
 0xa9c   : > { %v7080_v61 = vsel %vm7079_vm5, %v7074_v55, -inf  ;;  %v8281_v62 = vpop.f32.mrb[19].mxu0 }
 0xa9d   : > { %7081 = vmax.xlane.f32.xlu0 %v7080_v61 }
 0xb2a   : > { %v7082_v38 = vpop.xlane.xlu0 %7081 }
 0xb2b   : > { %v7083_v57 = vsub.f32 %v7074_v55, %v7082_v38 }
 0xb2d   : > { %v7084_v63 = vmul.f32 1.442695, %v7083_v57 }
 0xb2f   : > { %9103 = vpow2.f32 %v7084_v63 }
 0xb39   : > { %v9104_v0 = vpop.eup %9103 }
 0xb3a   : > { %v7086_v1 = vsel %vm7079_vm5, %v9104_v0, 0.0 }
 0xb3b   : > { %7087 = vadd.xlane.f32.xlu0 %v7086_v1 }
 0xbc8   : > { %v7088_v13 = vpop.xlane.xlu0 %7087 }
 0xbc9   : > { %9105 = vrcp.f32 %v7088_v13 }
 0xbd3   : > { %v9106_v23 = vpop.eup %9105 }
 0xbd4   : > { %v7090_v15 = vmul.f32 %v9106_v23, %v9104_v0 }
 0xbd6   : > { %7091 = vst.msk [vmem:[%s689_s6] sm:$0xff] %vm7079_vm5, %v7090_v15 }
 0xbd7   : > { %9491 = shalt.err (!%p9488_p0)
}
 0xbd8   : > { %s9492_s9 = scalar_lea.hbm %s10437_s8, 128  ;;  %s9496_s20 = scalar_lea.hbm %s10585_s7, 512 }
 0xbd9   : > { %p9493_p2 = scmp.ne.s32.totalorder %s10437_s8, %s9492_s9  ;;  %p9497_p6 = scmp.lt.u32.totalorder %s10437_s8, %s10585_s7 }
 0xbda   : > { %p9498_p4 = scmp.lt.u32.totalorder %s9496_s20, %s9492_s9  ;;  %p9500_p8 = scmp.lt.u32.totalorder %s9492_s9, %s10437_s8 }
 0xbdb   : > { %p9494_p7 = pnand %p9493_p2, %p10586_p9 }
 0xbdc   : > { %p9499_p3 = por %p9498_p4, %p9497_p6 }
 0xbdd   : > { %p9495_p11 = pneg %p9494_p7 }
 0xbde   : > { %p9501_p13 = por %p9500_p8, %p9499_p3 }
 0xbe0   : > { %p9502_p5 = pnand %p9501_p13, %p9495_p11 }
 0xbe2   : > { %9505 = shalt.err (!%p9502_p5)
}
 0xbe3   : > { %8407 = dma.vmem_to_hbm [thread:$0]  (%p10586_p9), %s10439_s5, 128, %s10437_s8, %s7093_s27  }
 0xbe4 PF: > { %s10587_s23 = sld [smem:[#allocation36_spill]]  ;;  %p8475_p10 = scmp.ge.s32.totalorder %s9568_s16, 2 }
 0xbe5   : > { %s7118_s15 = sand.u32 1, %s9556_s29  }
 0xbe6   : > { %s7119_s28 = scalar_lea.sflag [#allocation4], %s7118_s15 }
 0xbea   : > { %p10588_p1 = scmp.ne.s32.totalorder %s10587_s23, 0 }
 0xbec   : > { %p8451_p12 = pnand %p8475_p10, %p10588_p1 }
 0xbee   : > { %9551 = dma.done.wait (!%p8451_p12), %s7119_s28, 128  }
 0xbef   : > { %9553 = vsyncadd (!%p8451_p12), %s7119_s28, 4294967168  ;;  %s10589_s16 = sld [smem:[#allocation34_spill]]  ;;  %s10590_s4 = sld [smem:[#allocation32_spill]] }
 0xbf0   : > { %s10591_s15 = sld [smem:[#allocation35_spill]]  ;;  %s10592_s29 = smov %s9560_s30 }
 0xbf5   : > { %p35_p0 = scmp.ge.s32.totalorder %s10589_s16, 6   ;;  %s10593_s30 = smov %s10590_s4 }
 0xbf7   :  { %37 = sbr.rel (!%p35_p0) target bundleno = 27 (0x1b), region = 185 }
 0xbfe   :  { %7124 = vsyncpa [#allocation3], 1 }
 0xbff   :  { %7126 = vsyncpa [#allocation3 + $0x1], 1 }
 0xc00   :  { %7127 = vsyncpa [#allocation6], 1 }
 0xc01   :  { %7129 = vsyncpa [#allocation6 + $0x1], 1 }
 0xc02   :  { %7130 = vsyncpa [#allocation9], 1 }
 0xc03   :  { %7131 = vsyncpa [#allocation12], 1 }
 0xc04   :  { %7132 = vsyncpa [#allocation15], 1 }
 0xc05   :  { %7133 = vsyncpa [#allocation18], 1 }
 0xc06   :  { %7134 = vsyncpa [#allocation21], 1 }
 0xc07   :  { %7135 = vsyncpa [#allocation4], 1 }
 0xc08   :  { %7137 = vsyncpa [#allocation4 + $0x1], 1 }

</bundles_post_ra>
